<compile_context>
chip_gen: v7x
topology: tpu7x:2x2x1
jax: 0.10.0
libtpu: 0.0.40
codegen_flags: <defaults>
</compile_context>

<pallas_src>
import jax
import jax.numpy as jnp
from jax.experimental import pallas as pl
from jax.experimental.pallas import tpu as pltpu


# On v6e/v7x set this to jnp.bfloat16 to feed the bf16-native MXU (accumulation stays f32
# via preferred_element_type); kept f32 here so the 1e-4 reference check holds and because
# v5e's VPU/EUP lack bf16 (elementwise math stays f32 in the kernel regardless).
MATMUL_DTYPE = jnp.float32


def _dot(a, b):
    return jnp.dot(a.astype(MATMUL_DTYPE), b.astype(MATMUL_DTYPE),
                   preferred_element_type=jnp.float32)


# ----------------------------------------------------------------------------
# Fused Pallas kernel: both AdeptPolylineEncoder stages, b_tile batch rows per grid step.
# ----------------------------------------------------------------------------
def make_fused_kernel(b_tile, T, P, n_pre1, n_bet1, n_pre2, n_bet2):
    BT = b_tile * T          # rows pooled over P in stage 1
    N1 = BT * P              # total points handled per grid step

    def kernel(x_ref, m_ref, *refs):
        # -- unpack weight refs (static python bookkeeping at trace time) -----------
        it = iter(refs)
        pre1 = [(next(it), next(it)) for _ in range(n_pre1)]
        wt1, wb1, bb1 = next(it), next(it), next(it)                 # split bet1[0]
        bet1_rest = [(next(it), next(it)) for _ in range(n_bet1 - 1)]
        pre2 = [(next(it), next(it)) for _ in range(n_pre2)]
        wt2, wb2, bb2 = next(it), next(it), next(it)                 # split bet2[0]
        bet2_rest = [(next(it), next(it)) for _ in range(n_bet2 - 1)]
        wo1, bo1, wo2, bo2 = next(it), next(it), next(it), next(it)  # out-MLP
        out_ref = next(it)

        x = x_ref[...]               # (N1, C_in)   all points of this batch tile
        m = m_ref[...]               # (N1, 1)      float {0,1} point validity

        # ================= stage 1: point compression (pool over P) ===============
        # first pre layer: K = C_in (tiny) -> VPU broadcast-FMAs, skip the MXU pass
        w0, b0 = pre1[0]
        w0v = w0[...]
        c_in, d0 = w0v.shape
        if c_in <= 8:
            h = x[:, 0:1] * w0v[0:1, :]
            for c in range(1, c_in):
                h = h + x[:, c:c + 1] * w0v[c:c + 1, :]
            h = h + b0[...]
        else:
            h = _dot(x, w0v) + b0[...]
        h = jnp.maximum(h, 0.0)
        for w, b in pre1[1:]:
            h = jnp.maximum(_dot(h, w[...]) + b[...], 0.0)

        # zero features at invalid points (matches scatter-into-zeros in the reference;
        # safe for max-pool because ReLU guarantees h >= 0)
        h = h * m
        d = h.shape[-1]
        pooled = jnp.max(h.reshape(BT, P, d), axis=1)                # (BT, d)

        # first bet layer with split weights (no (P, 2D) concat materialized)
        g = _dot(pooled, wb1[...])                                   # (BT, Db)
        ht = _dot(h, wt1[...])                                       # (N1, Db)
        db = ht.shape[-1]
        h = jnp.maximum(ht.reshape(BT, P, db) + g[:, None, :] + bb1[...], 0.0)
        h = h.reshape(N1, db)
        for w, b in bet1_rest:
            h = jnp.maximum(_dot(h, w[...]) + b[...], 0.0)
        h = h * m
        d1 = h.shape[-1]
        feat1 = jnp.max(h.reshape(BT, P, d1), axis=1)                # (BT, d1)

        # per-(b, t) validity: any valid point in that timestep
        m2 = jnp.max(m.reshape(BT, P, 1), axis=1)                    # (BT, 1) in {0,1}

        # ================= stage 2: time compression (pool over T) ================
        h2 = feat1
        for w, b in pre2:
            h2 = jnp.maximum(_dot(h2, w[...]) + b[...], 0.0)
        h2 = h2 * m2
        dp2 = h2.shape[-1]
        pooled2 = jnp.max(h2.reshape(b_tile, T, dp2), axis=1)        # (b_tile, dp2)

        g2 = _dot(pooled2, wb2[...])                                 # (b_tile, Db2)
        ht2 = _dot(h2, wt2[...])                                     # (BT, Db2)
        db2 = ht2.shape[-1]
        h2 = jnp.maximum(ht2.reshape(b_tile, T, db2) + g2[:, None, :] + bb2[...], 0.0)
        h2 = h2.reshape(BT, db2)
        for w, b in bet2_rest:
            h2 = jnp.maximum(_dot(h2, w[...]) + b[...], 0.0)
        h2 = h2 * m2
        d2 = h2.shape[-1]
        feat2 = jnp.max(h2.reshape(b_tile, T, d2), axis=1)           # (b_tile, d2)

        # out-MLP: Linear+ReLU, Linear (no final act); rows with no valid point -> zeros
        valid = jnp.max(m2.reshape(b_tile, T, 1), axis=1) > 0.0      # (b_tile, 1) bool
        o = jnp.maximum(_dot(feat2, wo1[...]) + bo1[...], 0.0)
        o = _dot(o, wo2[...]) + bo2[...]
        o = jnp.where(valid, o, 0.0)

        out_ref[...] = o.astype(out_ref.dtype)                       # dense (b_tile, out) slab

    return kernel


# ----------------------------------------------------------------------------
# Wrapper: one fused pallas_call for the whole LidarPointNetEncoder forward
# ----------------------------------------------------------------------------
def lidar_pointnet_encoder(lidar_points, lidar_mask, params1, params2, *, b_tile=None):
    """lidar_points: (B, T, P, C) float32, lidar_mask: (B, T, P) bool.

    Returns (B, 1, output_channels) float32 — same as the PyTorch module
    (with output_max_idx=False).
    """
    B, T, P, C = lidar_points.shape
    if b_tile is None:
        b_tile = B if B <= 8 else 8       # keep sublane-aligned tiles for larger batches
    assert B % b_tile == 0, "b_tile must divide batch size"

    # flatten in the wrapper so the kernel sees dense 2-D (rows, channels) slabs
    x_flat = lidar_points.reshape(B * T * P, C).astype(jnp.float32)
    m_flat = lidar_mask.astype(jnp.float32).reshape(B * T * P, 1)

    d_pre1 = params1["pre"][-1][0].shape[-1]
    d_pre2 = params2["pre"][-1][0].shape[-1]

    # split the first bet-layer weight row-wise (add_global concat -> two matmuls)
    w1b0, b1b0 = params1["bet"][0]
    w2b0, b2b0 = params2["bet"][0]

    weights = []
    for w, b in params1["pre"]:
        weights += [w, b]
    weights += [w1b0[:d_pre1], w1b0[d_pre1:], b1b0]
    for w, b in params1["bet"][1:]:
        weights += [w, b]
    for w, b in params2["pre"]:
        weights += [w, b]
    weights += [w2b0[:d_pre2], w2b0[d_pre2:], b2b0]
    for w, b in params2["bet"][1:]:
        weights += [w, b]
    for w, b in params2["out"]:
        weights += [w, b]

    out_ch = params2["out"][-1][0].shape[-1]
    rows_per_tile = b_tile * T * P

    kernel = make_fused_kernel(b_tile, T, P,
                               len(params1["pre"]), len(params1["bet"]),
                               len(params2["pre"]), len(params2["bet"]))

    in_specs = [
        pl.BlockSpec((rows_per_tile, C), lambda i: (i, 0)),   # all points of the batch tile
        pl.BlockSpec((rows_per_tile, 1), lambda i: (i, 0)),   # their validity mask
    ]
    # tiny weights: full-shape blocks, constant index_map -> single VMEM load, no re-DMA
    for w in weights:
        in_specs.append(pl.BlockSpec(w.shape, lambda i: (0, 0)))

    out = pl.pallas_call(
        kernel,
        out_shape=jax.ShapeDtypeStruct((B, out_ch), jnp.float32),
        grid_spec=pl.GridSpec(
            grid=(B // b_tile,),
            in_specs=in_specs,
            out_specs=pl.BlockSpec((b_tile, out_ch), lambda i: (i, 0)),
        ),
        compiler_params=pltpu.CompilerParams(dimension_semantics=("parallel",)),
    )(x_flat, m_flat, *weights)
    return out.reshape(B, 1, out_ch)


# ----------------------------------------------------------------------------
# Pure-JAX reference (for verification only)
# ----------------------------------------------------------------------------
def ref_polyline_encoder(x_rows, m_rows, params, add_global, has_out):
    h = x_rows
    m = m_rows
    for w, b in params["pre"]:
        h = jnp.maximum(h @ w + b, 0.0)
    h = h * m
    pooled = jnp.max(h, axis=1, keepdims=True)
    if add_global:
        h = jnp.concatenate([h, jnp.broadcast_to(pooled, h.shape)], axis=-1)
    for w, b in params["bet"]:
        h = jnp.maximum(h @ w + b, 0.0)
    h = h * m
    feat = jnp.max(h, axis=1)
    if has_out:
        valid = jnp.max(m[..., 0], axis=1) > 0.0
        (w1, b1), (w2, b2) = params["out"]
        o = jnp.maximum(feat @ w1 + b1, 0.0) @ w2 + b2
        feat = jnp.where(valid[:, None], o, 0.0)
    return feat


def lidar_pointnet_encoder_ref(lidar_points, lidar_mask, params1, params2):
    B, T, P, C = lidar_points.shape
    mask_f = lidar_mask.astype(jnp.float32)
    x1 = lidar_points.reshape(B * T, P, C)
    m1 = mask_f.reshape(B * T, P, 1)
    feat1 = ref_polyline_encoder(x1, m1, params1, True, False).reshape(B, T, -1)
    mask2 = (jnp.sum(mask_f, axis=-1) > 0).astype(jnp.float32)
    m2 = mask2.reshape(B, T, 1)
    feat2 = ref_polyline_encoder(feat1, m2, params2, True, True)
    return feat2.reshape(B, 1, -1)


# ----------------------------------------------------------------------------
# Deterministic parameter init (synthetic, PyTorch-like uniform fan-in init)
# ----------------------------------------------------------------------------
def init_linear(key, cin, cout):
    k1, k2 = jax.random.split(key)
    bound = 1.0 / (cin ** 0.5)
    w = jax.random.uniform(k1, (cin, cout), jnp.float32, -bound, bound)
    b = jax.random.uniform(k2, (1, cout), jnp.float32, -bound, bound)
    return w, b


def build_params(key, in_ch, pre_dims, bet_dims, out_ch=None, add_global=True):
    params = {"pre": [], "bet": [], "out": []}
    c = in_ch
    for d in pre_dims:
        key, k = jax.random.split(key)
        params["pre"].append(init_linear(k, c, d))
        c = d
    c = c * 2 if add_global else c
    for d in bet_dims:
        key, k = jax.random.split(key)
        params["bet"].append(init_linear(k, c, d))
        c = d
    if out_ch is not None:
        key, k1 = jax.random.split(key)
        key, k2 = jax.random.split(key)
        params["out"].append(init_linear(k1, c, c))          # Linear + ReLU
        params["out"].append(init_linear(k2, c, out_ch))     # Linear (no act)
    return params


if __name__ == "__main__":
    # small shapes: batch=2, num_timestamps=8, points_per_timestamp=16, in_channels=4
    B, T, P, C = 2, 8, 16, 4
    DIM = 32            # dim_pre_layers == dim_bet_layers for both parts
    OUT_CH = 64         # output_channels
    N_LAYERS = 2        # layers_per_block

    key = jax.random.PRNGKey(0)
    k_pts, k_msk, k_p1, k_p2 = jax.random.split(key, 4)

    lidar_points = jax.random.normal(k_pts, (B, T, P, C), jnp.float32)
    lidar_mask = jax.random.uniform(k_msk, (B, T, P)) > 0.3   # bool mask

    params1 = build_params(k_p1, C, [DIM] * N_LAYERS, [DIM] * N_LAYERS,
                           out_ch=None, add_global=True)
    params2 = build_params(k_p2, DIM, [DIM] * N_LAYERS, [DIM] * N_LAYERS,
                           out_ch=OUT_CH, add_global=True)

    out = lidar_pointnet_encoder(lidar_points, lidar_mask, params1, params2)
    out = jax.block_until_ready(out)

    ref = lidar_pointnet_encoder_ref(lidar_points, lidar_mask, params1, params2)
    assert out.shape == (B, 1, OUT_CH), out.shape
    assert jnp.allclose(out, ref, atol=1e-4, rtol=1e-4), "mismatch vs reference"

    print("KERNEL_OK")
</pallas_src>

<mosaic_0001>
module attributes {stable_mosaic.version = 11 : i64} {
  func.func @kernel(%arg0: i32, %arg1: memref<256x4xf32, #tpu.memory_space<vmem>>, %arg2: memref<256x1xf32, #tpu.memory_space<vmem>>, %arg3: memref<4x32xf32, #tpu.memory_space<vmem>>, %arg4: memref<1x32xf32, #tpu.memory_space<vmem>>, %arg5: memref<32x32xf32, #tpu.memory_space<vmem>>, %arg6: memref<1x32xf32, #tpu.memory_space<vmem>>, %arg7: memref<32x32xf32, #tpu.memory_space<vmem>>, %arg8: memref<32x32xf32, #tpu.memory_space<vmem>>, %arg9: memref<1x32xf32, #tpu.memory_space<vmem>>, %arg10: memref<32x32xf32, #tpu.memory_space<vmem>>, %arg11: memref<1x32xf32, #tpu.memory_space<vmem>>, %arg12: memref<32x32xf32, #tpu.memory_space<vmem>>, %arg13: memref<1x32xf32, #tpu.memory_space<vmem>>, %arg14: memref<32x32xf32, #tpu.memory_space<vmem>>, %arg15: memref<1x32xf32, #tpu.memory_space<vmem>>, %arg16: memref<32x32xf32, #tpu.memory_space<vmem>>, %arg17: memref<32x32xf32, #tpu.memory_space<vmem>>, %arg18: memref<1x32xf32, #tpu.memory_space<vmem>>, %arg19: memref<32x32xf32, #tpu.memory_space<vmem>>, %arg20: memref<1x32xf32, #tpu.memory_space<vmem>>, %arg21: memref<32x32xf32, #tpu.memory_space<vmem>>, %arg22: memref<1x32xf32, #tpu.memory_space<vmem>>, %arg23: memref<32x64xf32, #tpu.memory_space<vmem>>, %arg24: memref<1x64xf32, #tpu.memory_space<vmem>>, %arg25: memref<2x64xf32, #tpu.memory_space<vmem>>) attributes {dimension_semantics = [#tpu.dimension_semantics<parallel>], iteration_bounds = array<i64: 1>, scalar_prefetch = 0 : i64, scratch_operands = 0 : i64, tpu.core_type = #tpu.core_type<tc>, window_params = [{transform_indices = @transform_0, window_bounds = array<i64: 256, 4>}, {transform_indices = @transform_1, window_bounds = array<i64: 256, 1>}, {pipeline_mode = #tpu.pipeline_mode<synchronous>, transform_indices = @transform_2, window_bounds = array<i64: 4, 32>}, {pipeline_mode = #tpu.pipeline_mode<synchronous>, transform_indices = @transform_3, window_bounds = array<i64: 1, 32>}, {pipeline_mode = #tpu.pipeline_mode<synchronous>, transform_indices = @transform_4, window_bounds = array<i64: 32, 32>}, {pipeline_mode = #tpu.pipeline_mode<synchronous>, transform_indices = @transform_5, window_bounds = array<i64: 1, 32>}, {pipeline_mode = #tpu.pipeline_mode<synchronous>, transform_indices = @transform_6, window_bounds = array<i64: 32, 32>}, {pipeline_mode = #tpu.pipeline_mode<synchronous>, transform_indices = @transform_7, window_bounds = array<i64: 32, 32>}, {pipeline_mode = #tpu.pipeline_mode<synchronous>, transform_indices = @transform_8, window_bounds = array<i64: 1, 32>}, {pipeline_mode = #tpu.pipeline_mode<synchronous>, transform_indices = @transform_9, window_bounds = array<i64: 32, 32>}, {pipeline_mode = #tpu.pipeline_mode<synchronous>, transform_indices = @transform_10, window_bounds = array<i64: 1, 32>}, {pipeline_mode = #tpu.pipeline_mode<synchronous>, transform_indices = @transform_11, window_bounds = array<i64: 32, 32>}, {pipeline_mode = #tpu.pipeline_mode<synchronous>, transform_indices = @transform_12, window_bounds = array<i64: 1, 32>}, {pipeline_mode = #tpu.pipeline_mode<synchronous>, transform_indices = @transform_13, window_bounds = array<i64: 32, 32>}, {pipeline_mode = #tpu.pipeline_mode<synchronous>, transform_indices = @transform_14, window_bounds = array<i64: 1, 32>}, {pipeline_mode = #tpu.pipeline_mode<synchronous>, transform_indices = @transform_15, window_bounds = array<i64: 32, 32>}, {pipeline_mode = #tpu.pipeline_mode<synchronous>, transform_indices = @transform_16, window_bounds = array<i64: 32, 32>}, {pipeline_mode = #tpu.pipeline_mode<synchronous>, transform_indices = @transform_17, window_bounds = array<i64: 1, 32>}, {pipeline_mode = #tpu.pipeline_mode<synchronous>, transform_indices = @transform_18, window_bounds = array<i64: 32, 32>}, {pipeline_mode = #tpu.pipeline_mode<synchronous>, transform_indices = @transform_19, window_bounds = array<i64: 1, 32>}, {pipeline_mode = #tpu.pipeline_mode<synchronous>, transform_indices = @transform_20, window_bounds = array<i64: 32, 32>}, {pipeline_mode = #tpu.pipeline_mode<synchronous>, transform_indices = @transform_21, window_bounds = array<i64: 1, 32>}, {pipeline_mode = #tpu.pipeline_mode<synchronous>, transform_indices = @transform_22, window_bounds = array<i64: 32, 64>}, {pipeline_mode = #tpu.pipeline_mode<synchronous>, transform_indices = @transform_23, window_bounds = array<i64: 1, 64>}, {transform_indices = @transform_24, window_bounds = array<i64: 2, 64>}]} {
    %c0 = arith.constant 0 : index
    %c0_0 = arith.constant 0 : index
    %0 = vector.load %arg1[%c0, %c0_0] : memref<256x4xf32, #tpu.memory_space<vmem>>, vector<256x4xf32>
    %c0_1 = arith.constant 0 : index
    %c0_2 = arith.constant 0 : index
    %1 = vector.load %arg2[%c0_1, %c0_2] : memref<256x1xf32, #tpu.memory_space<vmem>>, vector<256x1xf32>
    %c0_3 = arith.constant 0 : index
    %c0_4 = arith.constant 0 : index
    %2 = vector.load %arg3[%c0_3, %c0_4] : memref<4x32xf32, #tpu.memory_space<vmem>>, vector<4x32xf32>
    %3 = vector.extract_strided_slice %0 {offsets = [0, 0], sizes = [256, 1], strides = [1, 1]} : vector<256x4xf32> to vector<256x1xf32>
    %4 = vector.extract_strided_slice %2 {offsets = [0, 0], sizes = [1, 32], strides = [1, 1]} : vector<4x32xf32> to vector<1x32xf32>
    %5 = vector.broadcast %3 : vector<256x1xf32> to vector<256x32xf32>
    %6 = vector.broadcast %4 : vector<1x32xf32> to vector<256x32xf32>
    %7 = arith.mulf %5, %6 : vector<256x32xf32>
    %8 = vector.extract_strided_slice %0 {offsets = [0, 1], sizes = [256, 1], strides = [1, 1]} : vector<256x4xf32> to vector<256x1xf32>
    %9 = vector.extract_strided_slice %2 {offsets = [1, 0], sizes = [1, 32], strides = [1, 1]} : vector<4x32xf32> to vector<1x32xf32>
    %10 = vector.broadcast %8 : vector<256x1xf32> to vector<256x32xf32>
    %11 = vector.broadcast %9 : vector<1x32xf32> to vector<256x32xf32>
    %12 = arith.mulf %10, %11 : vector<256x32xf32>
    %13 = arith.addf %7, %12 : vector<256x32xf32>
    %14 = vector.extract_strided_slice %0 {offsets = [0, 2], sizes = [256, 1], strides = [1, 1]} : vector<256x4xf32> to vector<256x1xf32>
    %15 = vector.extract_strided_slice %2 {offsets = [2, 0], sizes = [1, 32], strides = [1, 1]} : vector<4x32xf32> to vector<1x32xf32>
    %16 = vector.broadcast %14 : vector<256x1xf32> to vector<256x32xf32>
    %17 = vector.broadcast %15 : vector<1x32xf32> to vector<256x32xf32>
    %18 = arith.mulf %16, %17 : vector<256x32xf32>
    %19 = arith.addf %13, %18 : vector<256x32xf32>
    %20 = vector.extract_strided_slice %0 {offsets = [0, 3], sizes = [256, 1], strides = [1, 1]} : vector<256x4xf32> to vector<256x1xf32>
    %21 = vector.extract_strided_slice %2 {offsets = [3, 0], sizes = [1, 32], strides = [1, 1]} : vector<4x32xf32> to vector<1x32xf32>
    %22 = vector.broadcast %20 : vector<256x1xf32> to vector<256x32xf32>
    %23 = vector.broadcast %21 : vector<1x32xf32> to vector<256x32xf32>
    %24 = arith.mulf %22, %23 : vector<256x32xf32>
    %25 = arith.addf %19, %24 : vector<256x32xf32>
    %c0_5 = arith.constant 0 : index
    %c0_6 = arith.constant 0 : index
    %26 = vector.load %arg4[%c0_5, %c0_6] : memref<1x32xf32, #tpu.memory_space<vmem>>, vector<1x32xf32>
    %27 = vector.broadcast %26 : vector<1x32xf32> to vector<256x32xf32>
    %28 = arith.addf %25, %27 : vector<256x32xf32>
    %cst = arith.constant 0.000000e+00 : f32
    %29 = vector.broadcast %cst : f32 to vector<256x32xf32>
    %30 = arith.maximumf %28, %29 : vector<256x32xf32>
    %c0_7 = arith.constant 0 : index
    %c0_8 = arith.constant 0 : index
    %31 = vector.load %arg5[%c0_7, %c0_8] : memref<32x32xf32, #tpu.memory_space<vmem>>, vector<32x32xf32>
    %cst_9 = arith.constant dense<0.000000e+00> : vector<256x32xf32>
    %32 = tpu.matmul %30, %31, %cst_9 {dimension_numbers = #tpu.dot_dimension_numbers<[1], [0], [0], [1], [0, 0, 1, 1], [], []>} : vector<256x32xf32>, vector<32x32xf32>, vector<256x32xf32> -> vector<256x32xf32>
    %c0_10 = arith.constant 0 : index
    %c0_11 = arith.constant 0 : index
    %33 = vector.load %arg6[%c0_10, %c0_11] : memref<1x32xf32, #tpu.memory_space<vmem>>, vector<1x32xf32>
    %34 = vector.broadcast %33 : vector<1x32xf32> to vector<256x32xf32>
    %35 = arith.addf %32, %34 : vector<256x32xf32>
    %cst_12 = arith.constant 0.000000e+00 : f32
    %36 = vector.broadcast %cst_12 : f32 to vector<256x32xf32>
    %37 = arith.maximumf %35, %36 : vector<256x32xf32>
    %38 = vector.broadcast %1 : vector<256x1xf32> to vector<256x32xf32>
    %39 = arith.mulf %37, %38 : vector<256x32xf32>
    %40 = vector.shape_cast %39 : vector<256x32xf32> to vector<16x16x32xf32>
    %cst_13 = arith.constant dense<0xFF800000> : vector<16x32xf32>
    %41 = vector.multi_reduction <maximumf>, %40, %cst_13 [1] : vector<16x16x32xf32> to vector<16x32xf32>
    %c0_14 = arith.constant 0 : index
    %c0_15 = arith.constant 0 : index
    %42 = vector.load %arg8[%c0_14, %c0_15] : memref<32x32xf32, #tpu.memory_space<vmem>>, vector<32x32xf32>
    %cst_16 = arith.constant dense<0.000000e+00> : vector<16x32xf32>
    %43 = tpu.matmul %41, %42, %cst_16 {dimension_numbers = #tpu.dot_dimension_numbers<[1], [0], [0], [1], [0, 0, 1, 1], [], []>} : vector<16x32xf32>, vector<32x32xf32>, vector<16x32xf32> -> vector<16x32xf32>
    %c0_17 = arith.constant 0 : index
    %c0_18 = arith.constant 0 : index
    %44 = vector.load %arg7[%c0_17, %c0_18] : memref<32x32xf32, #tpu.memory_space<vmem>>, vector<32x32xf32>
    %cst_19 = arith.constant dense<0.000000e+00> : vector<256x32xf32>
    %45 = tpu.matmul %39, %44, %cst_19 {dimension_numbers = #tpu.dot_dimension_numbers<[1], [0], [0], [1], [0, 0, 1, 1], [], []>} : vector<256x32xf32>, vector<32x32xf32>, vector<256x32xf32> -> vector<256x32xf32>
    %46 = vector.shape_cast %45 : vector<256x32xf32> to vector<16x16x32xf32>
    %47 = vector.shape_cast %43 : vector<16x32xf32> to vector<16x1x32xf32>
    %48 = vector.broadcast %47 : vector<16x1x32xf32> to vector<16x16x32xf32>
    %49 = arith.addf %46, %48 : vector<16x16x32xf32>
    %c0_20 = arith.constant 0 : index
    %c0_21 = arith.constant 0 : index
    %50 = vector.load %arg9[%c0_20, %c0_21] : memref<1x32xf32, #tpu.memory_space<vmem>>, vector<1x32xf32>
    %51 = vector.shape_cast %50 : vector<1x32xf32> to vector<1x1x32xf32>
    %52 = vector.broadcast %51 : vector<1x1x32xf32> to vector<16x16x32xf32>
    %53 = arith.addf %49, %52 : vector<16x16x32xf32>
    %cst_22 = arith.constant 0.000000e+00 : f32
    %54 = vector.broadcast %cst_22 : f32 to vector<16x16x32xf32>
    %55 = arith.maximumf %53, %54 : vector<16x16x32xf32>
    %56 = vector.shape_cast %55 : vector<16x16x32xf32> to vector<256x32xf32>
    %c0_23 = arith.constant 0 : index
    %c0_24 = arith.constant 0 : index
    %57 = vector.load %arg10[%c0_23, %c0_24] : memref<32x32xf32, #tpu.memory_space<vmem>>, vector<32x32xf32>
    %cst_25 = arith.constant dense<0.000000e+00> : vector<256x32xf32>
    %58 = tpu.matmul %56, %57, %cst_25 {dimension_numbers = #tpu.dot_dimension_numbers<[1], [0], [0], [1], [0, 0, 1, 1], [], []>} : vector<256x32xf32>, vector<32x32xf32>, vector<256x32xf32> -> vector<256x32xf32>
    %c0_26 = arith.constant 0 : index
    %c0_27 = arith.constant 0 : index
    %59 = vector.load %arg11[%c0_26, %c0_27] : memref<1x32xf32, #tpu.memory_space<vmem>>, vector<1x32xf32>
    %60 = vector.broadcast %59 : vector<1x32xf32> to vector<256x32xf32>
    %61 = arith.addf %58, %60 : vector<256x32xf32>
    %cst_28 = arith.constant 0.000000e+00 : f32
    %62 = vector.broadcast %cst_28 : f32 to vector<256x32xf32>
    %63 = arith.maximumf %61, %62 : vector<256x32xf32>
    %64 = vector.broadcast %1 : vector<256x1xf32> to vector<256x32xf32>
    %65 = arith.mulf %63, %64 : vector<256x32xf32>
    %66 = vector.shape_cast %65 : vector<256x32xf32> to vector<16x16x32xf32>
    %cst_29 = arith.constant dense<0xFF800000> : vector<16x32xf32>
    %67 = vector.multi_reduction <maximumf>, %66, %cst_29 [1] : vector<16x16x32xf32> to vector<16x32xf32>
    %68 = vector.shape_cast %1 : vector<256x1xf32> to vector<16x16x1xf32>
    %cst_30 = arith.constant dense<0xFF800000> : vector<16x1xf32>
    %69 = vector.multi_reduction <maximumf>, %68, %cst_30 [1] : vector<16x16x1xf32> to vector<16x1xf32>
    %c0_31 = arith.constant 0 : index
    %c0_32 = arith.constant 0 : index
    %70 = vector.load %arg12[%c0_31, %c0_32] : memref<32x32xf32, #tpu.memory_space<vmem>>, vector<32x32xf32>
    %cst_33 = arith.constant dense<0.000000e+00> : vector<16x32xf32>
    %71 = tpu.matmul %67, %70, %cst_33 {dimension_numbers = #tpu.dot_dimension_numbers<[1], [0], [0], [1], [0, 0, 1, 1], [], []>} : vector<16x32xf32>, vector<32x32xf32>, vector<16x32xf32> -> vector<16x32xf32>
    %c0_34 = arith.constant 0 : index
    %c0_35 = arith.constant 0 : index
    %72 = vector.load %arg13[%c0_34, %c0_35] : memref<1x32xf32, #tpu.memory_space<vmem>>, vector<1x32xf32>
    %73 = vector.broadcast %72 : vector<1x32xf32> to vector<16x32xf32>
    %74 = arith.addf %71, %73 : vector<16x32xf32>
    %cst_36 = arith.constant 0.000000e+00 : f32
    %75 = vector.broadcast %cst_36 : f32 to vector<16x32xf32>
    %76 = arith.maximumf %74, %75 : vector<16x32xf32>
    %c0_37 = arith.constant 0 : index
    %c0_38 = arith.constant 0 : index
    %77 = vector.load %arg14[%c0_37, %c0_38] : memref<32x32xf32, #tpu.memory_space<vmem>>, vector<32x32xf32>
    %cst_39 = arith.constant dense<0.000000e+00> : vector<16x32xf32>
    %78 = tpu.matmul %76, %77, %cst_39 {dimension_numbers = #tpu.dot_dimension_numbers<[1], [0], [0], [1], [0, 0, 1, 1], [], []>} : vector<16x32xf32>, vector<32x32xf32>, vector<16x32xf32> -> vector<16x32xf32>
    %c0_40 = arith.constant 0 : index
    %c0_41 = arith.constant 0 : index
    %79 = vector.load %arg15[%c0_40, %c0_41] : memref<1x32xf32, #tpu.memory_space<vmem>>, vector<1x32xf32>
    %80 = vector.broadcast %79 : vector<1x32xf32> to vector<16x32xf32>
    %81 = arith.addf %78, %80 : vector<16x32xf32>
    %cst_42 = arith.constant 0.000000e+00 : f32
    %82 = vector.broadcast %cst_42 : f32 to vector<16x32xf32>
    %83 = arith.maximumf %81, %82 : vector<16x32xf32>
    %84 = vector.broadcast %69 : vector<16x1xf32> to vector<16x32xf32>
    %85 = arith.mulf %83, %84 : vector<16x32xf32>
    %86 = vector.shape_cast %85 : vector<16x32xf32> to vector<2x8x32xf32>
    %cst_43 = arith.constant dense<0xFF800000> : vector<2x32xf32>
    %87 = vector.multi_reduction <maximumf>, %86, %cst_43 [1] : vector<2x8x32xf32> to vector<2x32xf32>
    %c0_44 = arith.constant 0 : index
    %c0_45 = arith.constant 0 : index
    %88 = vector.load %arg17[%c0_44, %c0_45] : memref<32x32xf32, #tpu.memory_space<vmem>>, vector<32x32xf32>
    %cst_46 = arith.constant dense<0.000000e+00> : vector<2x32xf32>
    %89 = tpu.matmul %87, %88, %cst_46 {dimension_numbers = #tpu.dot_dimension_numbers<[1], [0], [0], [1], [0, 0, 1, 1], [], []>} : vector<2x32xf32>, vector<32x32xf32>, vector<2x32xf32> -> vector<2x32xf32>
    %c0_47 = arith.constant 0 : index
    %c0_48 = arith.constant 0 : index
    %90 = vector.load %arg16[%c0_47, %c0_48] : memref<32x32xf32, #tpu.memory_space<vmem>>, vector<32x32xf32>
    %cst_49 = arith.constant dense<0.000000e+00> : vector<16x32xf32>
    %91 = tpu.matmul %85, %90, %cst_49 {dimension_numbers = #tpu.dot_dimension_numbers<[1], [0], [0], [1], [0, 0, 1, 1], [], []>} : vector<16x32xf32>, vector<32x32xf32>, vector<16x32xf32> -> vector<16x32xf32>
    %92 = vector.shape_cast %91 : vector<16x32xf32> to vector<2x8x32xf32>
    %93 = vector.shape_cast %89 : vector<2x32xf32> to vector<2x1x32xf32>
    %94 = vector.broadcast %93 : vector<2x1x32xf32> to vector<2x8x32xf32>
    %95 = arith.addf %92, %94 : vector<2x8x32xf32>
    %c0_50 = arith.constant 0 : index
    %c0_51 = arith.constant 0 : index
    %96 = vector.load %arg18[%c0_50, %c0_51] : memref<1x32xf32, #tpu.memory_space<vmem>>, vector<1x32xf32>
    %97 = vector.shape_cast %96 : vector<1x32xf32> to vector<1x1x32xf32>
    %98 = vector.broadcast %97 : vector<1x1x32xf32> to vector<2x8x32xf32>
    %99 = arith.addf %95, %98 : vector<2x8x32xf32>
    %cst_52 = arith.constant 0.000000e+00 : f32
    %100 = vector.broadcast %cst_52 : f32 to vector<2x8x32xf32>
    %101 = arith.maximumf %99, %100 : vector<2x8x32xf32>
    %102 = vector.shape_cast %101 : vector<2x8x32xf32> to vector<16x32xf32>
    %c0_53 = arith.constant 0 : index
    %c0_54 = arith.constant 0 : index
    %103 = vector.load %arg19[%c0_53, %c0_54] : memref<32x32xf32, #tpu.memory_space<vmem>>, vector<32x32xf32>
    %cst_55 = arith.constant dense<0.000000e+00> : vector<16x32xf32>
    %104 = tpu.matmul %102, %103, %cst_55 {dimension_numbers = #tpu.dot_dimension_numbers<[1], [0], [0], [1], [0, 0, 1, 1], [], []>} : vector<16x32xf32>, vector<32x32xf32>, vector<16x32xf32> -> vector<16x32xf32>
    %c0_56 = arith.constant 0 : index
    %c0_57 = arith.constant 0 : index
    %105 = vector.load %arg20[%c0_56, %c0_57] : memref<1x32xf32, #tpu.memory_space<vmem>>, vector<1x32xf32>
    %106 = vector.broadcast %105 : vector<1x32xf32> to vector<16x32xf32>
    %107 = arith.addf %104, %106 : vector<16x32xf32>
    %cst_58 = arith.constant 0.000000e+00 : f32
    %108 = vector.broadcast %cst_58 : f32 to vector<16x32xf32>
    %109 = arith.maximumf %107, %108 : vector<16x32xf32>
    %110 = vector.broadcast %69 : vector<16x1xf32> to vector<16x32xf32>
    %111 = arith.mulf %109, %110 : vector<16x32xf32>
    %112 = vector.shape_cast %111 : vector<16x32xf32> to vector<2x8x32xf32>
    %cst_59 = arith.constant dense<0xFF800000> : vector<2x32xf32>
    %113 = vector.multi_reduction <maximumf>, %112, %cst_59 [1] : vector<2x8x32xf32> to vector<2x32xf32>
    %114 = vector.shape_cast %69 : vector<16x1xf32> to vector<2x8x1xf32>
    %cst_60 = arith.constant dense<0xFF800000> : vector<2x1xf32>
    %115 = vector.multi_reduction <maximumf>, %114, %cst_60 [1] : vector<2x8x1xf32> to vector<2x1xf32>
    %cst_61 = arith.constant 0.000000e+00 : f32
    %116 = vector.broadcast %cst_61 : f32 to vector<2x1xf32>
    %117 = arith.cmpf ogt, %115, %116 : vector<2x1xf32>
    %c0_62 = arith.constant 0 : index
    %c0_63 = arith.constant 0 : index
    %118 = vector.load %arg21[%c0_62, %c0_63] : memref<32x32xf32, #tpu.memory_space<vmem>>, vector<32x32xf32>
    %cst_64 = arith.constant dense<0.000000e+00> : vector<2x32xf32>
    %119 = tpu.matmul %113, %118, %cst_64 {dimension_numbers = #tpu.dot_dimension_numbers<[1], [0], [0], [1], [0, 0, 1, 1], [], []>} : vector<2x32xf32>, vector<32x32xf32>, vector<2x32xf32> -> vector<2x32xf32>
    %c0_65 = arith.constant 0 : index
    %c0_66 = arith.constant 0 : index
    %120 = vector.load %arg22[%c0_65, %c0_66] : memref<1x32xf32, #tpu.memory_space<vmem>>, vector<1x32xf32>
    %121 = vector.broadcast %120 : vector<1x32xf32> to vector<2x32xf32>
    %122 = arith.addf %119, %121 : vector<2x32xf32>
    %cst_67 = arith.constant 0.000000e+00 : f32
    %123 = vector.broadcast %cst_67 : f32 to vector<2x32xf32>
    %124 = arith.maximumf %122, %123 : vector<2x32xf32>
    %c0_68 = arith.constant 0 : index
    %c0_69 = arith.constant 0 : index
    %125 = vector.load %arg23[%c0_68, %c0_69] : memref<32x64xf32, #tpu.memory_space<vmem>>, vector<32x64xf32>
    %cst_70 = arith.constant dense<0.000000e+00> : vector<2x64xf32>
    %126 = tpu.matmul %124, %125, %cst_70 {dimension_numbers = #tpu.dot_dimension_numbers<[1], [0], [0], [1], [0, 0, 1, 1], [], []>} : vector<2x32xf32>, vector<32x64xf32>, vector<2x64xf32> -> vector<2x64xf32>
    %c0_71 = arith.constant 0 : index
    %c0_72 = arith.constant 0 : index
    %127 = vector.load %arg24[%c0_71, %c0_72] : memref<1x64xf32, #tpu.memory_space<vmem>>, vector<1x64xf32>
    %128 = vector.broadcast %127 : vector<1x64xf32> to vector<2x64xf32>
    %129 = arith.addf %126, %128 : vector<2x64xf32>
    %cst_73 = arith.constant 0.000000e+00 : f32
    %130 = vector.shape_cast %117 : vector<2x1xi1> to vector<2x1xi1>
    %131 = vector.broadcast %130 : vector<2x1xi1> to vector<2x64xi1>
    %132 = vector.broadcast %cst_73 : f32 to vector<2x64xf32>
    %133 = arith.select %131, %129, %132 : vector<2x64xi1>, vector<2x64xf32>
    %c0_74 = arith.constant 0 : index
    %c0_75 = arith.constant 0 : index
    %134 = vector.load %arg25[%c0_74, %c0_75] : memref<2x64xf32, #tpu.memory_space<vmem>>, vector<2x64xf32>
    tpu.vector_store %arg25[%c0_74, %c0_75], %133 {strides = array<i32>} : memref<2x64xf32, #tpu.memory_space<vmem>>, vector<2x64xf32>,
    return
  }
  func.func @transform_0(%arg0: i32) -> (i32, i32) {
    %c0_i32 = arith.constant 0 : i32
    %c0_i32_0 = arith.constant 0 : i32
    return %arg0, %c0_i32 : i32, i32
  }
  func.func @transform_1(%arg0: i32) -> (i32, i32) {
    %c0_i32 = arith.constant 0 : i32
    %c0_i32_0 = arith.constant 0 : i32
    return %arg0, %c0_i32 : i32, i32
  }
  func.func @transform_2(%arg0: i32) -> (i32, i32) {
    %c0_i32 = arith.constant 0 : i32
    %c0_i32_0 = arith.constant 0 : i32
    %c0_i32_1 = arith.constant 0 : i32
    return %c0_i32, %c0_i32_0 : i32, i32
  }
  func.func @transform_3(%arg0: i32) -> (i32, i32) {
    %c0_i32 = arith.constant 0 : i32
    %c0_i32_0 = arith.constant 0 : i32
    %c0_i32_1 = arith.constant 0 : i32
    return %c0_i32, %c0_i32_0 : i32, i32
  }
  func.func @transform_4(%arg0: i32) -> (i32, i32) {
    %c0_i32 = arith.constant 0 : i32
    %c0_i32_0 = arith.constant 0 : i32
    %c0_i32_1 = arith.constant 0 : i32
    return %c0_i32, %c0_i32_0 : i32, i32
  }
  func.func @transform_5(%arg0: i32) -> (i32, i32) {
    %c0_i32 = arith.constant 0 : i32
    %c0_i32_0 = arith.constant 0 : i32
    %c0_i32_1 = arith.constant 0 : i32
    return %c0_i32, %c0_i32_0 : i32, i32
  }
  func.func @transform_6(%arg0: i32) -> (i32, i32) {
    %c0_i32 = arith.constant 0 : i32
    %c0_i32_0 = arith.constant 0 : i32
    %c0_i32_1 = arith.constant 0 : i32
    return %c0_i32, %c0_i32_0 : i32, i32
  }
  func.func @transform_7(%arg0: i32) -> (i32, i32) {
    %c0_i32 = arith.constant 0 : i32
    %c0_i32_0 = arith.constant 0 : i32
    %c0_i32_1 = arith.constant 0 : i32
    return %c0_i32, %c0_i32_0 : i32, i32
  }
  func.func @transform_8(%arg0: i32) -> (i32, i32) {
    %c0_i32 = arith.constant 0 : i32
    %c0_i32_0 = arith.constant 0 : i32
    %c0_i32_1 = arith.constant 0 : i32
    return %c0_i32, %c0_i32_0 : i32, i32
  }
  func.func @transform_9(%arg0: i32) -> (i32, i32) {
    %c0_i32 = arith.constant 0 : i32
    %c0_i32_0 = arith.constant 0 : i32
    %c0_i32_1 = arith.constant 0 : i32
    return %c0_i32, %c0_i32_0 : i32, i32
  }
  func.func @transform_10(%arg0: i32) -> (i32, i32) {
    %c0_i32 = arith.constant 0 : i32
    %c0_i32_0 = arith.constant 0 : i32
    %c0_i32_1 = arith.constant 0 : i32
    return %c0_i32, %c0_i32_0 : i32, i32
  }
  func.func @transform_11(%arg0: i32) -> (i32, i32) {
    %c0_i32 = arith.constant 0 : i32
    %c0_i32_0 = arith.constant 0 : i32
    %c0_i32_1 = arith.constant 0 : i32
    return %c0_i32, %c0_i32_0 : i32, i32
  }
  func.func @transform_12(%arg0: i32) -> (i32, i32) {
    %c0_i32 = arith.constant 0 : i32
    %c0_i32_0 = arith.constant 0 : i32
    %c0_i32_1 = arith.constant 0 : i32
    return %c0_i32, %c0_i32_0 : i32, i32
  }
  func.func @transform_13(%arg0: i32) -> (i32, i32) {
    %c0_i32 = arith.constant 0 : i32
    %c0_i32_0 = arith.constant 0 : i32
    %c0_i32_1 = arith.constant 0 : i32
    return %c0_i32, %c0_i32_0 : i32, i32
  }
  func.func @transform_14(%arg0: i32) -> (i32, i32) {
    %c0_i32 = arith.constant 0 : i32
    %c0_i32_0 = arith.constant 0 : i32
    %c0_i32_1 = arith.constant 0 : i32
    return %c0_i32, %c0_i32_0 : i32, i32
  }
  func.func @transform_15(%arg0: i32) -> (i32, i32) {
    %c0_i32 = arith.constant 0 : i32
    %c0_i32_0 = arith.constant 0 : i32
    %c0_i32_1 = arith.constant 0 : i32
    return %c0_i32, %c0_i32_0 : i32, i32
  }
  func.func @transform_16(%arg0: i32) -> (i32, i32) {
    %c0_i32 = arith.constant 0 : i32
    %c0_i32_0 = arith.constant 0 : i32
    %c0_i32_1 = arith.constant 0 : i32
    return %c0_i32, %c0_i32_0 : i32, i32
  }
  func.func @transform_17(%arg0: i32) -> (i32, i32) {
    %c0_i32 = arith.constant 0 : i32
    %c0_i32_0 = arith.constant 0 : i32
    %c0_i32_1 = arith.constant 0 : i32
    return %c0_i32, %c0_i32_0 : i32, i32
  }
  func.func @transform_18(%arg0: i32) -> (i32, i32) {
    %c0_i32 = arith.constant 0 : i32
    %c0_i32_0 = arith.constant 0 : i32
    %c0_i32_1 = arith.constant 0 : i32
    return %c0_i32, %c0_i32_0 : i32, i32
  }
  func.func @transform_19(%arg0: i32) -> (i32, i32) {
    %c0_i32 = arith.constant 0 : i32
    %c0_i32_0 = arith.constant 0 : i32
    %c0_i32_1 = arith.constant 0 : i32
    return %c0_i32, %c0_i32_0 : i32, i32
  }
  func.func @transform_20(%arg0: i32) -> (i32, i32) {
    %c0_i32 = arith.constant 0 : i32
    %c0_i32_0 = arith.constant 0 : i32
    %c0_i32_1 = arith.constant 0 : i32
    return %c0_i32, %c0_i32_0 : i32, i32
  }
  func.func @transform_21(%arg0: i32) -> (i32, i32) {
    %c0_i32 = arith.constant 0 : i32
    %c0_i32_0 = arith.constant 0 : i32
    %c0_i32_1 = arith.constant 0 : i32
    return %c0_i32, %c0_i32_0 : i32, i32
  }
  func.func @transform_22(%arg0: i32) -> (i32, i32) {
    %c0_i32 = arith.constant 0 : i32
    %c0_i32_0 = arith.constant 0 : i32
    %c0_i32_1 = arith.constant 0 : i32
    return %c0_i32, %c0_i32_0 : i32, i32
  }
  func.func @transform_23(%arg0: i32) -> (i32, i32) {
    %c0_i32 = arith.constant 0 : i32
    %c0_i32_0 = arith.constant 0 : i32
    %c0_i32_1 = arith.constant 0 : i32
    return %c0_i32, %c0_i32_0 : i32, i32
  }
  func.func @transform_24(%arg0: i32) -> (i32, i32) {
    %c0_i32 = arith.constant 0 : i32
    %c0_i32_0 = arith.constant 0 : i32
    return %arg0, %c0_i32 : i32, i32
  }
}

</mosaic_0001>

<bundles_post_ra>
// kernel: tpu_custom_call.1
= control target key start
LH: loop header
LB: loop body
LE: loop exit
PB: predicated region body
PF: predicated region fallthrough
CT: control target
= control target key end

     0   :  { %s6778_s0 = inlined_call_operand.vmem [shape: f32[256,4], index: 0, kind: input, shape index: {}]   ;;  %s6779_s1 = inlined_call_operand.vmem [shape: f32[256,1], index: 1, kind: input, shape index: {}]   ;;  %s6780_s2 = inlined_call_operand.vmem [shape: f32[4,32], index: 2, kind: input, shape index: {}]   ;;  %s6781_s3 = inlined_call_operand.vmem [shape: f32[1,32], index: 3, kind: input, shape index: {}]   ;;  %s6782_s4 = inlined_call_operand.vmem [shape: f32[32,32], index: 4, kind: input, shape index: {}]   ;;  %s6783_s5 = inlined_call_operand.vmem [shape: f32[1,32], index: 5, kind: input, shape index: {}]   ;;  %s6784_s6 = inlined_call_operand.vmem [shape: f32[32,32], index: 6, kind: input, shape index: {}]   ;;  %s6785_s7 = inlined_call_operand.vmem [shape: f32[32,32], index: 7, kind: input, shape index: {}]   ;;  %s6786_s8 = inlined_call_operand.vmem [shape: f32[1,32], index: 8, kind: input, shape index: {}]   ;;  %s6787_s9 = inlined_call_operand.vmem [shape: f32[32,32], index: 9, kind: input, shape index: {}]   ;;  %s6788_s10 = inlined_call_operand.vmem [shape: f32[1,32], index: 10, kind: input, shape index: {}]   ;;  %s6789_s11 = inlined_call_operand.vmem [shape: f32[32,32], index: 11, kind: input, shape index: {}]   ;;  %s6790_s12 = inlined_call_operand.vmem [shape: f32[1,32], index: 12, kind: input, shape index: {}]   ;;  %s6791_s13 = inlined_call_operand.vmem [shape: f32[32,32], index: 13, kind: input, shape index: {}]   ;;  %s6792_s14 = inlined_call_operand.vmem [shape: f32[1,32], index: 14, kind: input, shape index: {}]   ;;  %s6793_s15 = inlined_call_operand.vmem [shape: f32[32,32], index: 15, kind: input, shape index: {}]   ;;  %s6794_s16 = inlined_call_operand.vmem [shape: f32[32,32], index: 16, kind: input, shape index: {}]   ;;  %s6795_s17 = inlined_call_operand.vmem [shape: f32[1,32], index: 17, kind: input, shape index: {}]   ;;  %s6796_s18 = inlined_call_operand.vmem [shape: f32[32,32], index: 18, kind: input, shape index: {}]   ;;  %s6797_s19 = inlined_call_operand.vmem [shape: f32[1,32], index: 19, kind: input, shape index: {}]   ;;  %s6798_s20 = inlined_call_operand.vmem [shape: f32[32,32], index: 20, kind: input, shape index: {}]   ;;  %s6799_s21 = inlined_call_operand.vmem [shape: f32[1,32], index: 21, kind: input, shape index: {}]   ;;  %s6800_s22 = inlined_call_operand.vmem [shape: f32[32,64], index: 22, kind: input, shape index: {}]   ;;  %s6801_s23 = inlined_call_operand.vmem [shape: f32[1,64], index: 23, kind: input, shape index: {}]   ;;  %s6802_s24 = inlined_call_operand.hbm [shape: f32[2,64], index: 24, kind: output, shape index: {}]  }
   0x1   :  { %6866 = sst [smem:[#allocation36_spill]] %s6778_s0 }
   0x2   :  { %6867 = sst [smem:[#allocation37_spill]] %s6779_s1 }
   0x3   :  { %6868 = sst [smem:[#allocation38_spill]] %s6780_s2 }
   0x4   :  { %6869 = sst [smem:[#allocation39_spill]] %s6781_s3 }
   0x5   :  { %6870 = sst [smem:[#allocation40_spill]] %s6782_s4 }
   0x6   :  { %6871 = sst [smem:[#allocation41_spill]] %s6783_s5 }
   0x7   :  { %6872 = sst [smem:[#allocation42_spill]] %s6784_s6 }
   0x8   :  { %6873 = sst [smem:[#allocation43_spill]] %s6785_s7 }
   0x9   :  { %6874 = sst [smem:[#allocation44_spill]] %s6786_s8 }
   0xa   :  { %s6875_s27 = sld [smem:[#allocation36_spill]]  ;;  %v6812_v2 = vmov 0   ;;  %v6817_v3 = vmov 1  }
   0xb   :  { %4605 = vset.pattern.permute.xlu1 %v6812_v2  ;;  %4603 = vset.pattern.permute.xlu0 %v6812_v2 }
  0x10   :  { %v4850_v0 = vld [vmem:[%s6875_s27 + $0x8] sm:$0xff]  ;;  %v78_v1 = vld [vmem:[%s6875_s27] sm:$0xff] }
  0x11   :  { %150 = vperm.xlu1 %4605, %v4850_v0   ;;  %145 = vperm.xlu0 %4603, %v78_v1  }
  0x15   :  { %4606 = vset.pattern.permute.xlu1 %v6817_v3  ;;  %4604 = vset.pattern.permute.xlu0 %v6817_v3 }
  0x16   :  { %344 = vperm.xlu1 %4606, %v4850_v0   ;;  %340 = vperm.xlu0 %4604, %v78_v1  }
  0x17   :  { %29 = vsyncpa [#allocation3], 0  ;;  %v6810_v4 = vmov 2   ;;  %v6809_v5 = vmov 3   ;;  %v80_v6 = vld [vmem:[%s6875_s27 + $0x10] sm:$0xff]  ;;  %v4872_v7 = vld [vmem:[%s6875_s27 + $0x18] sm:$0xff]  ;;  %v303_v32 = vlaneseq }
  0x18   :  { %v82_v8 = vld [vmem:[%s6875_s27 + $0x20] sm:$0xff]  ;;  %v4883_v9 = vld [vmem:[%s6875_s27 + $0x28] sm:$0xff]  ;;  %v84_v10 = vld [vmem:[%s6875_s27 + $0x30] sm:$0xff]  ;;  %s6880_s0 = sld [smem:[#allocation38_spill]]  ;;  %s6881_s3 = sld [smem:[#allocation40_spill]]  ;;  %vm1009_vm0 = vcmask 261120  }
  0x19   :  { %v4895_v11 = vld [vmem:[%s6875_s27 + $0x38] sm:$0xff]  ;;  %v86_v12 = vld [vmem:[%s6875_s27 + $0x40] sm:$0xff]  ;;  %v4905_v13 = vld [vmem:[%s6875_s27 + $0x48] sm:$0xff]  ;;  %v5046_v34 = vshrl.u32 %v303_v32, 7  ;;  %s6882_s2 = sld [smem:[#allocation39_spill]]  ;;  %vm2967_vm1 = vcmask 7168  }
  0x1a   :  { %4607 = vset.pattern.permute.xlu1 %v6810_v4  ;;  %4610 = vset.pattern.permute.xlu0 %v6809_v5  ;;  %v4912_v14 = vld [vmem:[%s6875_s27 + $0x50] sm:$0xff]  ;;  %v4920_v15 = vld [vmem:[%s6875_s27 + $0x58] sm:$0xff]  ;;  %v4928_v16 = vld [vmem:[%s6875_s27 + $0x60] sm:$0xff]  ;;  %s6955_s1 = sld [smem:[#allocation41_spill]]  ;;  %vm1719_vm4 = vcmask 1041409   ;;  %vm1721_vm5 = vcmask 1042434  }
  0x1b   :  { %536 = vperm.xlu1 %4607, %v78_v1   ;;  %732 = vperm.xlu0 %4610, %v78_v1   ;;  %v4935_v17 = vld [vmem:[%s6875_s27 + $0x68] sm:$0xff]  ;;  %v4941_v18 = vld [vmem:[%s6875_s27 + $0x70] sm:$0xff]  ;;  %v4948_v19 = vld [vmem:[%s6875_s27 + $0x78] sm:$0xff]  ;;  %6877 = vst [vmem:[#allocation6_spill] sm:$0xff] %v5046_v34  ;;  %v5057_v36 = vsub.s32 0, %v5046_v34  ;;  %v469_v40 = vsub.s32 1, %v5046_v34 }
  0x1c   :  { %v4955_v20 = vld [vmem:[%s6875_s27 + $0x80] sm:$0xff]  ;;  %v4963_v21 = vld [vmem:[%s6875_s27 + $0x88] sm:$0xff]  ;;  %v4970_v22 = vld [vmem:[%s6875_s27 + $0x90] sm:$0xff]  ;;  %v665_v42 = vsub.s32 2, %v5046_v34  ;;  %v861_v43 = vsub.s32 3, %v5046_v34  ;;  %vm1723_vm6 = vcmask 1043459  }
  0x1d   :  { %v4977_v23 = vld [vmem:[%s6875_s27 + $0x98] sm:$0xff]  ;;  %v4984_v24 = vld [vmem:[%s6875_s27 + $0xa0] sm:$0xff]  ;;  %v4991_v25 = vld [vmem:[%s6875_s27 + $0xa8] sm:$0xff]  ;;  %6879 = vst [vmem:[#allocation8_spill] sm:$0xff] %v5057_v36  ;;  %vm1725_vm7 = vcmask 1044484   ;;  %vm1727_vm8 = vcmask 1045509  }
  0x1e   :  { %v4998_v26 = vld [vmem:[%s6875_s27 + $0xb0] sm:$0xff]  ;;  %v5005_v27 = vld [vmem:[%s6875_s27 + $0xb8] sm:$0xff]  ;;  %v5012_v28 = vld [vmem:[%s6875_s27 + $0xc0] sm:$0xff]  ;;  %vm1729_vm9 = vcmask 1046534   ;;  %vm1731_vm10 = vcmask 1047559   ;;  %s6971_s26 = sld [smem:[#allocation43_spill]] }
  0x1f   :  { %4608 = vset.pattern.permute.xlu1 %v6812_v2  ;;  %736 = vperm.xlu0 %4610, %v4850_v0   ;;  %v5020_v29 = vld [vmem:[%s6875_s27 + $0xc8] sm:$0xff]  ;;  %v5027_v30 = vld [vmem:[%s6875_s27 + $0xd0] sm:$0xff]  ;;  %v5035_v31 = vld [vmem:[%s6875_s27 + $0xd8] sm:$0xff]  ;;  %s6972_s8 = sld [smem:[#allocation42_spill]]  ;;  %vm4719_vm11 = vmmov 0   ;;  %vm3968_vm14 = vcmask 517120  }
  0x20   :  { %155 = vperm.xlu1 %4608, %v80_v6   ;;  %v5042_v33 = vld [vmem:[%s6875_s27 + $0xe0] sm:$0xff]  ;;  %v5051_v35 = vld [vmem:[%s6875_s27 + $0xe8] sm:$0xff]  ;;  %v1000_v54 = vld [vmem:[%s6881_s3 + $0x10] sm:$0xff] }
  0x21   :  { %6876 = vst [vmem:[#allocation5_spill] sm:$0xff] %v5042_v33  ;;  %6878 = vst [vmem:[#allocation7_spill] sm:$0xff] %v5051_v35  ;;  %v142_v37 = vld [vmem:[%s6880_s0] sm:$0xf]  ;;  %v999_v45 = vld [vmem:[%s6881_s3 + $0x8] sm:$0xff] }
  0x22   :  { %v5067_v41 = vrot.slane %v142_v37, %v5057_v36  ;;  %v998_v44 = vld [vmem:[%s6881_s3] sm:$0xff]  ;;  %v5080_v46 = vrot.slane %v142_v37, %v469_v40  ;;  %v5087_v52 = vrot.slane %v142_v37, %v665_v42  ;;  %v5089_v53 = vrot.slane %v142_v37, %v861_v43  ;;  %v1001_v55 = vld [vmem:[%s6881_s3 + $0x18] sm:$0xff]  ;;  %s6887_s3 = sld [smem:[#allocation37_spill]] }
  0x23   :  { %740 = vperm.xlu0 %4610, %v80_v6   ;;  %v4512_v47 = vpack.c.bf16 %v999_v45, %v998_v44  ;;  %v4516_v56 = vpack.c.bf16 %v1001_v55, %v1000_v54  ;;  %v6894_v36 = vmov 0  }
  0x24   :  { %4609 = vset.pattern.permute.xlu1 %v6817_v3 }
  0x25   :  { %348 = vperm.xlu1 %4609, %v80_v6   ;;  %4513 = vmatprep.subr.bf16.mxu0 %v4512_v47 }
  0x26   :  { %4515 = vmatpush3.bf16.msra.mxu0 %v4512_v47 }
  0x27   :  { %744 = vperm.xlu0 %4610, %v4872_v7   ;;  %4517 = vmatprep.subr.bf16.mxu0 %v4516_v56 }
  0x28   :  { %v5249_v5 = vld [vmem:[%s6887_s3 + $0x28] sm:$0xff] }
  0x29   :  { %4611 = vset.pattern.permute.xlu1 %v6812_v2  ;;  %6892 = vst [vmem:[#allocation17_spill] sm:$0xff] %v5249_v5  ;;  %v5260_v34 = vld [vmem:[%s6887_s3 + $0x88] sm:$0xff] }
  0x2a   :  { %160 = vperm.xlu1 %4611, %v4872_v7   ;;  %4519 = vmatpush3.bf16.msra.mxu0 %v4516_v56  ;;  %6895 = vst [vmem:[#allocation19_spill] sm:$0xff] %v5260_v34 }
  0x2b   :  { %748 = vperm.xlu0 %4610, %v82_v8  }
  0x2e   :  { %4612 = vset.pattern.permute.xlu1 %v6817_v3 }
  0x2f   :  { %352 = vperm.xlu1 %4612, %v4872_v7   ;;  %752 = vperm.xlu0 %4610, %v4883_v9  }
  0x33   :  { %4613 = vset.pattern.permute.xlu1 %v6810_v4  ;;  %756 = vperm.xlu0 %4610, %v84_v10  }
  0x34   :  { %544 = vperm.xlu1 %4613, %v80_v6  }
  0x37   :  { %760 = vperm.xlu0 %4610, %v4895_v11  }
  0x38   :  { %4614 = vset.pattern.permute.xlu1 %v6812_v2 }
  0x39   :  { %165 = vperm.xlu1 %4614, %v82_v8  }
  0x3b   :  { %764 = vperm.xlu0 %4610, %v86_v12  }
  0x3d   :  { %4615 = vset.pattern.permute.xlu1 %v6817_v3 }
  0x3e   :  { %356 = vperm.xlu1 %4615, %v82_v8  }
  0x3f   :  { %768 = vperm.xlu0 %4610, %v4905_v13  }
  0x42   :  { %4616 = vset.pattern.permute.xlu1 %v6812_v2 }
  0x43   :  { %170 = vperm.xlu1 %4616, %v4883_v9   ;;  %772 = vperm.xlu0 %4610, %v4912_v14  }
  0x47   :  { %4617 = vset.pattern.permute.xlu1 %v6817_v3  ;;  %776 = vperm.xlu0 %4610, %v4920_v15  }
  0x48   :  { %360 = vperm.xlu1 %4617, %v4883_v9  }
  0x4b   :  { %780 = vperm.xlu0 %4610, %v4928_v16  }
  0x4c   :  { %4618 = vset.pattern.permute.xlu1 %v6810_v4 }
  0x4d   :  { %552 = vperm.xlu1 %4618, %v82_v8  }
  0x4f   :  { %784 = vperm.xlu0 %4610, %v4935_v17  }
  0x51   :  { %4619 = vset.pattern.permute.xlu1 %v6812_v2 }
  0x52   :  { %175 = vperm.xlu1 %4619, %v84_v10  }
  0x53   :  { %788 = vperm.xlu0 %4610, %v4941_v18  }
  0x56   :  { %4620 = vset.pattern.permute.xlu1 %v6817_v3 }
  0x57   :  { %364 = vperm.xlu1 %4620, %v84_v10   ;;  %792 = vperm.xlu0 %4610, %v4948_v19  }
  0x5b   :  { %4621 = vset.pattern.permute.xlu1 %v6812_v2  ;;  %796 = vperm.xlu0 %4610, %v4955_v20  }
  0x5c   :  { %180 = vperm.xlu1 %4621, %v4895_v11  }
  0x5f   :  { %800 = vperm.xlu0 %4610, %v4963_v21  }
  0x60   :  { %4622 = vset.pattern.permute.xlu1 %v6817_v3 }
  0x61   :  { %368 = vperm.xlu1 %4622, %v4895_v11  }
  0x63   :  { %804 = vperm.xlu0 %4610, %v4970_v22  }
  0x65   :  { %4623 = vset.pattern.permute.xlu1 %v6810_v4 }
  0x66   :  { %560 = vperm.xlu1 %4623, %v84_v10  }
  0x67   :  { %808 = vperm.xlu0 %4610, %v4977_v23  }
  0x6a   :  { %4624 = vset.pattern.permute.xlu1 %v6812_v2 }
  0x6b   :  { %185 = vperm.xlu1 %4624, %v86_v12   ;;  %812 = vperm.xlu0 %4610, %v4984_v24  }
  0x6f   :  { %4625 = vset.pattern.permute.xlu1 %v6817_v3  ;;  %816 = vperm.xlu0 %4610, %v4991_v25  }
  0x70   :  { %372 = vperm.xlu1 %4625, %v86_v12  }
  0x73   :  { %820 = vperm.xlu0 %4610, %v4998_v26  }
  0x74   :  { %4626 = vset.pattern.permute.xlu1 %v6812_v2 }
  0x75   :  { %190 = vperm.xlu1 %4626, %v4905_v13  }
  0x77   :  { %824 = vperm.xlu0 %4610, %v5005_v27  }
  0x79   :  { %4627 = vset.pattern.permute.xlu1 %v6817_v3 }
  0x7a   :  { %376 = vperm.xlu1 %4627, %v4905_v13  }
  0x7b   :  { %828 = vperm.xlu0 %4610, %v5012_v28  }
  0x7e   :  { %4628 = vset.pattern.permute.xlu1 %v6810_v4 }
  0x7f   :  { %568 = vperm.xlu1 %4628, %v86_v12   ;;  %832 = vperm.xlu0 %4610, %v5020_v29  }
  0x83   :  { %4629 = vset.pattern.permute.xlu1 %v6812_v2  ;;  %836 = vperm.xlu0 %4610, %v5027_v30  }
  0x84   :  { %195 = vperm.xlu1 %4629, %v4912_v14  }
  0x87   :  { %840 = vperm.xlu0 %4610, %v5035_v31  }
  0x88   :  { %4630 = vset.pattern.permute.xlu1 %v6817_v3 }
  0x89   :  { %380 = vperm.xlu1 %4630, %v4912_v14  }
  0x8b   :  { %844 = vperm.xlu0 %4610, %v5042_v33  }
  0x8d   :  { %4631 = vset.pattern.permute.xlu1 %v6812_v2 }
  0x8e   :  { %200 = vperm.xlu1 %4631, %v4920_v15  }
  0x8f   :  { %848 = vperm.xlu0 %4610, %v5051_v35  }
  0x90   :  { %v5062_v38 = vpop.permute.xlu1 %150  ;;  %v146_v39 = vpop.permute.xlu0 %145 }
  0x91   :  { %v307_v48 = vmul.f32 %v5067_v41, %v146_v39 }
  0x92   :  { %4632 = vset.pattern.permute.xlu1 %v6817_v3 }
  0x93   :  { %384 = vperm.xlu1 %4632, %v4920_v15   ;;  %4683 = vset.pattern.permute.xlu0 %v6810_v4 }
  0x94   :  { %540 = vperm.xlu0 %4683, %v4850_v0   ;;  %v5109_v0 = vld [vmem:[%s6882_s2] ss:$0 sm:$0xff] }
  0x95   :  { %v5083_v49 = vpop.permute.xlu1 %344  ;;  %v341_v50 = vpop.permute.xlu0 %340 }
  0x96   :  { %v471_v51 = vmul.f32 %v5080_v46, %v341_v50 }
  0x97   :  { %4633 = vset.pattern.permute.xlu1 %v6810_v4 }
  0x98   :  { %576 = vperm.xlu1 %4633, %v4912_v14   ;;  %548 = vperm.xlu0 %4683, %v4872_v7   ;;  %v503_v57 = vadd.f32 %v471_v51, %v307_v48 }
  0x9a   :  { %v537_v58 = vpop.permute.xlu1 %536  ;;  %v733_v59 = vpop.permute.xlu0 %732 }
  0x9b   :  { %v667_v60 = vmul.f32 %v5087_v52, %v537_v58  ;;  %v863_v61 = vmul.f32 %v5089_v53, %v733_v59  ;;  %v5208_v58 = vld [vmem:[%s6875_s27 + $0xf8] sm:$0xff] }
  0x9c   :  { %4634 = vset.pattern.permute.xlu1 %v6812_v2  ;;  %556 = vperm.xlu0 %4683, %v4883_v9   ;;  %6884 = vst [vmem:[#allocation10_spill] sm:$0xff] %v5208_v58 }
  0x9d   :  { %v699_v62 = vadd.f32 %v667_v60, %v503_v57  ;;  %205 = vperm.xlu1 %4634, %v4928_v16  }
  0x9e   :  { %v5104_v63 = vpop.permute.xlu0 %736 }
  0x9f   :  { %v895_v1 = vadd.f32 %v863_v61, %v699_v62  ;;  %v5111_v6 = vpop.permute.xlu1 %155 }
  0xa0   :  { %564 = vperm.xlu0 %4683, %v4895_v11  }
  0xa1   :  { %4635 = vset.pattern.permute.xlu1 %v6817_v3  ;;  %v934_v7 = vadd.f32 %v5109_v0, %v895_v1  ;;  %v5227_v1 = vld [vmem:[%s6887_s3] sm:$0xff] }
  0xa2   :  { %388 = vperm.xlu1 %4635, %v4928_v16   ;;  %v5117_v8 = vpop.permute.xlu0 %740  ;;  %6888 = vst [vmem:[#allocation13_spill] sm:$0xff] %v5227_v1 }
  0xa3   :  { %v966_v9 = vmax.f32 %v934_v7, 0.0  ;;  %v5237_v7 = vld [vmem:[%s6887_s3 + $0x18] sm:$0xff] }
  0xa4   :  { %v5119_v10 = vpop.permute.xlu1 %348  ;;  %572 = vperm.xlu0 %4683, %v4905_v13   ;;  %6890 = vst [vmem:[#allocation15_spill] sm:$0xff] %v5237_v7 }
  0xa5   :  { %4264 = vmatprep.mubr.msk.f32.mxu0 %vm1009_vm0, %v966_v9 }
  0xa6   :  { %4636 = vset.pattern.permute.xlu1 %v6812_v2  ;;  %v5124_v12 = vpop.permute.xlu0 %744 }
  0xa7   :  { %210 = vperm.xlu1 %4636, %v4935_v17  }
  0xa8   :  { %580 = vperm.xlu0 %4683, %v4920_v15  }
  0xa9   :  { %v5128_v11 = vpop.permute.xlu1 %160 }
  0xaa   :  { %v5130_v14 = vpop.permute.xlu0 %748 }
  0xab   :  { %4637 = vset.pattern.permute.xlu1 %v6817_v3 }
  0xac   :  { %392 = vperm.xlu1 %4637, %v4935_v17   ;;  %588 = vperm.xlu0 %4683, %v4935_v17  }
  0xae   :  { %v5135_v13 = vpop.permute.xlu1 %352  ;;  %v5137_v32 = vpop.permute.xlu0 %752 }
  0xb0   :  { %4638 = vset.pattern.permute.xlu1 %v6810_v4  ;;  %596 = vperm.xlu0 %4683, %v4948_v19  }
  0xb1   :  { %584 = vperm.xlu1 %4638, %v4928_v16  }
  0xb2   :  { %v5142_v15 = vpop.permute.xlu0 %756 }
  0xb3   :  { %v5144_v37 = vpop.permute.xlu1 %544 }
  0xb4   :  { %604 = vperm.xlu0 %4683, %v4963_v21  }
  0xb5   :  { %4639 = vset.pattern.permute.xlu1 %v6812_v2 }
  0xb6   :  { %215 = vperm.xlu1 %4639, %v4941_v18   ;;  %v5149_v17 = vpop.permute.xlu0 %760 }
  0xb8   :  { %v5151_v39 = vpop.permute.xlu1 %165  ;;  %612 = vperm.xlu0 %4683, %v4977_v23  }
  0xba   :  { %4640 = vset.pattern.permute.xlu1 %v6817_v3  ;;  %v5155_v40 = vpop.permute.xlu0 %764 }
  0xbb   :  { %396 = vperm.xlu1 %4640, %v4941_v18  }
  0xbc   :  { %620 = vperm.xlu0 %4683, %v4991_v25  }
  0xbd   :  { %v5159_v16 = vpop.permute.xlu1 %356 }
  0xbe   :  { %v5161_v42 = vpop.permute.xlu0 %768 }
  0xbf   :  { %4641 = vset.pattern.permute.xlu1 %v6812_v2 }
  0xc0   :  { %220 = vperm.xlu1 %4641, %v4948_v19   ;;  %628 = vperm.xlu0 %4683, %v5005_v27  }
  0xc2   :  { %v5166_v43 = vpop.permute.xlu1 %170  ;;  %v5168_v44 = vpop.permute.xlu0 %772 }
  0xc4   :  { %4642 = vset.pattern.permute.xlu1 %v6817_v3  ;;  %636 = vperm.xlu0 %4683, %v5020_v29  }
  0xc5   :  { %400 = vperm.xlu1 %4642, %v4948_v19  }
  0xc6   :  { %v5173_v45 = vpop.permute.xlu0 %776 }
  0xc7   :  { %v5175_v47 = vpop.permute.xlu1 %360 }
  0xc8   :  { %644 = vperm.xlu0 %4683, %v5035_v31  }
  0xc9   :  { %4643 = vset.pattern.permute.xlu1 %v6810_v4 }
  0xca   :  { %592 = vperm.xlu1 %4643, %v4941_v18   ;;  %v5180_v48 = vpop.permute.xlu0 %780 }
  0xcc   :  { %v5182_v50 = vpop.permute.xlu1 %552  ;;  %652 = vperm.xlu0 %4683, %v5051_v35   ;;  %v669_v35 = vmul.f32 %v5087_v52, %v5144_v37  ;;  %v472_v37 = vmul.f32 %v5080_v46, %v5083_v49 }
  0xce   :  { %4644 = vset.pattern.permute.xlu1 %v6812_v2  ;;  %v5186_v51 = vpop.permute.xlu0 %784 }
  0xcf   :  { %225 = vperm.xlu1 %4644, %v4955_v20  }
  0xd0   :  { %660 = vperm.xlu0 %4683, %v5208_v58   ;;  %v6898_v58 = vmov 1  }
  0xd1   :  { %v5189_v19 = vpop.permute.xlu1 %175 }
  0xd2   :  { %v5191_v54 = vpop.permute.xlu0 %788 }
  0xd3   :  { %4645 = vset.pattern.permute.xlu1 %v6817_v3 }
  0xd4   :  { %404 = vperm.xlu1 %4645, %v4955_v20   ;;  %4686 = vset.pattern.permute.xlu0 %v6812_v2 }
  0xd5   :  { %1365 = vperm.xlu0 %4686, %v5227_v1   ;;  %v6902_v1 = vmov 2  }
  0xd6   :  { %v5195_v18 = vpop.permute.xlu1 %364  ;;  %v5197_v55 = vpop.permute.xlu0 %792 }
  0xd8   :  { %4646 = vset.pattern.permute.xlu1 %v6812_v2 }
  0xd9   :  { %230 = vperm.xlu1 %4646, %v4963_v21   ;;  %1380 = vperm.xlu0 %4686, %v5237_v7  }
  0xda   :  { %v5201_v56 = vpop.permute.xlu0 %796 }
  0xdb   :  { %6883 = vst [vmem:[#allocation9_spill] sm:$0xff] %v5201_v56  ;;  %v5203_v57 = vpop.permute.xlu1 %180 }
  0xdd   :  { %4647 = vset.pattern.permute.xlu1 %v6817_v3  ;;  %1390 = vperm.xlu0 %4686, %v5249_v5  }
  0xde   :  { %408 = vperm.xlu1 %4647, %v4963_v21   ;;  %v5213_v59 = vpop.permute.xlu0 %800 }
  0xdf   :  { %6885 = vst [vmem:[#allocation11_spill] sm:$0xff] %v5213_v59 }
  0xe0   :  { %v5215_v60 = vpop.permute.xlu1 %368 }
  0xe1   :  { %1450 = vperm.xlu0 %4686, %v5260_v34  }
  0xe2   :  { %4648 = vset.pattern.permute.xlu1 %v6810_v4  ;;  %v5219_v61 = vpop.permute.xlu0 %804 }
  0xe3   :  { %6886 = vst [vmem:[#allocation12_spill] sm:$0xff] %v5219_v61  ;;  %600 = vperm.xlu1 %4648, %v4955_v20  }
  0xe5   :  { %v5222_v62 = vpop.permute.xlu1 %560 }
  0xe6   :  { %v5229_v21 = vpop.permute.xlu0 %808 }
  0xe7   :  { %6889 = vst [vmem:[#allocation14_spill] sm:$0xff] %v5229_v21  ;;  %4649 = vset.pattern.permute.xlu1 %v6812_v2  ;;  %v309_v21 = vmul.f32 %v5067_v41, %v5111_v6  ;;  %v865_v6 = vmul.f32 %v5089_v53, %v5117_v8  ;;  %v474_v8 = vmul.f32 %v5080_v46, %v5135_v13 }
  0xe8   :  { %235 = vperm.xlu1 %4649, %v4970_v22  }
  0xea   :  { %v5239_v20 = vpop.permute.xlu1 %185  ;;  %v5241_v9 = vpop.permute.xlu0 %812 }
  0xeb   :  { %6891 = vst [vmem:[#allocation16_spill] sm:$0xff] %v5241_v9 }
  0xec   :  { %4650 = vset.pattern.permute.xlu1 %v6817_v3 }
  0xed   :  { %412 = vperm.xlu1 %4650, %v4970_v22  }
  0xee   :  { %v5251_v4 = vpop.permute.xlu0 %816 }
  0xef   :  { %6893 = vst [vmem:[#allocation18_spill] sm:$0xff] %v5251_v4  ;;  %v5254_v2 = vpop.permute.xlu1 %372  ;;  %v5271_v4 = vld [vmem:[%s6887_s3 + $0x98] sm:$0xff] }
  0xf0   :  { %6897 = vst [vmem:[#allocation21_spill] sm:$0xff] %v5271_v4  ;;  %1460 = vperm.xlu0 %4686, %v5271_v4  }
  0xf1   :  { %4651 = vset.pattern.permute.xlu1 %v6894_v36 }
  0xf2   :  { %240 = vperm.xlu1 %4651, %v4977_v23   ;;  %v5263_v3 = vpop.permute.xlu0 %820 }
  0xf3   :  { %6896 = vst [vmem:[#allocation20_spill] sm:$0xff] %v5263_v3  ;;  %v5283_v3 = vld [vmem:[%s6887_s3 + $0x38] sm:$0xff] }
  0xf4   :  { %v5266_v9 = vpop.permute.xlu1 %190  ;;  %6900 = vst [vmem:[#allocation23_spill] sm:$0xff] %v5283_v3  ;;  %1400 = vperm.xlu0 %4686, %v5283_v3  }
  0xf6   :  { %4652 = vset.pattern.permute.xlu1 %v6898_v58  ;;  %v5274_v5 = vpop.permute.xlu0 %824 }
  0xf7   :  { %6899 = vst [vmem:[#allocation22_spill] sm:$0xff] %v5274_v5  ;;  %416 = vperm.xlu1 %4652, %v4977_v23   ;;  %v5293_v5 = vld [vmem:[%s6887_s3 + $0xa8] sm:$0xff] }
  0xf8   :  { %6903 = vst [vmem:[#allocation25_spill] sm:$0xff] %v5293_v5  ;;  %1470 = vperm.xlu0 %4686, %v5293_v5  }
  0xf9   :  { %v5278_v7 = vpop.permute.xlu1 %376 }
  0xfa   :  { %v5285_v34 = vpop.permute.xlu0 %828 }
  0xfb   :  { %6901 = vst [vmem:[#allocation24_spill] sm:$0xff] %v5285_v34  ;;  %4653 = vset.pattern.permute.xlu1 %v6902_v1  ;;  %v5305_v34 = vld [vmem:[%s6887_s3 + $0x48] sm:$0xff] }
  0xfc   :  { %608 = vperm.xlu1 %4653, %v4970_v22   ;;  %6905 = vst [vmem:[#allocation27_spill] sm:$0xff] %v5305_v34  ;;  %1410 = vperm.xlu0 %4686, %v5305_v34   ;;  %v5329_v34 = vld [vmem:[%s6887_s3 + $0x58] sm:$0xff] }
  0xfd   :  { %6909 = vst [vmem:[#allocation31_spill] sm:$0xff] %v5329_v34 }
  0xfe   :  { %v5295_v23 = vpop.permute.xlu1 %568  ;;  %v5297_v4 = vpop.permute.xlu0 %832 }
  0xff   :  { %6904 = vst [vmem:[#allocation26_spill] sm:$0xff] %v5297_v4  ;;  %v5316_v4 = vld [vmem:[%s6887_s3 + $0xb8] sm:$0xff] }
 0x100   :  { %4654 = vset.pattern.permute.xlu1 %v6894_v36  ;;  %6907 = vst [vmem:[#allocation29_spill] sm:$0xff] %v5316_v4  ;;  %1480 = vperm.xlu0 %4686, %v5316_v4   ;;  %v475_v4 = vmul.f32 %v5080_v46, %v5159_v16  ;;  %v5358_v16 = vld [vmem:[%s6887_s3 + $0xc8] sm:$0xff] }
 0x101   :  { %245 = vperm.xlu1 %4654, %v4984_v24  }
 0x102   :  { %v5307_v22 = vpop.permute.xlu0 %836 }
 0x103   :  { %6906 = vst [vmem:[#allocation28_spill] sm:$0xff] %v5307_v22  ;;  %v5310_v3 = vpop.permute.xlu1 %195  ;;  %v473_v22 = vmul.f32 %v5080_v46, %v5119_v10 }
 0x104   :  { %1420 = vperm.xlu0 %4686, %v5329_v34  }
 0x105   :  { %4655 = vset.pattern.permute.xlu1 %v6898_v58  ;;  %v505_v10 = vadd.f32 %v473_v22, %v309_v21  ;;  %v671_v21 = vmul.f32 %v5087_v52, %v5182_v50 }
 0x106   :  { %420 = vperm.xlu1 %4655, %v4984_v24   ;;  %v5319_v5 = vpop.permute.xlu0 %840 }
 0x107   :  { %6908 = vst [vmem:[#allocation30_spill] sm:$0xff] %v5319_v5  ;;  %v701_v56 = vadd.f32 %v669_v35, %v505_v10  ;;  %v308_v35 = vmul.f32 %v5067_v41, %v5062_v38  ;;  %v867_v10 = vmul.f32 %v5089_v53, %v5130_v14  ;;  %v5375_v38 = vld [vmem:[%s6887_s3 + $0x68] sm:$0xff]  ;;  %v866_v14 = vmul.f32 %v5089_v53, %v5124_v12 }
 0x108   :  { %v5324_v61 = vpop.permute.xlu1 %380  ;;  %1490 = vperm.xlu0 %4686, %v5358_v16  }
 0x109   :  { %v504_v22 = vadd.f32 %v472_v37, %v308_v35  ;;  %v476_v37 = vmul.f32 %v5080_v46, %v5175_v47 }
 0x10a   :  { %4656 = vset.pattern.permute.xlu1 %v6894_v36  ;;  %v5336_v5 = vpop.permute.xlu0 %844 }
 0x10b   :  { %6910 = vst [vmem:[#allocation32_spill] sm:$0xff] %v5336_v5  ;;  %250 = vperm.xlu1 %4656, %v4991_v25   ;;  %v311_v5 = vmul.f32 %v5067_v41, %v5151_v39  ;;  %v897_v39 = vadd.f32 %v865_v6, %v701_v56  ;;  %v673_v56 = vmul.f32 %v5087_v52, %v5222_v62 }
 0x10c   :  { %1430 = vperm.xlu0 %4686, %v5375_v38   ;;  %v870_v62 = vmul.f32 %v5089_v53, %v5149_v17 }
 0x10d   :  { %v5342_v33 = vpop.permute.xlu1 %200  ;;  %v507_v49 = vadd.f32 %v475_v4, %v311_v5  ;;  %v864_v4 = vmul.f32 %v5089_v53, %v5104_v63  ;;  %v310_v5 = vmul.f32 %v5067_v41, %v5128_v11  ;;  %v868_v11 = vmul.f32 %v5089_v53, %v5137_v32 }
 0x10e   :  { %v5346_v59 = vpop.permute.xlu0 %848 }
 0x10f   :  { %6911 = vst [vmem:[#allocation33_spill] sm:$0xff] %v5346_v59  ;;  %4657 = vset.pattern.permute.xlu1 %v6898_v58  ;;  %v703_v59 = vadd.f32 %v671_v21, %v507_v49  ;;  %v506_v63 = vadd.f32 %v474_v8, %v310_v5 }
 0x110   :  { %424 = vperm.xlu1 %4657, %v4991_v25   ;;  %v477_v25 = vmul.f32 %v5080_v46, %v5195_v18  ;;  %v313_v18 = vmul.f32 %v5067_v41, %v5189_v19  ;;  %v479_v19 = vmul.f32 %v5080_v46, %v5254_v2  ;;  %v675_v2 = vmul.f32 %v5087_v52, %v5295_v23 }
 0x111   :  { %v899_v21 = vadd.f32 %v867_v10, %v703_v59  ;;  %v315_v59 = vmul.f32 %v5067_v41, %v5239_v20  ;;  %v481_v20 = vmul.f32 %v5080_v46, %v5324_v61  ;;  %v478_v23 = vmul.f32 %v5080_v46, %v5215_v60 }
 0x112   :  { %v5366_v50 = vpop.permute.xlu1 %384  ;;  %v509_v12 = vadd.f32 %v477_v25, %v313_v18  ;;  %v314_v61 = vmul.f32 %v5067_v41, %v5203_v57  ;;  %v873_v60 = vmul.f32 %v5089_v53, %v5168_v44  ;;  %v316_v44 = vmul.f32 %v5067_v41, %v5266_v9 }
 0x113   :  { %v541_v34 = vpop.permute.xlu0 %540  ;;  %v482_v9 = vmul.f32 %v5080_v46, %v5366_v50  ;;  %v874_v50 = vmul.f32 %v5089_v53, %v5173_v45 }
 0x114   :  { %v668_v13 = vmul.f32 %v5087_v52, %v541_v34  ;;  %4658 = vset.pattern.permute.xlu1 %v6902_v1  ;;  %v936_v34 = vadd.f32 %v5109_v0, %v897_v39  ;;  %v312_v39 = vmul.f32 %v5067_v41, %v5166_v43  ;;  %v705_v47 = vadd.f32 %v673_v56, %v509_v12 }
 0x115   :  { %616 = vperm.xlu1 %4658, %v4984_v24   ;;  %v869_v24 = vmul.f32 %v5089_v53, %v5142_v15  ;;  %v871_v15 = vmul.f32 %v5089_v53, %v5155_v40  ;;  %v938_v43 = vadd.f32 %v5109_v0, %v899_v21 }
 0x116   :  { %v700_v6 = vadd.f32 %v668_v13, %v504_v22  ;;  %v968_v10 = vmax.f32 %v936_v34, 0.0  ;;  %v508_v25 = vadd.f32 %v476_v37, %v312_v39  ;;  %v317_v34 = vmul.f32 %v5067_v41, %v5310_v3 }
 0x117   :  { %v577_v35 = vpop.permute.xlu1 %576  ;;  %v549_v49 = vpop.permute.xlu0 %548  ;;  %v970_v57 = vmax.f32 %v938_v43, 0.0 }
 0x118   :  { %v896_v32 = vadd.f32 %v864_v4, %v700_v6  ;;  %v670_v8 = vmul.f32 %v5087_v52, %v549_v49  ;;  %v511_v4 = vadd.f32 %v479_v19, %v315_v59  ;;  %v677_v37 = vmul.f32 %v5087_v52, %v577_v35 }
 0x119   :  { %4659 = vset.pattern.permute.xlu1 %v6894_v36  ;;  %v513_v19 = vadd.f32 %v481_v20, %v317_v34  ;;  %v510_v35 = vadd.f32 %v478_v23, %v314_v61 }
 0x11a   :  { %v935_v17 = vadd.f32 %v5109_v0, %v896_v32  ;;  %v702_v22 = vadd.f32 %v670_v8, %v506_v63  ;;  %255 = vperm.xlu1 %4659, %v4998_v26   ;;  %v901_v63 = vadd.f32 %v869_v24, %v705_v47  ;;  %v707_v6 = vadd.f32 %v675_v2, %v511_v4 }
 0x11b   :  { %v557_v5 = vpop.permute.xlu0 %556  ;;  %v709_v47 = vadd.f32 %v677_v37, %v513_v19 }
 0x11c   :  { %v967_v13 = vmax.f32 %v935_v17, 0.0  ;;  %v898_v18 = vadd.f32 %v866_v14, %v702_v22  ;;  %v672_v40 = vmul.f32 %v5087_v52, %v557_v5  ;;  %v5420_v56 = vpop.permute.xlu1 %205  ;;  %v480_v14 = vmul.f32 %v5080_v46, %v5278_v7 }
 0x11d   :  { %v940_v8 = vadd.f32 %v5109_v0, %v901_v63  ;;  %v903_v39 = vadd.f32 %v871_v15, %v707_v6  ;;  %v872_v17 = vmul.f32 %v5089_v53, %v5161_v42  ;;  %v905_v4 = vadd.f32 %v873_v60, %v709_v47 }
 0x11e   :  { %v937_v21 = vadd.f32 %v5109_v0, %v898_v18  ;;  %v704_v12 = vadd.f32 %v672_v40, %v508_v25  ;;  %4660 = vset.pattern.permute.xlu1 %v6898_v58  ;;  %4265 = vmatmul.mubr.msk.f32.vlgmr.msra.gmra.mrb[0].mxu0 %vm1009_vm0, %v967_v13  ;;  %v512_v22 = vadd.f32 %v480_v14, %v316_v44 }
 0x11f   :  { %428 = vperm.xlu1 %4660, %v4998_v26   ;;  %4267 = vmatprep.mubr.msk.f32.mxu0 %vm1009_vm0, %v968_v10  ;;  %v565_v3 = vpop.permute.xlu0 %564  ;;  %v942_v43 = vadd.f32 %v5109_v0, %v903_v39  ;;  %v972_v20 = vmax.f32 %v940_v8, 0.0  ;;  %v318_v42 = vmul.f32 %v5067_v41, %v5342_v33  ;;  %v5463_v33 = vld [vmem:[%s6887_s3 + $0xd8] sm:$0xff]  ;;  %v944_v34 = vadd.f32 %v5109_v0, %v905_v4 }
 0x120   :  { %v969_v49 = vmax.f32 %v937_v21, 0.0  ;;  %v900_v24 = vadd.f32 %v868_v11, %v704_v12  ;;  %v674_v32 = vmul.f32 %v5087_v52, %v565_v3  ;;  %1500 = vperm.xlu0 %4686, %v5463_v33   ;;  %v319_v44 = vmul.f32 %v5067_v41, %v5420_v56 }
 0x121   :  { %v389_v7 = vpop.permute.xlu1 %388  ;;  %v514_v18 = vadd.f32 %v482_v9, %v318_v42  ;;  %v974_v45 = vmax.f32 %v942_v43, 0.0 }
 0x122   :  { %v939_v59 = vadd.f32 %v5109_v0, %v900_v24  ;;  %v706_v2 = vadd.f32 %v674_v32, %v510_v35  ;;  %4268 = vmatmul.mubr.msk.f32.gmra.mrb[2].mxu0 %vm1009_vm0, %v969_v49  ;;  %v483_v35 = vmul.f32 %v5080_v46, %v389_v7  ;;  %v976_v49 = vmax.f32 %v944_v34, 0.0 }
 0x123   :  { %4661 = vset.pattern.permute.xlu1 %v6894_v36  ;;  %4270 = vmatprep.mubr.msk.f32.mxu0 %vm1009_vm0, %v970_v57  ;;  %v573_v11 = vpop.permute.xlu0 %572  ;;  %v5477_v57 = vld [vmem:[%s6887_s3 + $0x78] sm:$0xff]  ;;  %v876_v24 = vmul.f32 %v5089_v53, %v5186_v51 }
 0x124   :  { %v971_v15 = vmax.f32 %v939_v59, 0.0  ;;  %v902_v10 = vadd.f32 %v870_v62, %v706_v2  ;;  %v676_v25 = vmul.f32 %v5087_v52, %v573_v11  ;;  %260 = vperm.xlu1 %4661, %v5005_v27   ;;  %1440 = vperm.xlu0 %4686, %v5477_v57   ;;  %v875_v59 = vmul.f32 %v5089_v53, %v5180_v48 }
 0x125   :  { %v515_v2 = vadd.f32 %v483_v35, %v319_v44 }
 0x126   :  { %v941_v5 = vadd.f32 %v5109_v0, %v902_v10  ;;  %v708_v23 = vadd.f32 %v676_v25, %v512_v22  ;;  %v211_v13 = vpop.permute.xlu1 %210  ;;  %4271 = vmatmul.mubr.msk.f32.gmra.mrb[4].mxu0 %vm1009_vm0, %v971_v15 }
 0x127   :  { %4273 = vmatprep.mubr.msk.f32.mxu0 %vm1009_vm0, %v972_v20  ;;  %v581_v62 = vpop.permute.xlu0 %580  ;;  %v320_v21 = vmul.f32 %v5067_v41, %v211_v13  ;;  %v878_v13 = vmul.f32 %v5089_v53, %v5197_v55 }
 0x128   :  { %v973_v40 = vmax.f32 %v941_v5, 0.0  ;;  %v904_v63 = vadd.f32 %v872_v17, %v708_v23  ;;  %v678_v6 = vmul.f32 %v5087_v52, %v581_v62  ;;  %4662 = vset.pattern.permute.xlu1 %v6898_v58 }
 0x129   :  { %432 = vperm.xlu1 %4662, %v5005_v27  }
 0x12a   :  { %v943_v37 = vadd.f32 %v5109_v0, %v904_v63  ;;  %v710_v61 = vadd.f32 %v678_v6, %v514_v18  ;;  %4274 = vmatmul.mubr.msk.f32.gmra.mrb[6].mxu0 %vm1009_vm0, %v973_v40  ;;  %v877_v40 = vmul.f32 %v5089_v53, %v5191_v54 }
 0x12b   :  { %v393_v12 = vpop.permute.xlu1 %392  ;;  %4276 = vmatprep.mubr.msk.f32.mxu0 %vm1009_vm0, %v974_v45  ;;  %v589_v60 = vpop.permute.xlu0 %588 }
 0x12c   :  { %v975_v14 = vmax.f32 %v943_v37, 0.0  ;;  %v906_v19 = vadd.f32 %v874_v50, %v710_v61  ;;  %v484_v3 = vmul.f32 %v5080_v46, %v393_v12  ;;  %v680_v27 = vmul.f32 %v5087_v52, %v589_v60 }
 0x12d   :  { %4663 = vset.pattern.permute.xlu1 %v6902_v1 }
 0x12e   :  { %v945_v32 = vadd.f32 %v5109_v0, %v906_v19  ;;  %v516_v8 = vadd.f32 %v484_v3, %v320_v21  ;;  %624 = vperm.xlu1 %4663, %v4998_v26   ;;  %4277 = vmatmul.mubr.msk.f32.gmra.mrb[8].mxu0 %vm1009_vm0, %v975_v14 }
 0x12f   :  { %4279 = vmatprep.mubr.msk.f32.mxu0 %vm1009_vm0, %v976_v49  ;;  %v597_v43 = vpop.permute.xlu0 %596 }
 0x130   :  { %v977_v39 = vmax.f32 %v945_v32, 0.0  ;;  %v712_v47 = vadd.f32 %v680_v27, %v516_v8  ;;  %v585_v7 = vpop.permute.xlu1 %584  ;;  %v682_v5 = vmul.f32 %v5087_v52, %v597_v43 }
 0x131   :  { %v679_v51 = vmul.f32 %v5087_v52, %v585_v7 }
 0x132   :  { %v908_v17 = vadd.f32 %v876_v24, %v712_v47  ;;  %4664 = vset.pattern.permute.xlu1 %v6894_v36  ;;  %4280 = vmatmul.mubr.msk.f32.gmra.mrb[10].mxu0 %vm1009_vm0, %v977_v39  ;;  %v6912_v24 = vld [vmem:[#allocation11_spill] sm:$0xff]  ;;  %v6913_v47 = vld [vmem:[#allocation9_spill] sm:$0xff] }
 0x133   :  { %v711_v26 = vadd.f32 %v679_v51, %v515_v2  ;;  %265 = vperm.xlu1 %4664, %v5012_v28   ;;  %v605_v14 = vpop.permute.xlu0 %604  ;;  %v880_v32 = vmul.f32 %v5089_v53, %v6912_v24  ;;  %v879_v7 = vmul.f32 %v5089_v53, %v6913_v47  ;;  %v6919_v24 = vld [vmem:[#allocation15_spill] sm:$0xff] }
 0x134   :  { %v947_v11 = vadd.f32 %v5109_v0, %v908_v17  ;;  %v684_v35 = vmul.f32 %v5087_v52, %v605_v14  ;;  %v6918_v14 = vld [vmem:[#allocation13_spill] sm:$0xff] }
 0x135   :  { %v907_v56 = vadd.f32 %v875_v59, %v711_v26  ;;  %v216_v22 = vpop.permute.xlu1 %215  ;;  %v6914_v26 = vld [vmem:[#allocation5_spill] sm:$0xff] }
 0x136   :  { %v979_v15 = vmax.f32 %v947_v11, 0.0 }
 0x137   :  { %v946_v9 = vadd.f32 %v5109_v0, %v907_v56  ;;  %4665 = vset.pattern.permute.xlu1 %v6898_v58  ;;  %v613_v43 = vpop.permute.xlu0 %612 }
 0x138   :  { %436 = vperm.xlu1 %4665, %v5012_v28  }
 0x139   :  { %v978_v48 = vmax.f32 %v946_v9, 0.0 }
 0x13a   :  { %v397_v10 = vpop.permute.xlu1 %396 }
 0x13b   :  { %4282 = vmatprep.mubr.msk.f32.mxu0 %vm1009_vm0, %v978_v48  ;;  %v485_v23 = vmul.f32 %v5080_v46, %v397_v10  ;;  %v6915_v10 = vld [vmem:[#allocation7_spill] sm:$0xff] }
 0x13c   :  { %4666 = vset.pattern.permute.xlu1 %v6894_v36  ;;  %4283 = vmatmul.mubr.msk.f32.gmra.mrb[12].mxu0 %vm1009_vm0, %v979_v15 }
 0x13d   :  { %270 = vperm.xlu1 %4666, %v5020_v29  }
 0x13f   :  { %v221_v25 = vpop.permute.xlu1 %220 }
 0x140   :  { %v322_v20 = vmul.f32 %v5067_v41, %v221_v25 }
 0x141   :  { %4667 = vset.pattern.permute.xlu1 %v6898_v58 }
 0x142   :  { %440 = vperm.xlu1 %4667, %v5020_v29   ;;  %v321_v29 = vmul.f32 %v5067_v41, %v216_v22 }
 0x144   :  { %v401_v4 = vpop.permute.xlu1 %400  ;;  %v517_v63 = vadd.f32 %v485_v23, %v321_v29  ;;  %v6916_v29 = vld [vmem:[#allocation14_spill] sm:$0xff] }
 0x145   :  { %v486_v42 = vmul.f32 %v5080_v46, %v401_v4 }
 0x146   :  { %4668 = vset.pattern.permute.xlu1 %v6902_v1 }
 0x147   :  { %v518_v50 = vadd.f32 %v486_v42, %v322_v20  ;;  %632 = vperm.xlu1 %4668, %v5012_v28  }
 0x149   :  { %v714_v62 = vadd.f32 %v682_v5, %v518_v50  ;;  %v593_v18 = vpop.permute.xlu1 %592  ;;  %v686_v5 = vmul.f32 %v5087_v52, %v613_v43 }
 0x14a   :  { %v681_v6 = vmul.f32 %v5087_v52, %v593_v18 }
 0x14b   :  { %v910_v34 = vadd.f32 %v878_v13, %v714_v62  ;;  %4669 = vset.pattern.permute.xlu1 %v6894_v36  ;;  %v882_v62 = vmul.f32 %v5089_v53, %v6916_v29 }
 0x14c   :  { %v713_v45 = vadd.f32 %v681_v6, %v517_v63  ;;  %275 = vperm.xlu1 %4669, %v5027_v30   ;;  %v5566_v63 = vld [vmem:[%s6875_s27 + $0xf0] sm:$0xff] }
 0x14d   :  { %v949_v28 = vadd.f32 %v5109_v0, %v910_v34 }
 0x14e   :  { %v909_v55 = vadd.f32 %v877_v40, %v713_v45  ;;  %v226_v37 = vpop.permute.xlu1 %225 }
 0x14f   :  { %v981_v21 = vmax.f32 %v949_v28, 0.0 }
 0x150   :  { %v948_v61 = vadd.f32 %v5109_v0, %v909_v55  ;;  %4670 = vset.pattern.permute.xlu1 %v6898_v58  ;;  %v6917_v55 = vld [vmem:[#allocation12_spill] sm:$0xff] }
 0x151   :  { %444 = vperm.xlu1 %4670, %v5027_v30  }
 0x152   :  { %v980_v54 = vmax.f32 %v948_v61, 0.0 }
 0x153   :  { %v405_v12 = vpop.permute.xlu1 %404 }
 0x154   :  { %4285 = vmatprep.mubr.msk.f32.mxu0 %vm1009_vm0, %v980_v54  ;;  %v487_v49 = vmul.f32 %v5080_v46, %v405_v12 }
 0x155   :  { %4671 = vset.pattern.permute.xlu1 %v6894_v36  ;;  %4286 = vmatmul.mubr.msk.f32.gmra.mrb[14].mxu0 %vm1009_vm0, %v981_v21 }
 0x156   :  { %280 = vperm.xlu1 %4671, %v5035_v31  }
 0x158   :  { %v231_v60 = vpop.permute.xlu1 %230 }
 0x159   :  { %v324_v3 = vmul.f32 %v5067_v41, %v231_v60  ;;  %v5582_v60 = vld [vmem:[%s6887_s3 + $0x8] sm:$0xff] }
 0x15a   :  { %4672 = vset.pattern.permute.xlu1 %v6898_v58 }
 0x15b   :  { %448 = vperm.xlu1 %4672, %v5035_v31   ;;  %v323_v31 = vmul.f32 %v5067_v41, %v226_v37  ;;  %v881_v37 = vmul.f32 %v5089_v53, %v6917_v55 }
 0x15d   :  { %v409_v19 = vpop.permute.xlu1 %408  ;;  %v519_v59 = vadd.f32 %v487_v49, %v323_v31 }
 0x15e   :  { %v488_v27 = vmul.f32 %v5080_v46, %v409_v19  ;;  %v2968_v19 = vsel %vm2967_vm1, %v6918_v14, -inf }
 0x15f   :  { %4673 = vset.pattern.permute.xlu1 %v6902_v1 }
 0x160   :  { %v520_v8 = vadd.f32 %v488_v27, %v324_v3  ;;  %640 = vperm.xlu1 %4673, %v5027_v30   ;;  %v2969_v27 = vsel %vm2967_vm1, %v5582_v60, -inf }
 0x162   :  { %v716_v44 = vadd.f32 %v684_v35, %v520_v8  ;;  %v601_v39 = vpop.permute.xlu1 %600  ;;  %v2970_v8 = vmax.f32 %v2968_v19, %v2969_v27 }
 0x163   :  { %v683_v2 = vmul.f32 %v5087_v52, %v601_v39  ;;  %v6920_v39 = vld [vmem:[#allocation17_spill] sm:$0xff] }
 0x164   :  { %v912_v51 = vadd.f32 %v880_v32, %v716_v44  ;;  %4674 = vset.pattern.permute.xlu1 %v6894_v36  ;;  %v2978_v32 = vsel %vm2967_vm1, %v6919_v24, -inf  ;;  %v5603_v44 = vld [vmem:[%s6887_s3 + $0x20] sm:$0xff]  ;;  %v2987_v47 = vsel %vm2967_vm1, %v6920_v39, -inf  ;;  %v3023_v39 = vsel %vm2967_vm1, %v5375_v38, -inf }
 0x165   :  { %v715_v17 = vadd.f32 %v683_v2, %v519_v59  ;;  %285 = vperm.xlu1 %4674, %v6914_v26   ;;  %v2986_v59 = vsel %vm2967_vm1, %v5603_v44, -inf }
 0x166   :  { %v951_v30 = vadd.f32 %v5109_v0, %v912_v51 }
 0x167   :  { %v911_v56 = vadd.f32 %v879_v7, %v715_v17  ;;  %v236_v22 = vpop.permute.xlu1 %235  ;;  %v6921_v7 = vld [vmem:[#allocation10_spill] sm:$0xff]  ;;  %v6922_v17 = vld [vmem:[#allocation16_spill] sm:$0xff] }
 0x168   :  { %v983_v48 = vmax.f32 %v951_v30, 0.0  ;;  %v325_v50 = vmul.f32 %v5067_v41, %v236_v22  ;;  %v2988_v22 = vmax.f32 %v2986_v59, %v2987_v47  ;;  %v5617_v30 = vld [vmem:[%s6887_s3 + $0x90] sm:$0xff] }
 0x169   :  { %v950_v11 = vadd.f32 %v5109_v0, %v911_v56  ;;  %4675 = vset.pattern.permute.xlu1 %v6898_v58  ;;  %v2971_v56 = vrot.slane %v2970_v8, 4  ;;  %v3049_v43 = vsel %vm2967_vm1, %v5617_v30, -inf  ;;  %v5675_v47 = vld [vmem:[%s6887_s3 + $0xb0] sm:$0xff] }
 0x16a   :  { %452 = vperm.xlu1 %4675, %v6914_v26  }
 0x16b   :  { %v982_v9 = vmax.f32 %v950_v11, 0.0  ;;  %v6923_v11 = vld [vmem:[#allocation18_spill] sm:$0xff] }
 0x16c   :  { %v413_v15 = vpop.permute.xlu1 %412 }
 0x16d   :  { %4288 = vmatprep.mubr.msk.f32.mxu0 %vm1009_vm0, %v982_v9  ;;  %v489_v23 = vmul.f32 %v5080_v46, %v413_v15  ;;  %v884_v9 = vmul.f32 %v5089_v53, %v6923_v11  ;;  %v5688_v11 = vld [vmem:[%s6887_s3 + $0x30] sm:$0xff] }
 0x16e   :  { %4676 = vset.pattern.permute.xlu1 %v6894_v36  ;;  %4289 = vmatmul.mubr.msk.f32.gmra.mrb[16].mxu0 %vm1009_vm0, %v983_v48  ;;  %v6924_v48 = vld [vmem:[#allocation19_spill] sm:$0xff] }
 0x16f   :  { %290 = vperm.xlu1 %4676, %v6915_v10   ;;  %v521_v6 = vadd.f32 %v489_v23, %v325_v50  ;;  %v3041_v15 = vsel %vm2967_vm1, %v6924_v48, -inf }
 0x171   :  { %v241_v25 = vpop.permute.xlu1 %240 }
 0x172   :  { %v326_v20 = vmul.f32 %v5067_v41, %v241_v25 }
 0x173   :  { %4677 = vset.pattern.permute.xlu1 %v6898_v58 }
 0x174   :  { %456 = vperm.xlu1 %4677, %v6915_v10   ;;  %v6925_v10 = vld [vmem:[#allocation21_spill] sm:$0xff] }
 0x175   :  { %v3050_v25 = vsel %vm2967_vm1, %v6925_v10, -inf }
 0x176   :  { %v417_v4 = vpop.permute.xlu1 %416  ;;  %v3051_v14 = vmax.f32 %v3049_v43, %v3050_v25 }
 0x177   :  { %v490_v42 = vmul.f32 %v5080_v46, %v417_v4  ;;  %v5631_v4 = vld [vmem:[%s6887_s3 + $0xa0] sm:$0xff] }
 0x178   :  { %4678 = vset.pattern.permute.xlu1 %v6902_v1  ;;  %v3058_v29 = vsel %vm2967_vm1, %v5631_v4, -inf  ;;  %v3052_v38 = vrot.slane %v3051_v14, 4 }
 0x179   :  { %v522_v13 = vadd.f32 %v490_v42, %v326_v20  ;;  %648 = vperm.xlu1 %4678, %v6914_v26   ;;  %v5612_v26 = vmul.f32 %v5089_v53, %v6922_v17  ;;  %v6926_v20 = vld [vmem:[#allocation20_spill] sm:$0xff]  ;;  %v3067_v17 = vsel %vm2967_vm1, %v5675_v47, -inf }
 0x17a   :  { %v5635_v42 = vmul.f32 %v5089_v53, %v6926_v20 }
 0x17b   :  { %v718_v18 = vadd.f32 %v686_v5, %v522_v13  ;;  %v609_v40 = vpop.permute.xlu1 %608  ;;  %v6927_v5 = vld [vmem:[#allocation22_spill] sm:$0xff]  ;;  %v6928_v13 = vld [vmem:[#allocation25_spill] sm:$0xff] }
 0x17c   :  { %v685_v34 = vmul.f32 %v5087_v52, %v609_v40  ;;  %v5639_v23 = vmul.f32 %v5089_v53, %v6927_v5  ;;  %v3059_v50 = vsel %vm2967_vm1, %v6928_v13, -inf  ;;  %v6930_v40 = vld [vmem:[#allocation27_spill] sm:$0xff] }
 0x17d   :  { %v914_v45 = vadd.f32 %v882_v62, %v718_v18  ;;  %4679 = vset.pattern.permute.xlu1 %v6894_v36  ;;  %v6929_v62 = vld [vmem:[#allocation23_spill] sm:$0xff] }
 0x17e   :  { %v717_v28 = vadd.f32 %v685_v34, %v521_v6  ;;  %295 = vperm.xlu1 %4679, %v5566_v63   ;;  %v2996_v18 = vsel %vm2967_vm1, %v6929_v62, -inf  ;;  %v3005_v6 = vsel %vm2967_vm1, %v6930_v40, -inf  ;;  %v6931_v34 = vld [vmem:[#allocation29_spill] sm:$0xff] }
 0x17f   :  { %v953_v21 = vadd.f32 %v5109_v0, %v914_v45  ;;  %v3068_v45 = vsel %vm2967_vm1, %v6931_v34, -inf  ;;  %v5713_v40 = vld [vmem:[%s6887_s3 + $0xc0] sm:$0xff] }
 0x180   :  { %v913_v61 = vadd.f32 %v881_v37, %v717_v28  ;;  %v5573_v54 = vpop.permute.xlu1 %245  ;;  %v5655_v37 = vld [vmem:[%s6887_s3 + $0x80] sm:$0xff]  ;;  %v3069_v5 = vmax.f32 %v3067_v17, %v3068_v45 }
 0x181   :  { %v985_v35 = vmax.f32 %v953_v21, 0.0  ;;  %v2989_v21 = vrot.slane %v2988_v22, 4  ;;  %v5718_v34 = vld [vmem:[%s6887_s3 + $0x60] sm:$0xff] }
 0x182   :  { %v952_v12 = vadd.f32 %v5109_v0, %v913_v61  ;;  %4680 = vset.pattern.permute.xlu1 %v6898_v58  ;;  %v5592_v0 = vld [vmem:[%s6887_s3 + $0x10] sm:$0xff]  ;;  %v5657_v61 = vmax.f32 %v2970_v8, %v2971_v56  ;;  %v3077_v8 = vsel %vm2967_vm1, %v5358_v16, -inf  ;;  %v327_v16 = vmul.f32 %v5067_v41, %v5573_v54  ;;  %v5697_v54 = vld [vmem:[%s6887_s3 + $0x40] sm:$0xff] }
 0x183   :  { %460 = vperm.xlu1 %4680, %v5566_v63   ;;  %v2977_v31 = vsel %vm2967_vm1, %v5592_v0, -inf  ;;  %v5683_v56 = vmax.f32 %v2988_v22, %v2989_v21  ;;  %v3004_v20 = vsel %vm2967_vm1, %v5697_v54, -inf  ;;  %v5728_v21 = vld [vmem:[%s6887_s3 + $0xd0] sm:$0xff] }
 0x184   :  { %v984_v3 = vmax.f32 %v952_v12, 0.0  ;;  %v2979_v51 = vmax.f32 %v2977_v31, %v2978_v32  ;;  %v3040_v12 = vsel %vm2967_vm1, %v5655_v37, -inf  ;;  %v6932_v32 = vld [vmem:[#allocation31_spill] sm:$0xff] }
 0x185   :  { %v421_v49 = vpop.permute.xlu1 %420  ;;  %v3014_v31 = vsel %vm2967_vm1, %v6932_v32, -inf  ;;  %v3032_v32 = vsel %vm2967_vm1, %v5477_v57, -inf }
 0x186   :  { %4291 = vmatprep.mubr.msk.f32.mxu0 %vm1009_vm0, %v984_v3  ;;  %v2980_v55 = vrot.slane %v2979_v51, 4  ;;  %v491_v24 = vmul.f32 %v5080_v46, %v421_v49 }
 0x187   :  { %4681 = vset.pattern.permute.xlu1 %v6894_v36  ;;  %4292 = vmatmul.mubr.msk.f32.gmra.mrb[18].mxu0 %vm1009_vm0, %v985_v35  ;;  %v3060_v35 = vmax.f32 %v3058_v29, %v3059_v50  ;;  %v6933_v50 = vmov 3  }
 0x188   :  { %300 = vperm.xlu1 %4681, %v6921_v7   ;;  %v2981_v49 = vmax.f32 %v2979_v51, %v2980_v55  ;;  %v3086_v51 = vsel %vm2967_vm1, %v5463_v33, -inf  ;;  %v523_v22 = vadd.f32 %v491_v24, %v327_v16  ;;  %v5705_v33 = vld [vmem:[%s6887_s3 + $0x50] sm:$0xff]  ;;  %v3076_v55 = vsel %vm2967_vm1, %v5713_v40, -inf }
 0x189   :  { %v3061_v25 = vrot.slane %v3060_v35, 4  ;;  %v3013_v62 = vsel %vm2967_vm1, %v5705_v33, -inf }
 0x18a   :  { %v251_v2 = vpop.permute.xlu1 %250  ;;  %v3015_v17 = vmax.f32 %v3013_v62, %v3014_v31  ;;  %v141_v31 = vld [vmem:[%s6887_s3 + $0xf8] sm:$0xff] }
 0x18b   :  { %v328_v19 = vmul.f32 %v5067_v41, %v251_v2  ;;  %v3042_v2 = vmax.f32 %v3040_v12, %v3041_v15  ;;  %v2995_v15 = vsel %vm2967_vm1, %v5688_v11, -inf  ;;  %v139_v12 = vld [vmem:[%s6887_s3 + $0xe8] sm:$0xff] }
 0x18c   :  { %4682 = vset.pattern.permute.xlu1 %v6898_v58  ;;  %v621_v58 = vpop.permute.xlu0 %620  ;;  %1510 = vperm.xlu0 %4686, %v139_v12  }
 0x18d   :  { %464 = vperm.xlu1 %4682, %v6921_v7   ;;  %v688_v27 = vmul.f32 %v5087_v52, %v621_v58  ;;  %v2982_v58 = vrot.slane %v2981_v49, 2  ;;  %v3043_v29 = vrot.slane %v3042_v2, 4 }
 0x18f   :  { %v425_v28 = vpop.permute.xlu1 %424 }
 0x190   :  { %v492_v3 = vmul.f32 %v5080_v46, %v425_v28  ;;  %v3022_v28 = vsel %vm2967_vm1, %v5718_v34, -inf  ;;  %1520 = vperm.xlu0 %4686, %v141_v31  }
 0x191   :  { %4684 = vset.pattern.permute.xlu1 %v6902_v1  ;;  %v3024_v16 = vmax.f32 %v3022_v28, %v3023_v39  ;;  %v2991_v28 = vrot.slane %v5683_v56, 2 }
 0x192   :  { %v524_v59 = vadd.f32 %v492_v3, %v328_v19  ;;  %656 = vperm.xlu1 %4684, %v5566_v63   ;;  %v2997_v19 = vmax.f32 %v2995_v15, %v2996_v18  ;;  %v5733_v3 = vmax.f32 %v3060_v35, %v3061_v25  ;;  %v5745_v18 = vld [vmem:[%s6882_s2] ss:$0 sm:$0xff]  ;;  %v3078_v35 = vmax.f32 %v3076_v55, %v3077_v8  ;;  %v5759_v8 = vld [vmem:[%s6887_s3 + $0x70] sm:$0xff] }
 0x194   :  { %v720_v48 = vadd.f32 %v688_v27, %v524_v59  ;;  %v617_v10 = vpop.permute.xlu1 %616  ;;  %v3070_v59 = vrot.slane %v3069_v5, 4  ;;  %v2998_v15 = vrot.slane %v2997_v19, 4  ;;  %v3063_v25 = vrot.slane %v5733_v3, 2 }
 0x195   :  { %v687_v43 = vmul.f32 %v5087_v52, %v617_v10 }
 0x196   :  { %v916_v13 = vadd.f32 %v884_v9, %v720_v48  ;;  %4685 = vset.pattern.permute.xlu1 %v6933_v50  ;;  %v3053_v9 = vmax.f32 %v3051_v14, %v3052_v38  ;;  %v3085_v14 = vsel %vm2967_vm1, %v5728_v21, -inf  ;;  %v2983_v38 = vmax.f32 %v2981_v49, %v2982_v58  ;;  %v5766_v58 = vld [vmem:[%s6887_s3 + $0xe0] sm:$0xff] }
 0x197   :  { %v719_v45 = vadd.f32 %v687_v43, %v523_v22  ;;  %852 = vperm.xlu1 %4685, %v5566_v63   ;;  %v3006_v63 = vmax.f32 %v3004_v20, %v3005_v6  ;;  %v3087_v57 = vmax.f32 %v3085_v14, %v3086_v51  ;;  %v3071_v49 = vmax.f32 %v3069_v5, %v3070_v59 }
 0x198   :  { %v955_v6 = vadd.f32 %v5745_v18, %v916_v13  ;;  %v3054_v10 = vrot.slane %v3053_v9, 2  ;;  %v2984_v39 = vrot.slane %v2983_v38, 1  ;;  %v3031_v51 = vsel %vm2967_vm1, %v5759_v8, -inf  ;;  %6934 = vst [vmem:[#allocation11_spill] sm:$0xff] %v5766_v58 }
 0x199   :  { %v915_v27 = vadd.f32 %v5612_v26, %v719_v45  ;;  %v5738_v24 = vpop.permute.xlu1 %255  ;;  %v5750_v26 = vmax.f32 %v3042_v2, %v3043_v29  ;;  %v3007_v22 = vrot.slane %v3006_v63, 4  ;;  %v3016_v2 = vrot.slane %v3015_v17, 4 }
 0x19a   :  { %v987_v43 = vmax.f32 %v955_v6, 0.0  ;;  %v3079_v13 = vrot.slane %v3078_v35, 4  ;;  %v3025_v50 = vrot.slane %v3024_v16, 4  ;;  %v5768_v29 = vmax.f32 %v2983_v38, %v2984_v39  ;;  %v5781_v6 = vld [vmem:[%s6887_s3 + $0xf0] sm:$0xff]  ;;  %v629_v38 = vpop.permute.xlu0 %628  ;;  %s6979_s3 = sld [smem:[#allocation44_spill]] }
 0x19b   :  { %v954_v48 = vadd.f32 %v5745_v18, %v915_v27  ;;  %856 = vperm.xlu1 %4685, %v6921_v7   ;;  %v3088_v5 = vrot.slane %v3087_v57, 4  ;;  %v3094_v62 = vsel %vm2967_vm1, %v5766_v58, -inf  ;;  %v3095_v45 = vsel %vm2967_vm1, %v139_v12, -inf  ;;  %6935 = vst [vmem:[#allocation9_spill] sm:$0xff] %v5781_v6 }
 0x19c   :  { %v3055_v55 = vmax.f32 %v3053_v9, %v3054_v10  ;;  %v2999_v14 = vmax.f32 %v2997_v19, %v2998_v15  ;;  %v3008_v27 = vmax.f32 %v3006_v63, %v3007_v22  ;;  %v3033_v59 = vmax.f32 %v3031_v51, %v3032_v32  ;;  %3334 = vperm.xlu0 %4686, %v5768_v29  }
 0x19d   :  { %v986_v7 = vmax.f32 %v954_v48, 0.0  ;;  %v5783_v48 = vmax.f32 %v3015_v17, %v3016_v2  ;;  %v3103_v9 = vsel %vm2967_vm1, %v5781_v6, -inf  ;;  %v3072_v10 = vrot.slane %v3071_v49, 2 }
 0x19e   :  { %v429_v20 = vpop.permute.xlu1 %428  ;;  %v3056_v12 = vrot.slane %v3055_v55, 1  ;;  %v3080_v19 = vmax.f32 %v3078_v35, %v3079_v13  ;;  %v5789_v63 = vmax.f32 %v3024_v16, %v3025_v50  ;;  %v3096_v32 = vmax.f32 %v3094_v62, %v3095_v45 }
 0x19f   :  { %4687 = vset.pattern.permute.xlu1 %v6894_v36  ;;  %4294 = vmatprep.mubr.msk.f32.mxu0 %vm1009_vm0, %v986_v7  ;;  %v3045_v22 = vrot.slane %v5750_v26, 2  ;;  %v3089_v39 = vmax.f32 %v3087_v57, %v3088_v5  ;;  %v3064_v17 = vmax.f32 %v5733_v3, %v3063_v25  ;;  %v3000_v2 = vrot.slane %v2999_v14, 2 }
 0x1a0   :  { %1370 = vperm.xlu1 %4687, %v5582_v60   ;;  %4295 = vmatmul.mubr.msk.f32.gmra.mrb[20].mxu0 %vm1009_vm0, %v987_v43  ;;  %v3104_v60 = vsel %vm2967_vm1, %v141_v31, -inf  ;;  %v5792_v7 = vmax.f32 %v3055_v55, %v3056_v12  ;;  %v690_v31 = vmul.f32 %v5087_v52, %v629_v38  ;;  %v3034_v51 = vrot.slane %v3033_v59, 4 }
 0x1a1   :  { %v3105_v43 = vmax.f32 %v3103_v9, %v3104_v60  ;;  %v3009_v1 = vrot.slane %v3008_v27, 2  ;;  %v3018_v35 = vrot.slane %v5783_v48, 2  ;;  %v6936_v16 = vrot.slane %v5657_v61, 2 }
 0x1a2   :  { %3366 = vperm.xlu0 %4686, %v5792_v7   ;;  %v3065_v57 = vrot.slane %v3064_v17, 1  ;;  %v3081_v50 = vrot.slane %v3080_v19, 2  ;;  %v3027_v3 = vrot.slane %v5789_v63, 2  ;;  %v3097_v25 = vrot.slane %v3096_v32, 4 }
 0x1a3   :  { %v261_v15 = vpop.permute.xlu1 %260  ;;  %v2974_v13 = vmax.f32 %v5657_v61, %v6936_v16  ;;  %v3090_v5 = vrot.slane %v3089_v39, 2  ;;  %v3046_v62 = vmax.f32 %v5750_v26, %v3045_v22  ;;  %v2992_v45 = vmax.f32 %v5683_v56, %v2991_v28 }
 0x1a4   :  { %1375 = vperm.xlu1 %4687, %v5592_v0   ;;  %v3073_v0 = vmax.f32 %v3071_v49, %v3072_v10  ;;  %v5805_v55 = vmax.f32 %v3064_v17, %v3065_v57  ;;  %v5808_v9 = vmax.f32 %v3033_v59, %v3034_v51  ;;  %v3106_v61 = vrot.slane %v3105_v43, 4 }
 0x1a5   :  { %v3001_v60 = vmax.f32 %v2999_v14, %v3000_v2  ;;  %v493_v16 = vmul.f32 %v5080_v46, %v429_v20  ;;  %v330_v6 = vmul.f32 %v5067_v41, %v261_v15  ;;  %v2975_v10 = vrot.slane %v2974_v13, 1 }
 0x1a6   :  { %v3074_v12 = vrot.slane %v3073_v0, 1  ;;  %3370 = vperm.xlu0 %4686, %v5805_v55   ;;  %v3098_v56 = vmax.f32 %v3096_v32, %v3097_v25  ;;  %v3010_v28 = vmax.f32 %v3008_v27, %v3009_v1  ;;  %v3082_v22 = vmax.f32 %v3080_v19, %v3081_v50 }
 0x1a7   :  { %v3047_v17 = vrot.slane %v3046_v62, 1  ;;  %v2993_v14 = vrot.slane %v2992_v45, 1  ;;  %v3036_v20 = vrot.slane %v5808_v9, 2  ;;  %v3107_v15 = vmax.f32 %v3105_v43, %v3106_v61 }
 0x1a8   :  { %1385 = vperm.xlu1 %4687, %v5603_v44   ;;  %v433_v38 = vpop.permute.xlu1 %432  ;;  %v3075_v26 = vmax.f32 %v3073_v0, %v3074_v12  ;;  %v329_v44 = vmul.f32 %v5067_v41, %v5738_v24  ;;  %v3002_v2 = vrot.slane %v3001_v60, 1  ;;  %v3083_v51 = vrot.slane %v3082_v22, 1 }
 0x1a9   :  { %v494_v49 = vmul.f32 %v5080_v46, %v433_v38  ;;  %v5818_v32 = vmax.f32 %v2974_v13, %v2975_v10  ;;  %v3011_v1 = vrot.slane %v3010_v28, 1  ;;  %v3099_v24 = vrot.slane %v3098_v56, 2 }
 0x1aa   :  { %v525_v57 = vadd.f32 %v493_v16, %v329_v44  ;;  %3374 = vperm.xlu0 %4686, %v3075_v26   ;;  %v3019_v19 = vmax.f32 %v5783_v48, %v3018_v35  ;;  %v5823_v50 = vmax.f32 %v3046_v62, %v3047_v17  ;;  %v5825_v43 = vmax.f32 %v2992_v45, %v2993_v14 }
 0x1ab   :  { %v526_v59 = vadd.f32 %v494_v49, %v330_v6  ;;  %v3084_v6 = vmax.f32 %v3082_v22, %v3083_v51  ;;  %v3091_v25 = vmax.f32 %v3089_v39, %v3090_v5  ;;  %v5828_v13 = vmax.f32 %v3001_v60, %v3002_v2 }
 0x1ac   :  { %1445 = vperm.xlu1 %4687, %v5655_v37   ;;  %v3020_v61 = vrot.slane %v3019_v19, 1  ;;  %v3744_v12 = vsel %vm2967_vm1, %v5818_v32, -inf  ;;  %v5833_v48 = vmax.f32 %v3010_v28, %v3011_v1  ;;  %v3028_v39 = vmax.f32 %v5789_v63, %v3027_v3 }
 0x1ad   :  { %v722_v38 = vadd.f32 %v690_v31, %v526_v59  ;;  %v625_v58 = vpop.permute.xlu1 %624  ;;  %v3108_v31 = vrot.slane %v3107_v15, 2  ;;  %v3100_v5 = vmax.f32 %v3098_v56, %v3099_v24  ;;  %v3759_v60 = vsel %vm2967_vm1, %v5823_v50, -inf }
 0x1ae   :  { %v689_v27 = vmul.f32 %v5087_v52, %v625_v58  ;;  %3378 = vperm.xlu0 %4686, %v3084_v6   ;;  %v3760_v16 = vsel %vm2967_vm1, %v5792_v7, -inf  ;;  %v5845_v49 = vmax.f32 %v3019_v19, %v3020_v61  ;;  %v3029_v28 = vrot.slane %v3028_v39, 1 }
 0x1af   :  { %v918_v37 = vadd.f32 %v5639_v23, %v722_v38  ;;  %v3092_v23 = vrot.slane %v3091_v25, 1  ;;  %v3101_v22 = vrot.slane %v3100_v5, 1  ;;  %v3761_v63 = vsel %vm2967_vm1, %v5805_v55, -inf }
 0x1b0   :  { %v721_v0 = vadd.f32 %v689_v27, %v525_v57  ;;  %1455 = vperm.xlu1 %4687, %v5617_v30   ;;  %v3745_v30 = vsel %vm2967_vm1, %v5768_v29, -inf  ;;  %v3746_v29 = vsel %vm2967_vm1, %v5825_v43, -inf  ;;  %v3748_v3 = vsel %vm2967_vm1, %v5828_v13, -inf }
 0x1b1   :  { %v957_v58 = vadd.f32 %v5745_v18, %v918_v37  ;;  %v3763_v7 = vsel %vm2967_vm1, %v3075_v26, -inf  ;;  %v3747_v44 = vmax.f32 %v3744_v12, %v3746_v29  ;;  %v3762_v59 = vmax.f32 %v3759_v60, %v3761_v63  ;;  %v6937_v29 = vld [vmem:[#allocation26_spill] sm:$0xff] }
 0x1b2   :  { %v917_v35 = vadd.f32 %v5635_v42, %v721_v0  ;;  %v5836_v62 = vpop.permute.xlu1 %265  ;;  %v3093_v42 = vmax.f32 %v3091_v25, %v3092_v23  ;;  %v3749_v17 = vmax.f32 %v3745_v30, %v3748_v3  ;;  %v3764_v14 = vmax.f32 %v3760_v16, %v3763_v7 }
 0x1b3   :  { %v989_v45 = vmax.f32 %v957_v58, 0.0  ;;  %v3750_v2 = vsel %vm2967_vm1, %v5833_v48, -inf  ;;  %v3765_v51 = vsel %vm2967_vm1, %v3084_v6, -inf  ;;  %v3752_v55 = vsel %vm2967_vm1, %v5845_v49, -inf }
 0x1b4   :  { %v956_v10 = vadd.f32 %v5745_v18, %v917_v35  ;;  %1395 = vperm.xlu1 %4687, %v5688_v11   ;;  %3382 = vperm.xlu0 %4686, %v3093_v42   ;;  %v3767_v26 = vsel %vm2967_vm1, %v3093_v42, -inf  ;;  %v5864_v57 = vmax.f32 %v3028_v39, %v3029_v28  ;;  %v3102_v38 = vmax.f32 %v3100_v5, %v3101_v22 }
 0x1b5   :  { %v3037_v1 = vmax.f32 %v5808_v9, %v3036_v20  ;;  %v3109_v27 = vmax.f32 %v3107_v15, %v3108_v31  ;;  %v3766_v24 = vmax.f32 %v3762_v59, %v3765_v51  ;;  %v3768_v19 = vmax.f32 %v3764_v14, %v3767_v26  ;;  %v637_v20 = vpop.permute.xlu0 %636 }
 0x1b6   :  { %v988_v56 = vmax.f32 %v956_v10, 0.0  ;;  %v3769_v6 = vsel %vm2967_vm1, %v3102_v38, -inf  ;;  %v3751_v37 = vmax.f32 %v3747_v44, %v3750_v2  ;;  %v3753_v25 = vmax.f32 %v3749_v17, %v3752_v55  ;;  %v6938_v17 = vld [vmem:[#allocation24_spill] sm:$0xff] }
 0x1b7   :  { %v437_v11 = vpop.permute.xlu1 %436  ;;  %v3110_v0 = vrot.slane %v3109_v27, 1  ;;  %v3770_v61 = vmax.f32 %v3766_v24, %v3769_v6  ;;  %v3754_v58 = vsel %vm2967_vm1, %v5864_v57, -inf  ;;  %v888_v63 = vmul.f32 %v5089_v53, %v6937_v29 }
 0x1b8   :  { %1465 = vperm.xlu1 %4687, %v5631_v4   ;;  %4297 = vmatprep.mubr.msk.f32.mxu0 %vm1009_vm0, %v988_v56  ;;  %v3038_v4 = vrot.slane %v3037_v1, 1  ;;  %v3755_v23 = vmax.f32 %v3751_v37, %v3754_v58  ;;  %v495_v42 = vmul.f32 %v5080_v46, %v437_v11  ;;  %v6940_v37 = vld [vmem:[#allocation9_spill] sm:$0xff] }
 0x1b9   :  { %4298 = vmatmul.mubr.msk.f32.gmra.mrb[22].mxu0 %vm1009_vm0, %v989_v45  ;;  %3386 = vperm.xlu0 %4686, %v3102_v38   ;;  %v3111_v9 = vmax.f32 %v3109_v27, %v3110_v0  ;;  %v692_v45 = vmul.f32 %v5087_v52, %v637_v20  ;;  %v645_v27 = vpop.permute.xlu0 %644  ;;  %v6941_v0 = vld [vmem:[#allocation30_spill] sm:$0xff]  ;;  %v6942_v20 = vld [vmem:[#allocation28_spill] sm:$0xff] }
 0x1ba   :  { %v5872_v35 = vmax.f32 %v3037_v1, %v3038_v4  ;;  %v6939_v1 = vld [vmem:[#allocation11_spill] sm:$0xff] }
 0x1bb   :  { %v3771_v15 = vsel %vm2967_vm1, %v3111_v9, -inf }
 0x1bc   :  { %1405 = vperm.xlu1 %4687, %v5697_v54   ;;  %v271_v12 = vpop.permute.xlu1 %270  ;;  %v3756_v31 = vsel %vm2967_vm1, %v5872_v35, -inf  ;;  %v3772_v30 = vmax.f32 %v3768_v19, %v3771_v15  ;;  %v889_v15 = vmul.f32 %v5089_v53, %v6942_v20 }
 0x1bd   :  { %3390 = vperm.xlu0 %4686, %v3111_v9   ;;  %v3757_v39 = vmax.f32 %v3753_v25, %v3756_v31  ;;  %v332_v54 = vmul.f32 %v5067_v41, %v271_v12 }
 0x1be   :  { %v5881_v16 = vmax.f32 %v3770_v61, %v3772_v30 }
 0x1bf   :  { %v3758_v10 = vmax.f32 %v3755_v23, %v3757_v39 }
 0x1c0   :  { %1475 = vperm.xlu1 %4687, %v5675_v47   ;;  %v331_v47 = vmul.f32 %v5067_v41, %v5836_v62  ;;  %vm3775_vm3 = vcmp.gt.f32.partialorder %v5881_v16, 0.0 }
 0x1c1   :  { %v441_v5 = vpop.permute.xlu1 %440  ;;  %vm3774_vm2 = vcmp.gt.f32.partialorder %v3758_v10, 0.0 }
 0x1c2   :  { %v496_v60 = vmul.f32 %v5080_v46, %v441_v5  ;;  %v3947_v22 = vsel %vm3774_vm2, 1, %v6894_v36  ;;  %v527_v56 = vadd.f32 %v495_v42, %v331_v47 }
 0x1c3   :  { %3950 = vperm.xlu0 %4686, %v3947_v22   ;;  %v653_v22 = vpop.permute.xlu0 %652 }
 0x1c4   :  { %v528_v28 = vadd.f32 %v496_v60, %v332_v54  ;;  %1415 = vperm.xlu1 %4687, %v5705_v33   ;;  %v887_v33 = vmul.f32 %v5089_v53, %v6938_v17 }
 0x1c6   :  { %v724_v3 = vadd.f32 %v692_v45, %v528_v28  ;;  %v633_v7 = vpop.permute.xlu1 %632 }
 0x1c7   :  { %v691_v44 = vmul.f32 %v5087_v52, %v633_v7  ;;  %v661_v16 = vpop.permute.xlu0 %660 }
 0x1c8   :  { %v920_v59 = vadd.f32 %v888_v63, %v724_v3  ;;  %1485 = vperm.xlu1 %4687, %v5713_v40  }
 0x1c9   :  { %v723_v11 = vadd.f32 %v691_v44, %v527_v56  ;;  %v6943_v56 = vld [vmem:[#allocation33_spill] sm:$0xff] }
 0x1ca   :  { %v959_v2 = vadd.f32 %v5745_v18, %v920_v59  ;;  %v892_v44 = vmul.f32 %v5089_v53, %v6943_v56 }
 0x1cb   :  { %v919_v14 = vadd.f32 %v887_v33, %v723_v11  ;;  %v276_v62 = vpop.permute.xlu1 %275 }
 0x1cc   :  { %1425 = vperm.xlu1 %4687, %v5718_v34   ;;  %v991_v26 = vmax.f32 %v959_v2, 0.0  ;;  %v694_v34 = vmul.f32 %v5087_v52, %v645_v27  ;;  %v333_v4 = vmul.f32 %v5067_v41, %v276_v62  ;;  %v6944_v2 = vld [vmem:[#allocation32_spill] sm:$0xff] }
 0x1cd   :  { %v958_v51 = vadd.f32 %v5745_v18, %v919_v14 }
 0x1cf   :  { %v990_v55 = vmax.f32 %v958_v51, 0.0  ;;  %v891_v51 = vmul.f32 %v5089_v53, %v6944_v2  ;;  %v6010_v2 = vld [vmem:[%s6955_s1] ss:$0 sm:$0xff] }
 0x1d0   :  { %1495 = vperm.xlu1 %4687, %v5728_v21   ;;  %v445_v38 = vpop.permute.xlu1 %444 }
 0x1d1   :  { %4300 = vmatprep.mubr.msk.f32.mxu0 %vm1009_vm0, %v990_v55  ;;  %v497_v21 = vmul.f32 %v5080_v46, %v445_v38 }
 0x1d2   :  { %4301 = vmatmul.mubr.msk.f32.gmra.mrb[24].mxu0 %vm1009_vm0, %v991_v26 }
 0x1d3   :  { %v529_v12 = vadd.f32 %v497_v21, %v333_v4 }
 0x1d4   :  { %1435 = vperm.xlu1 %4687, %v5759_v8   ;;  %v890_v8 = vmul.f32 %v5089_v53, %v6941_v0 }
 0x1d5   :  { %v281_v40 = vpop.permute.xlu1 %280 }
 0x1d6   :  { %v334_v19 = vmul.f32 %v5067_v41, %v281_v40 }
 0x1d8   :  { %1505 = vperm.xlu1 %4687, %v6939_v1  }
 0x1da   :  { %v449_v24 = vpop.permute.xlu1 %448 }
 0x1db   :  { %v498_v6 = vmul.f32 %v5080_v46, %v449_v24 }
 0x1dc   :  { %1515 = vperm.xlu1 %4687, %v6940_v37   ;;  %v5959_v37 = vpop.permute.xlu0 %1365 }
 0x1dd   :  { %v530_v25 = vadd.f32 %v498_v6, %v334_v19 }
 0x1df   :  { %v726_v61 = vadd.f32 %v694_v34, %v530_v25  ;;  %v641_v58 = vpop.permute.xlu1 %640 }
 0x1e0   :  { %v693_v23 = vmul.f32 %v5087_v52, %v641_v58  ;;  %3330 = vperm.xlu1 %4687, %v5818_v32   ;;  %v5963_v0 = vpop.permute.xlu0 %1380 }
 0x1e1   :  { %v922_v9 = vadd.f32 %v890_v8, %v726_v61 }
 0x1e2   :  { %v725_v31 = vadd.f32 %v693_v23, %v529_v12 }
 0x1e3   :  { %v961_v5 = vadd.f32 %v5745_v18, %v922_v9 }
 0x1e4   :  { %v921_v30 = vadd.f32 %v889_v15, %v725_v31  ;;  %v286_v39 = vpop.permute.xlu1 %285  ;;  %3362 = vperm.xlu1 %4687, %v5823_v50   ;;  %v5969_v12 = vpop.permute.xlu0 %1390 }
 0x1e5   :  { %v993_v10 = vmax.f32 %v961_v5, 0.0  ;;  %v335_v7 = vmul.f32 %v5067_v41, %v286_v39  ;;  %6945 = vst [vmem:[#allocation5_spill] sm:$0xff] %v5969_v12 }
 0x1e6   :  { %v960_v45 = vadd.f32 %v5745_v18, %v921_v30 }
 0x1e8   :  { %v992_v54 = vmax.f32 %v960_v45, 0.0  ;;  %3338 = vperm.xlu1 %4687, %v5825_v43   ;;  %v5976_v45 = vpop.permute.xlu0 %1450 }
 0x1e9   :  { %v453_v60 = vpop.permute.xlu1 %452  ;;  %6946 = vst [vmem:[#allocation7_spill] sm:$0xff] %v5976_v45 }
 0x1ea   :  { %4303 = vmatprep.mubr.msk.f32.mxu0 %vm1009_vm0, %v992_v54  ;;  %v499_v29 = vmul.f32 %v5080_v46, %v453_v60 }
 0x1eb   :  { %4304 = vmatmul.mubr.msk.f32.gmra.mrb[26].mxu0 %vm1009_vm0, %v993_v10 }
 0x1ec   :  { %3342 = vperm.xlu1 %4687, %v5828_v13   ;;  %v696_v13 = vmul.f32 %v5087_v52, %v653_v22 }
 0x1ee   :  { %v291_v32 = vpop.permute.xlu1 %290 }
 0x1ef   :  { %v336_v47 = vmul.f32 %v5067_v41, %v291_v32  ;;  %v698_v32 = vmul.f32 %v5087_v52, %v661_v16 }
 0x1f0   :  { %3346 = vperm.xlu1 %4687, %v5833_v48  }
 0x1f1   :  { %v5922_v42 = vpop.f32.mrb[0].mxu0 }
 0x1f2   :  { %v5924_v50 = vpop.f32.mrb[1].mxu0  ;;  %v1178_v16 = vadd.f32 %v5922_v42, %v6010_v2 }
 0x1f3   :  { %v457_v28 = vpop.permute.xlu1 %456 }
 0x1f4   :  { %v500_v43 = vmul.f32 %v5080_v46, %v457_v28  ;;  %3350 = vperm.xlu1 %4687, %v5845_v49   ;;  %v531_v49 = vadd.f32 %v499_v29, %v335_v7  ;;  %v5982_v29 = vpop.permute.xlu0 %1460 }
 0x1f5   :  { %v5930_v63 = vpop.f32.mrb[2].mxu0  ;;  %6947 = vst [vmem:[#allocation14_spill] sm:$0xff] %v5982_v29 }
 0x1f6   :  { %v532_v3 = vadd.f32 %v500_v43, %v336_v47  ;;  %v5933_v48 = vpop.f32.mrb[3].mxu0 }
 0x1f8   :  { %v728_v59 = vadd.f32 %v696_v13, %v532_v3  ;;  %v649_v17 = vpop.permute.xlu1 %648  ;;  %3354 = vperm.xlu1 %4687, %v5864_v57   ;;  %v3948_v57 = vsel %vm3775_vm3, 1, %v6894_v36 }
 0x1f9   :  { %v695_v33 = vmul.f32 %v5087_v52, %v649_v17  ;;  %v5940_v11 = vpop.f32.mrb[4].mxu0 }
 0x1fa   :  { %v924_v14 = vadd.f32 %v892_v44, %v728_v59  ;;  %v5942_v62 = vpop.f32.mrb[5].mxu0  ;;  %v5988_v44 = vpop.permute.xlu0 %1400 }
 0x1fb   :  { %v727_v55 = vadd.f32 %v695_v33, %v531_v49  ;;  %6948 = vst [vmem:[#allocation12_spill] sm:$0xff] %v5988_v44 }
 0x1fc   :  { %3358 = vperm.xlu1 %4687, %v5872_v35   ;;  %v963_v27 = vadd.f32 %v5745_v18, %v924_v14 }
 0x1fd   :  { %v923_v26 = vadd.f32 %v891_v51, %v727_v55  ;;  %v296_v38 = vpop.permute.xlu1 %295  ;;  %v5948_v40 = vpop.f32.mrb[6].mxu0  ;;  %v1173_v55 = vadd.f32 %v6010_v2, %v5924_v50  ;;  %v1193_v50 = vadd.f32 %v6010_v2, %v5942_v62 }
 0x1fe   :  { %v5951_v1 = vpop.f32.mrb[7].mxu0  ;;  %v995_v35 = vmax.f32 %v963_v27, 0.0  ;;  %v337_v20 = vmul.f32 %v5067_v41, %v296_v38  ;;  %v5997_v17 = vpop.permute.xlu0 %1470  ;;  %v1198_v38 = vadd.f32 %v5940_v11, %v6010_v2  ;;  %v1208_v27 = vadd.f32 %v5948_v40, %v6010_v2 }
 0x1ff   :  { %v962_v24 = vadd.f32 %v5745_v18, %v923_v26  ;;  %6951 = vst [vmem:[#allocation17_spill] sm:$0xff] %v5997_v17  ;;  %v1188_v26 = vadd.f32 %v5930_v63, %v6010_v2  ;;  %v1331_v11 = vmax.f32 %v1173_v55, 0.0  ;;  %v1203_v40 = vadd.f32 %v6010_v2, %v5951_v1 }
 0x200   :  { %3953 = vperm.xlu1 %4687, %v3948_v57   ;;  %v1183_v57 = vadd.f32 %v6010_v2, %v5933_v48  ;;  %v1336_v48 = vmax.f32 %v1198_v38, 0.0 }
 0x201   :  { %v994_v34 = vmax.f32 %v962_v24, 0.0  ;;  %v4278_v19 = vpop.f32.mrb[8].mxu0 }
 0x202   :  { %v461_v6 = vpop.permute.xlu1 %460  ;;  %v5955_v21 = vpop.f32.mrb[9].mxu0 }
 0x203   :  { %4306 = vmatprep.mubr.msk.f32.mxu0 %vm1009_vm0, %v994_v34  ;;  %v501_v23 = vmul.f32 %v5080_v46, %v461_v6  ;;  %v6003_v33 = vpop.permute.xlu0 %1410  ;;  %v1218_v34 = vadd.f32 %v4278_v19, %v6010_v2  ;;  %v1213_v42 = vadd.f32 %v6010_v2, %v5955_v21  ;;  %v1337_v21 = vmax.f32 %v1203_v40, 0.0 }
 0x204   :  { %4307 = vmatmul.mubr.msk.f32.gmra.mrb[28].mxu0 %vm1009_vm0, %v995_v35  ;;  %6953 = vst [vmem:[#allocation16_spill] sm:$0xff] %v6003_v33  ;;  %v1334_v35 = vmax.f32 %v1188_v26, 0.0 }
 0x205   :  { %v4281_v36 = vpop.f32.mrb[10].mxu0  ;;  %v533_v30 = vadd.f32 %v501_v23, %v337_v20  ;;  %v1332_v23 = vmax.f32 %v1178_v16, 0.0  ;;  %v1340_v62 = vmax.f32 %v1218_v34, 0.0 }
 0x206   :  { %v5961_v25 = vpop.f32.mrb[11].mxu0  ;;  %v1228_v63 = vadd.f32 %v4281_v36, %v6010_v2  ;;  %v6049_v1 = vmul.f32 %v5963_v0, %v1334_v35 }
 0x207   :  { %v301_v4 = vpop.permute.xlu1 %300  ;;  %v6024_v24 = vpop.permute.xlu0 %1480 }
 0x208   :  { %v338_v39 = vmul.f32 %v5067_v41, %v301_v4  ;;  %6957 = vst [vmem:[#allocation21_spill] sm:$0xff] %v6024_v24  ;;  %v1333_v4 = vmax.f32 %v1183_v57, 0.0  ;;  %v1342_v20 = vmax.f32 %v1228_v63, 0.0 }
 0x20b   :  { %v6038_v19 = vpop.permute.xlu0 %1420 }
 0x20c   :  { %v465_v8 = vpop.permute.xlu1 %464  ;;  %6959 = vst [vmem:[#allocation22_spill] sm:$0xff] %v6038_v19 }
 0x20d   :  { %v502_v15 = vmul.f32 %v5080_v46, %v465_v8  ;;  %v1338_v8 = vmax.f32 %v1208_v27, 0.0 }
 0x20f   :  { %v5965_v61 = vpop.f32.mrb[12].mxu0  ;;  %v534_v54 = vadd.f32 %v502_v15, %v338_v39  ;;  %v6055_v39 = vmul.f32 %v5988_v44, %v1338_v8 }
 0x210   :  { %v5967_v58 = vpop.f32.mrb[13].mxu0  ;;  %v1238_v55 = vadd.f32 %v5965_v61, %v6010_v2 }
 0x211   :  { %v657_v9 = vpop.permute.xlu1 %656  ;;  %v730_v22 = vadd.f32 %v698_v32, %v534_v54 }
 0x212   :  { %v697_v31 = vmul.f32 %v5087_v52, %v657_v9  ;;  %v1335_v9 = vmax.f32 %v1193_v50, 0.0 }
 0x214   :  { %v729_v60 = vadd.f32 %v697_v31, %v533_v30  ;;  %v6046_v31 = vmul.f32 %v5959_v37, %v1331_v11  ;;  %v6052_v30 = vmul.f32 %v5969_v12, %v1336_v48 }
 0x216   :  { %v853_v5 = vpop.permute.xlu1 %852 }
 0x217   :  { %v893_v10 = vmul.f32 %v5089_v53, %v853_v5  ;;  %v1339_v5 = vmax.f32 %v1213_v42, 0.0 }
 0x219   :  { %v925_v28 = vadd.f32 %v893_v10, %v729_v60  ;;  %v1223_v10 = vadd.f32 %v6010_v2, %v5961_v25  ;;  %v1555_v25 = vsel %vm1009_vm0, %v6046_v31, -inf }
 0x21a   :  { %v857_v47 = vpop.permute.xlu1 %856 }
 0x21b   :  { %v964_v43 = vadd.f32 %v5745_v18, %v925_v28  ;;  %v894_v46 = vmul.f32 %v5089_v53, %v857_v47  ;;  %v6069_v28 = vmul.f32 %v6003_v33, %v1340_v62  ;;  %v6072_v47 = vmul.f32 %v6038_v19, %v1342_v20 }
 0x21c   :  { %v1341_v27 = vmax.f32 %v1223_v10, 0.0  ;;  %v1233_v62 = vadd.f32 %v6010_v2, %v5967_v58 }
 0x21d   :  { %v996_v13 = vmax.f32 %v964_v43, 0.0  ;;  %v926_v41 = vadd.f32 %v894_v46, %v730_v22  ;;  %v6074_v43 = vpop.permute.xlu0 %1490  ;;  %v1592_v11 = vsel %vm1009_vm0, %v6069_v28, -inf  ;;  %v1601_v61 = vsel %vm1009_vm0, %v6072_v47, -inf }
 0x21e   :  { %6961 = vst [vmem:[#allocation23_spill] sm:$0xff] %v6074_v43 }
 0x21f   :  { %v965_v3 = vadd.f32 %v5745_v18, %v926_v41  ;;  %v5985_v7 = vpop.permute.xlu1 %1370  ;;  %4309 = vmatprep.mubr.msk.f32.mxu0 %vm1009_vm0, %v996_v13  ;;  %v1565_v41 = vsel %vm1009_vm0, %v6049_v1, -inf }
 0x220   :  { %v6058_v54 = vmul.f32 %v5985_v7, %v1332_v23 }
 0x221   :  { %v997_v56 = vmax.f32 %v965_v3, 0.0  ;;  %v1574_v3 = vsel %vm1009_vm0, %v6052_v30, -inf  ;;  %v6114_v20 = vpop.permute.xlu0 %1430 }
 0x222   :  { %v1556_v26 = vsel %vm1009_vm0, %v6058_v54, -inf  ;;  %6964 = vst [vmem:[#allocation31_spill] sm:$0xff] %v6114_v20 }
 0x223   :  { %v5990_v52 = vpop.permute.xlu1 %1375  ;;  %4310 = vmatmul.mubr.msk.f32.gmra.mrb[30].mxu0 %vm1009_vm0, %v997_v56  ;;  %v1583_v56 = vsel %vm1009_vm0, %v6055_v39, -inf }
 0x224   :  { %6949 = vst [vmem:[#allocation13_spill] sm:$0xff] %v5990_v52  ;;  %v6041_v36 = vmul.f32 %v5990_v52, %v1333_v4  ;;  %v1557_v4 = vmax.f32 %v1555_v25, %v1556_v26 }
 0x226   :  { %v1564_v22 = vsel %vm1009_vm0, %v6041_v36, -inf }
 0x227   :  { %v5993_v59 = vpop.permute.xlu1 %1385  ;;  %v1566_v16 = vmax.f32 %v1564_v22, %v1565_v41 }
 0x228   :  { %6950 = vst [vmem:[#allocation15_spill] sm:$0xff] %v5993_v59  ;;  %v5995_v53 = vpop.f32.mrb[14].mxu0  ;;  %v6061_v60 = vmul.f32 %v5993_v59, %v1335_v9  ;;  %v1344_v9 = vmax.f32 %v1238_v55, 0.0 }
 0x229   :  { %v5999_v49 = vpop.f32.mrb[15].mxu0  ;;  %v1567_v10 = vrot.slane %v1566_v16, 4 }
 0x22a   :  { %v1573_v38 = vsel %vm1009_vm0, %v6061_v60, -inf }
 0x22b   :  { %v6001_v18 = vpop.permute.xlu1 %1445  ;;  %v1575_v8 = vmax.f32 %v1573_v38, %v1574_v3  ;;  %v1558_v38 = vrot.slane %v1557_v4, 4 }
 0x22c   :  { %6952 = vst [vmem:[#allocation10_spill] sm:$0xff] %v6001_v18 }
 0x22d   :  { %v1576_v58 = vrot.slane %v1575_v8, 4 }
 0x22f   :  { %v6005_v14 = vpop.permute.xlu1 %1455 }
 0x230   :  { %6954 = vst [vmem:[#allocation18_spill] sm:$0xff] %v6005_v14 }
 0x233   :  { %v6012_v51 = vpop.permute.xlu1 %1395 }
 0x234   :  { %6956 = vst [vmem:[#allocation19_spill] sm:$0xff] %v6012_v51  ;;  %v6066_v32 = vmul.f32 %v6012_v51, %v1337_v21 }
 0x236   :  { %v1582_v50 = vsel %vm1009_vm0, %v6066_v32, -inf }
 0x237   :  { %v6032_v6 = vpop.permute.xlu1 %1465  ;;  %v1584_v21 = vmax.f32 %v1582_v50, %v1583_v56  ;;  %v6131_v50 = vpop.permute.xlu0 %1500 }
 0x238   :  { %6958 = vst [vmem:[#allocation20_spill] sm:$0xff] %v6032_v6  ;;  %6966 = vst [vmem:[#allocation24_spill] sm:$0xff] %v6131_v50 }
 0x23b   :  { %v6043_v15 = vpop.permute.xlu1 %1405 }
 0x23c   :  { %6960 = vst [vmem:[#allocation25_spill] sm:$0xff] %v6043_v15  ;;  %v6079_v46 = vmul.f32 %v6043_v15, %v1339_v5 }
 0x23e   :  { %v1591_v35 = vsel %vm1009_vm0, %v6079_v46, -inf }
 0x23f   :  { %v6081_v13 = vpop.permute.xlu1 %1475  ;;  %v1593_v22 = vmax.f32 %v1591_v35, %v1592_v11  ;;  %v1568_v11 = vmax.f32 %v1566_v16, %v1567_v10  ;;  %v1243_v16 = vadd.f32 %v6010_v2, %v5999_v49 }
 0x240   :  { %6962 = vst [vmem:[#allocation27_spill] sm:$0xff] %v6081_v13 }
 0x241   :  { %v4290_v57 = vpop.f32.mrb[16].mxu0  ;;  %v1594_v35 = vrot.slane %v1593_v22, 4  ;;  %v1345_v15 = vmax.f32 %v1243_v16, 0.0 }
 0x242   :  { %v1258_v34 = vadd.f32 %v4290_v57, %v6010_v2  ;;  %v1252_v63 = vpop.f32.mrb[17].mxu0  ;;  %v1343_v57 = vmax.f32 %v1233_v62, 0.0  ;;  %v1559_v62 = vmax.f32 %v1557_v4, %v1558_v38 }
 0x243   :  { %v1253_v48 = vadd.f32 %v6010_v2, %v1252_v63  ;;  %v6107_v40 = vpop.permute.xlu1 %1415 }
 0x244   :  { %6963 = vst [vmem:[#allocation29_spill] sm:$0xff] %v6107_v40  ;;  %v1348_v42 = vmax.f32 %v1258_v34, 0.0  ;;  %v6110_v23 = vmul.f32 %v6107_v40, %v1341_v27  ;;  %v6129_v27 = vmul.f32 %v6114_v20, %v1344_v9  ;;  %v1585_v34 = vrot.slane %v1584_v21, 4 }
 0x245   :  { %v1347_v5 = vmax.f32 %v1253_v48, 0.0  ;;  %v1595_v20 = vmax.f32 %v1593_v22, %v1594_v35 }
 0x246   :  { %v6117_v41 = vmul.f32 %v5976_v45, %v1348_v42  ;;  %v1600_v25 = vsel %vm1009_vm0, %v6110_v23, -inf  ;;  %v1586_v10 = vmax.f32 %v1584_v21, %v1585_v34  ;;  %v1569_v45 = vrot.slane %v1568_v11, 2 }
 0x247   :  { %v6122_v3 = vmul.f32 %v6001_v18, %v1347_v5  ;;  %v1602_v26 = vmax.f32 %v1600_v25, %v1601_v61  ;;  %v6124_v55 = vpop.permute.xlu1 %1485  ;;  %v1248_v61 = vadd.f32 %v5995_v53, %v6010_v2  ;;  %v1577_v25 = vmax.f32 %v1575_v8, %v1576_v58 }
 0x248   :  { %6965 = vst [vmem:[#allocation26_spill] sm:$0xff] %v6124_v55  ;;  %v1628_v56 = vsel %vm1009_vm0, %v6117_v41, -inf  ;;  %v1610_v18 = vsel %vm1009_vm0, %v6129_v27, -inf  ;;  %v1560_v58 = vrot.slane %v1559_v62, 2  ;;  %v1570_v19 = vmax.f32 %v1568_v11, %v1569_v45 }
 0x249   :  { %v1627_v63 = vsel %vm1009_vm0, %v6122_v3, -inf  ;;  %v1603_v42 = vrot.slane %v1602_v26, 4  ;;  %v1346_v53 = vmax.f32 %v1248_v61, 0.0  ;;  %v1596_v21 = vrot.slane %v1595_v20, 2 }
 0x24a   :  { %v6137_v48 = vmax.f32 %v1627_v63, %v1628_v56  ;;  %v6150_v63 = vpop.permute.xlu0 %1440  ;;  %v1561_v35 = vmax.f32 %v1559_v62, %v1560_v58 }
 0x24b   :  { %v6139_v5 = vpop.permute.xlu1 %1425  ;;  %6968 = vst [vmem:[#allocation9_spill] sm:$0xff] %v6150_v63  ;;  %v1604_v4 = vmax.f32 %v1602_v26, %v1603_v42  ;;  %v6155_v49 = vmul.f32 %v6150_v63, %v1346_v53  ;;  %v1597_v11 = vmax.f32 %v1595_v20, %v1596_v21 }
 0x24c   :  { %6967 = vst [vmem:[#allocation11_spill] sm:$0xff] %v6139_v5  ;;  %v6142_v9 = vmul.f32 %v6139_v5, %v1343_v57  ;;  %v1578_v57 = vrot.slane %v1577_v25, 2  ;;  %v1587_v5 = vrot.slane %v1586_v10, 2 }
 0x24d   :  { %v1605_v22 = vrot.slane %v1604_v4, 2  ;;  %v1619_v45 = vsel %vm1009_vm0, %v6155_v49, -inf }
 0x24e   :  { %v1609_v56 = vsel %vm1009_vm0, %v6142_v9, -inf  ;;  %v1579_v33 = vmax.f32 %v1577_v25, %v1578_v57  ;;  %v1588_v26 = vmax.f32 %v1586_v10, %v1587_v5  ;;  %v1630_v5 = vrot.slane %v6137_v48, 4 }
 0x24f   :  { %v1611_v8 = vmax.f32 %v1609_v56, %v1610_v18  ;;  %v6152_v38 = vpop.permute.xlu1 %1495  ;;  %v1571_v56 = vrot.slane %v1570_v19, 1  ;;  %v1606_v53 = vmax.f32 %v1604_v4, %v1605_v22 }
 0x250   :  { %6969 = vst [vmem:[#allocation30_spill] sm:$0xff] %v6152_v38  ;;  %v1589_v62 = vrot.slane %v1588_v26, 1  ;;  %v1631_v12 = vmax.f32 %v6137_v48, %v1630_v5 }
 0x251   :  { %v1612_v40 = vrot.slane %v1611_v8, 4  ;;  %v1572_v58 = vmax.f32 %v1570_v19, %v1571_v56  ;;  %v1607_v10 = vrot.slane %v1606_v53, 1 }
 0x253   :  { %v1613_v34 = vmax.f32 %v1611_v8, %v1612_v40  ;;  %v6157_v61 = vpop.permute.xlu1 %1435  ;;  %v1562_v40 = vrot.slane %v1561_v35, 1  ;;  %v1580_v8 = vrot.slane %v1579_v33, 1 }
 0x254   :  { %6970 = vst [vmem:[#allocation28_spill] sm:$0xff] %v6157_v61  ;;  %v6160_v18 = vmul.f32 %v6157_v61, %v1345_v15  ;;  %v1598_v15 = vrot.slane %v1597_v11, 1 }
 0x255   :  { %v1614_v42 = vrot.slane %v1613_v34, 2  ;;  %v1563_v44 = vmax.f32 %v1561_v35, %v1562_v40  ;;  %v1581_v4 = vmax.f32 %v1579_v33, %v1580_v8 }
 0x256   :  { %v1618_v16 = vsel %vm1009_vm0, %v6160_v18, -inf  ;;  %v1599_v19 = vmax.f32 %v1597_v11, %v1598_v15 }
 0x257   :  { %v1620_v63 = vmax.f32 %v1618_v16, %v1619_v45  ;;  %v1615_v51 = vmax.f32 %v1613_v34, %v1614_v42  ;;  %v1590_v34 = vmax.f32 %v1588_v26, %v1589_v62  ;;  %v1720_v59 = vsel %vm1719_vm4, %v1572_v58, %v1563_v44 }
 0x258   :  { %v1722_v26 = vsel %vm1721_vm5, %v1581_v4, %v1720_v59 }
 0x259   :  { %v1621_v25 = vrot.slane %v1620_v63, 4  ;;  %v1616_v45 = vrot.slane %v1615_v51, 1  ;;  %v1724_v44 = vsel %vm1723_vm6, %v1590_v34, %v1722_v26  ;;  %v1819_v26 = vld [vmem:[%s6972_s8] sm:$0xff] }
 0x25a   :  { %v4293_v57 = vpop.f32.mrb[18].mxu0 }
 0x25b   :  { %v1622_v61 = vmax.f32 %v1620_v63, %v1621_v25  ;;  %v1268_v20 = vadd.f32 %v4293_v57, %v6010_v2  ;;  %v1262_v21 = vpop.f32.mrb[19].mxu0  ;;  %v1608_v25 = vmax.f32 %v1606_v53, %v1607_v10  ;;  %v1617_v40 = vmax.f32 %v1615_v51, %v1616_v45 }
 0x25c   :  { %v1263_v22 = vadd.f32 %v6010_v2, %v1262_v21  ;;  %v1726_v53 = vsel %vm1725_vm7, %v1599_v19, %v1724_v44 }
 0x25d   :  { %v1623_v42 = vrot.slane %v1622_v61, 2  ;;  %v1350_v16 = vmax.f32 %v1268_v20, 0.0  ;;  %v1728_v51 = vsel %vm1727_vm8, %v1608_v25, %v1726_v53 }
 0x25e   :  { %v1349_v56 = vmax.f32 %v1263_v22, 0.0  ;;  %v1730_v59 = vsel %vm1729_vm9, %v1617_v40, %v1728_v51  ;;  %v1702_v40 = vld [vmem:[%s6971_s26 + $0x18] sm:$0xff] }
 0x25f   :  { %v6172_v63 = vmul.f32 %v5982_v29, %v1350_v16  ;;  %v1624_v35 = vmax.f32 %v1622_v61, %v1623_v42  ;;  %v1632_v61 = vrot.slane %v1631_v12, 2 }
 0x260   :  { %v6175_v33 = vmul.f32 %v6005_v14, %v1349_v56  ;;  %v1699_v56 = vld [vmem:[%s6971_s26] sm:$0xff] }
 0x261   :  { %v1637_v11 = vsel %vm1009_vm0, %v6172_v63, -inf  ;;  %v1625_v8 = vrot.slane %v1624_v35, 1  ;;  %v1633_v5 = vmax.f32 %v1631_v12, %v1632_v61  ;;  %v1700_v12 = vld [vmem:[%s6971_s26 + $0x8] sm:$0xff] }
 0x262   :  { %v1636_v48 = vsel %vm1009_vm0, %v6175_v33, -inf  ;;  %v4520_v25 = vpack.c.bf16 %v1700_v12, %v1699_v56 }
 0x263   :  { %v1638_v62 = vmax.f32 %v1636_v48, %v1637_v11  ;;  %v1626_v58 = vmax.f32 %v1624_v35, %v1625_v8  ;;  %v1634_v21 = vrot.slane %v1633_v5, 1  ;;  %v1701_v35 = vld [vmem:[%s6971_s26 + $0x10] sm:$0xff]  ;;  %v1820_v8 = vld [vmem:[%s6972_s8 + $0x8] sm:$0xff] }
 0x264   :  { %4521 = vmatprep.subr.bf16.mxu1 %v4520_v25  ;;  %v4524_v11 = vpack.c.bf16 %v1702_v40, %v1701_v35  ;;  %v6209_v44 = vpack.c.bf16 %v1820_v8, %v1819_v26 }
 0x265   :  { %v1639_v15 = vrot.slane %v1638_v62, 4  ;;  %v1732_v57 = vsel %vm1731_vm10, %v1626_v58, %v1730_v59  ;;  %v1635_v45 = vmax.f32 %v1633_v5, %v1634_v21  ;;  %4523 = vmatpush3.bf16.msra.mxu1 %v4520_v25  ;;  %v2427_v59 = vld [vmem:[%s6787_s9] sm:$0xff] }
 0x266   :  { %4320 = vmatprep.mubr.msk.f32.mxu1 %vm1009_vm0, %v1732_v57  ;;  %4525 = vmatprep.subr.bf16.mxu1 %v4524_v11  ;;  %v2429_v57 = vld [vmem:[%s6787_s9 + $0x10] sm:$0xff] }
 0x267   :  { %v1640_v10 = vmax.f32 %v1638_v62, %v1639_v15  ;;  %v2428_v15 = vld [vmem:[%s6787_s9 + $0x8] sm:$0xff] }
 0x268   :  { %v4536_v5 = vpack.c.bf16 %v2428_v15, %v2427_v59 }
 0x269   :  { %v1641_v20 = vrot.slane %v1640_v10, 2  ;;  %4527 = vmatpush3.bf16.msra.mxu1 %v4524_v11 }
 0x26a   :  { %4529 = vmatprep.subr.bf16.mxu1 %v6209_v44  ;;  %4537 = vmatprep.subr.bf16.mxu0 %v4536_v5 }
 0x26b   :  { %v1642_v4 = vmax.f32 %v1640_v10, %v1641_v20  ;;  %v2430_v10 = vld [vmem:[%s6787_s9 + $0x18] sm:$0xff]  ;;  %4539 = vmatpush3.bf16.msra.mxu0 %v4536_v5 }
 0x26c   :  { %v4540_v20 = vpack.c.bf16 %v2430_v10, %v2429_v57 }
 0x26d   :  { %v1643_v22 = vrot.slane %v1642_v4, 1 }
 0x26e   :  { %4541 = vmatprep.subr.bf16.mxu0 %v4540_v20 }
 0x26f   :  { %v1644_v34 = vmax.f32 %v1642_v4, %v1643_v22  ;;  %4543 = vmatpush3.bf16.msra.mxu0 %v4540_v20 }
 0x271   :  { %v6189_v42 = vsel %vm1719_vm4, %v1644_v34, %v1635_v45 }
 0x273   :  { %v4296_v16 = vpop.f32.mrb[20].mxu0 }
 0x274   :  { %v1272_v19 = vpop.f32.mrb[21].mxu0  ;;  %v1278_v22 = vadd.f32 %v4296_v16, %v6010_v2 }
 0x275   :  { %v1273_v45 = vadd.f32 %v6010_v2, %v1272_v19 }
 0x276   :  { %v1352_v26 = vmax.f32 %v1278_v22, 0.0  ;;  %v6254_v22 = vpop.permute.xlu0 %1510 }
 0x277   :  { %v1351_v11 = vmax.f32 %v1273_v45, 0.0  ;;  %6974 = vst [vmem:[#allocation32_spill] sm:$0xff] %v6254_v22 }
 0x28c   :  { %v4299_v48 = vpop.f32.mrb[22].mxu0 }
 0x28d   :  { %v1282_v53 = vpop.f32.mrb[23].mxu0  ;;  %v1288_v34 = vadd.f32 %v4299_v48, %v6010_v2 }
 0x28e   :  { %v1283_v56 = vadd.f32 %v6010_v2, %v1282_v53 }
 0x28f   :  { %v1354_v59 = vmax.f32 %v1288_v34, 0.0 }
 0x290   :  { %v1353_v19 = vmax.f32 %v1283_v56, 0.0 }
 0x291   :  { %v6241_v5 = vmul.f32 %v6024_v24, %v1354_v59 }
 0x292   :  { %v6244_v10 = vmul.f32 %v6081_v13, %v1353_v19 }
 0x2a5   :  { %v4302_v61 = vpop.f32.mrb[24].mxu0 }
 0x2a6   :  { %v1292_v62 = vpop.f32.mrb[25].mxu0  ;;  %v1298_v12 = vadd.f32 %v4302_v61, %v6010_v2  ;;  %v6235_v61 = vmul.f32 %v5997_v17, %v1352_v26  ;;  %v1654_v26 = vsel %vm1009_vm0, %v6244_v10, -inf }
 0x2a7   :  { %v1293_v25 = vadd.f32 %v6010_v2, %v1292_v62  ;;  %v6238_v62 = vmul.f32 %v6032_v6, %v1351_v11 }
 0x2a8   :  { %v1356_v15 = vmax.f32 %v1298_v12, 0.0  ;;  %v1646_v56 = vsel %vm1009_vm0, %v6235_v61, -inf }
 0x2a9   :  { %v1355_v48 = vmax.f32 %v1293_v25, 0.0  ;;  %v1645_v12 = vsel %vm1009_vm0, %v6238_v62, -inf }
 0x2aa   :  { %v6247_v20 = vmul.f32 %v6074_v43, %v1356_v15 }
 0x2ac   :  { %v1664_v11 = vsel %vm1009_vm0, %v6247_v20, -inf }
 0x2be   :  { %v4305_v58 = vpop.f32.mrb[26].mxu0 }
 0x2bf   :  { %v1302_v51 = vpop.f32.mrb[27].mxu0  ;;  %v1308_v35 = vadd.f32 %v4305_v58, %v6010_v2 }
 0x2c0   :  { %v1303_v40 = vadd.f32 %v6010_v2, %v1302_v51 }
 0x2c1   :  { %v1358_v57 = vmax.f32 %v1308_v35, 0.0 }
 0x2c2   :  { %v1357_v53 = vmax.f32 %v1303_v40, 0.0  ;;  %v1655_v40 = vsel %vm1009_vm0, %v6241_v5, -inf }
 0x2c3   :  { %v6257_v45 = vmul.f32 %v6131_v50, %v1358_v57  ;;  %v1656_v15 = vmax.f32 %v1654_v26, %v1655_v40 }
 0x2c4   :  { %v6260_v34 = vmul.f32 %v6152_v38, %v1357_v53 }
 0x2c5   :  { %v1673_v59 = vsel %vm1009_vm0, %v6257_v45, -inf }
 0x2c6   :  { %v1672_v19 = vsel %vm1009_vm0, %v6260_v34, -inf }
 0x2d7   :  { %v4308_v21 = vpop.f32.mrb[28].mxu0 }
 0x2d8   :  { %v1312_v4 = vpop.f32.mrb[29].mxu0  ;;  %v1318_v8 = vadd.f32 %v4308_v21, %v6010_v2  ;;  %v6250_v21 = vmul.f32 %v6124_v55, %v1355_v48 }
 0x2d9   :  { %v1313_v16 = vadd.f32 %v6010_v2, %v1312_v4  ;;  %v6252_v4 = vpop.permute.xlu1 %1505 }
 0x2da   :  { %v1360_v58 = vmax.f32 %v1318_v8, 0.0  ;;  %6973 = vst [vmem:[#allocation33_spill] sm:$0xff] %v6252_v4  ;;  %v1663_v8 = vsel %vm1009_vm0, %v6250_v21, -inf }
 0x2db   :  { %v1359_v51 = vmax.f32 %v1313_v16, 0.0  ;;  %v1647_v16 = vmax.f32 %v1645_v12, %v1646_v56  ;;  %v1665_v53 = vmax.f32 %v1663_v8, %v1664_v11 }
 0x2dc   :  { %v6267_v25 = vmul.f32 %v6254_v22, %v1360_v58  ;;  %v1674_v58 = vmax.f32 %v1672_v19, %v1673_v59  ;;  %v1657_v22 = vrot.slane %v1656_v15, 4  ;;  %v6290_v59 = vpop.permute.xlu0 %1520 }
 0x2dd   :  { %v6270_v35 = vmul.f32 %v6252_v4, %v1359_v51  ;;  %v1648_v51 = vrot.slane %v1647_v16, 4  ;;  %v1666_v38 = vrot.slane %v1665_v53, 4  ;;  %6975 = vst [vmem:[#allocation34_spill] sm:$0xff] %v6290_v59 }
 0x2de   :  { %v1682_v48 = vsel %vm1009_vm0, %v6267_v25, -inf  ;;  %v1675_v56 = vrot.slane %v1674_v58, 4  ;;  %v1658_v55 = vmax.f32 %v1656_v15, %v1657_v22 }
 0x2df   :  { %v1681_v57 = vsel %vm1009_vm0, %v6270_v35, -inf  ;;  %v1649_v12 = vmax.f32 %v1647_v16, %v1648_v51  ;;  %v1667_v43 = vmax.f32 %v1665_v53, %v1666_v38 }
 0x2e0   :  { %v1683_v4 = vmax.f32 %v1681_v57, %v1682_v48  ;;  %v1676_v24 = vmax.f32 %v1674_v58, %v1675_v56  ;;  %v1659_v11 = vrot.slane %v1658_v55, 2  ;;  %v6292_v57 = vpop.permute.xlu1 %1515 }
 0x2e1   :  { %v1650_v6 = vrot.slane %v1649_v12, 2  ;;  %v1668_v19 = vrot.slane %v1667_v43, 2  ;;  %6976 = vst [vmem:[#allocation35_spill] sm:$0xff] %v6292_v57 }
 0x2e2   :  { %v1684_v50 = vrot.slane %v1683_v4, 4  ;;  %v1677_v16 = vrot.slane %v1676_v24, 2 }
 0x2e3   :  { %v1651_v22 = vmax.f32 %v1649_v12, %v1650_v6 }
 0x2e4   :  { %v1685_v17 = vmax.f32 %v1683_v4, %v1684_v50  ;;  %v1660_v50 = vmax.f32 %v1658_v55, %v1659_v11  ;;  %v1669_v4 = vmax.f32 %v1667_v43, %v1668_v19 }
 0x2e5   :  { %v1652_v51 = vrot.slane %v1651_v22, 1 }
 0x2e6   :  { %v1686_v15 = vrot.slane %v1685_v17, 2 }
 0x2e8   :  { %v1687_v56 = vmax.f32 %v1685_v17, %v1686_v15  ;;  %v1821_v17 = vld [vmem:[%s6972_s8 + $0x10] sm:$0xff] }
 0x2f6   :  { %v4311_v13 = vpop.f32.mrb[30].mxu0 }
 0x2f7   :  { %v1328_v40 = vadd.f32 %v4311_v13, %v6010_v2  ;;  %v1322_v26 = vpop.f32.mrb[31].mxu0 }
 0x2f8   :  { %v1323_v14 = vadd.f32 %v6010_v2, %v1322_v26 }
 0x2f9   :  { %v1362_v8 = vmax.f32 %v1328_v40, 0.0  ;;  %v1661_v40 = vrot.slane %v1660_v50, 1 }
 0x2fa   :  { %v1361_v48 = vmax.f32 %v1323_v14, 0.0  ;;  %v1678_v14 = vmax.f32 %v1676_v24, %v1677_v16 }
 0x2fb   :  { %v6295_v38 = vmul.f32 %v6290_v59, %v1362_v8  ;;  %v1670_v8 = vrot.slane %v1669_v4, 1  ;;  %v1653_v59 = vmax.f32 %v1651_v22, %v1652_v51  ;;  %v1822_v22 = vld [vmem:[%s6972_s8 + $0x18] sm:$0xff] }
 0x2fc   :  { %v6298_v13 = vmul.f32 %v6292_v57, %v1361_v48  ;;  %v1679_v6 = vrot.slane %v1678_v14, 1  ;;  %v1688_v48 = vrot.slane %v1687_v56, 1  ;;  %v1662_v57 = vmax.f32 %v1660_v50, %v1661_v40 }
 0x2fd   :  { %v1691_v2 = vsel %vm1009_vm0, %v6295_v38, -inf  ;;  %v1671_v11 = vmax.f32 %v1669_v4, %v1670_v8  ;;  %v1734_v19 = vsel %vm1721_vm5, %v1653_v59, %v6189_v42 }
 0x2fe   :  { %v1690_v53 = vsel %vm1009_vm0, %v6298_v13, -inf  ;;  %v1680_v29 = vmax.f32 %v1678_v14, %v1679_v6  ;;  %v1689_v43 = vmax.f32 %v1687_v56, %v1688_v48  ;;  %v1735_v16 = vsel %vm1723_vm6, %v1662_v57, %v1734_v19 }
 0x2ff   :  { %v1692_v58 = vmax.f32 %v1690_v53, %v1691_v2  ;;  %v1736_v15 = vsel %vm1725_vm7, %v1671_v11, %v1735_v16  ;;  %v4532_v53 = vpack.c.bf16 %v1822_v22, %v1821_v17 }
 0x300   :  { %v1737_v2 = vsel %vm1727_vm8, %v1680_v29, %v1736_v15  ;;  %v4717_v29 = vmov 1966171168  }
 0x301   :  { %v1693_v26 = vrot.slane %v1692_v58, 4  ;;  %v1738_v4 = vsel %vm1729_vm9, %v1689_v43, %v1737_v2 }
 0x303   :  { %v1694_v12 = vmax.f32 %v1692_v58, %v1693_v26 }
 0x305   :  { %v1695_v55 = vrot.slane %v1694_v12, 2 }
 0x307   :  { %v1696_v52 = vmax.f32 %v1694_v12, %v1695_v55 }
 0x309   :  { %v1697_v24 = vrot.slane %v1696_v52, 1 }
 0x30b   :  { %v1698_v50 = vmax.f32 %v1696_v52, %v1697_v24  ;;  %v2148_v52 = vunpack.c.l.s4 %v4717_v29 }
 0x30d   :  { %v1739_v42 = vsel %vm1731_vm10, %v1698_v50, %v1738_v4 }
 0x30e   :  { %4321 = vmatmul.mubr.msk.f32.vlgmr.msra.gmra.mrb[0].mxu1 %vm1009_vm0, %v1739_v42 }
 0x30f   :  { %4531 = vmatpush3.bf16.msra.mxu1 %v6209_v44  ;;  %4331 = vmatprep.mubr.msk.f32.mxu1 %vm1009_vm0, %v6046_v31  ;;  %v6977_v31 = vld [vmem:[#allocation6_spill] sm:$0xff] }
 0x310   :  { %4533 = vmatprep.subr.bf16.mxu1 %v4532_v53 }
 0x313   :  { %4535 = vmatpush3.bf16.msra.mxu1 %v4532_v53 }
 0x316   :  { %4332 = vmatmul.mubr.msk.f32.vlgmr.msra.gmra.mrb[2].mxu1 %vm1009_vm0, %v6058_v54 }
 0x317   :  { %4334 = vmatprep.mubr.msk.f32.mxu1 %vm1009_vm0, %v6041_v36  ;;  %v2149_v36 = vunpack.c.0.s8 %v2148_v52 }
 0x31a   :  { %4335 = vmatmul.mubr.msk.f32.gmra.mrb[4].mxu1 %vm1009_vm0, %v6049_v1  ;;  %v6384_v1 = vsub.s32 %v2149_v36, %v6977_v31 }
 0x31b   :  { %4337 = vmatprep.mubr.msk.f32.mxu1 %vm1009_vm0, %v6061_v60 }
 0x31e   :  { %4338 = vmatmul.mubr.msk.f32.gmra.mrb[6].mxu1 %vm1009_vm0, %v6052_v30 }
 0x31f   :  { %4340 = vmatprep.mubr.msk.f32.mxu1 %vm1009_vm0, %v6066_v32 }
 0x322   :  { %4341 = vmatmul.mubr.msk.f32.gmra.mrb[8].mxu1 %vm1009_vm0, %v6055_v39 }
 0x323   :  { %4343 = vmatprep.mubr.msk.f32.mxu1 %vm1009_vm0, %v6079_v46 }
 0x326   :  { %4344 = vmatmul.mubr.msk.f32.gmra.mrb[10].mxu1 %vm1009_vm0, %v6069_v28  ;;  %v6978_v28 = vld [vmem:[#allocation8_spill] sm:$0xff] }
 0x327   :  { %4346 = vmatprep.mubr.msk.f32.mxu1 %vm1009_vm0, %v6110_v23 }
 0x32a   :  { %4347 = vmatmul.mubr.msk.f32.gmra.mrb[12].mxu1 %vm1009_vm0, %v6072_v47 }
 0x32b   :  { %4349 = vmatprep.mubr.msk.f32.mxu1 %vm1009_vm0, %v6142_v9 }
 0x32e   :  { %4350 = vmatmul.mubr.msk.f32.gmra.mrb[14].mxu1 %vm1009_vm0, %v6129_v27 }
 0x32f   :  { %4352 = vmatprep.mubr.msk.f32.mxu1 %vm1009_vm0, %v6160_v18 }
 0x332   :  { %4353 = vmatmul.mubr.msk.f32.gmra.mrb[16].mxu1 %vm1009_vm0, %v6155_v49 }
 0x333   :  { %4355 = vmatprep.mubr.msk.f32.mxu1 %vm1009_vm0, %v6122_v3 }
 0x336   :  { %4356 = vmatmul.mubr.msk.f32.gmra.mrb[18].mxu1 %vm1009_vm0, %v6117_v41  ;;  %v6395_v41 = vld [vmem:[%s6979_s3] ss:$0 sm:$0xff] }
 0x337   :  { %4358 = vmatprep.mubr.msk.f32.mxu1 %vm1009_vm0, %v6175_v33 }
 0x33a   :  { %4359 = vmatmul.mubr.msk.f32.gmra.mrb[20].mxu1 %vm1009_vm0, %v6172_v63 }
 0x33b   :  { %4361 = vmatprep.mubr.msk.f32.mxu1 %vm1009_vm0, %v6238_v62 }
 0x33e   :  { %4362 = vmatmul.mubr.msk.f32.gmra.mrb[22].mxu1 %vm1009_vm0, %v6235_v61 }
 0x33f   :  { %4364 = vmatprep.mubr.msk.f32.mxu1 %vm1009_vm0, %v6244_v10 }
 0x342   :  { %4365 = vmatmul.mubr.msk.f32.gmra.mrb[24].mxu1 %vm1009_vm0, %v6241_v5 }
 0x343   :  { %4367 = vmatprep.mubr.msk.f32.mxu1 %vm1009_vm0, %v6250_v21 }
 0x346   :  { %4368 = vmatmul.mubr.msk.f32.gmra.mrb[26].mxu1 %vm1009_vm0, %v6247_v20 }
 0x347   :  { %4370 = vmatprep.mubr.msk.f32.mxu1 %vm1009_vm0, %v6260_v34 }
 0x34a   :  { %4371 = vmatmul.mubr.msk.f32.gmra.mrb[28].mxu1 %vm1009_vm0, %v6257_v45 }
 0x34b   :  { %4373 = vmatprep.mubr.msk.f32.mxu1 %vm1009_vm0, %v6270_v35 }
 0x34e   :  { %4374 = vmatmul.mubr.msk.f32.gmra.mrb[30].mxu1 %vm1009_vm0, %v6267_v25 }
 0x34f   :  { %4376 = vmatprep.mubr.msk.f32.mxu1 %vm1009_vm0, %v6298_v13 }
 0x352   :  { %4377 = vmatmul.mubr.msk.f32.gmra.mrb[32].mxu1 %vm1009_vm0, %v6295_v38 }
 0x3e1   :  { %v6386_v30 = vpop.f32.mrb[0].mxu1 }
 0x3e2   :  { %v1810_v39 = vpop.f32.mrb[1].mxu1 }
 0x3e3   :  { %v2153_v54 = vrot.slane %v1810_v39, %v6384_v1  ;;  %v2146_v9 = vcombine.high %v1810_v39, %v1810_v39 }
 0x3e5   :  { %v2161_v60 = vcombine.high %v2153_v54, %v2153_v54  ;;  %v2169_v32 = vrot.slane %v2153_v54, %v6384_v1  ;;  %v2160_v10 = vrot.slane %v2146_v9, %v6384_v1 }
 0x3e7   :  { %v2247_v47 = vrot.slane %v2169_v32, %v6978_v28  ;;  %v2183_v46 = vrot.slane %v2161_v60, %v6384_v1  ;;  %v2191_v33 = vcombine.high %v2169_v32, %v2169_v32  ;;  %v2162_v14 = vcombine.high %v2160_v10, %v2160_v10 }
 0x3e8   :  { %v2176_v8 = vrot.slane %v2160_v10, %v6384_v1  ;;  %v2202_v32 = vrot.slane %v6386_v30, %v6384_v1 }
 0x3e9   :  { %v4333_v23 = vpop.f32.mrb[2].mxu1  ;;  %v2251_v63 = vrot.slane %v2183_v46, %v6978_v28  ;;  %v2255_v25 = vrot.slane %v2191_v33, %v6978_v28  ;;  %v2193_v35 = vcombine.high %v2183_v46, %v2183_v46  ;;  %v2190_v17 = vrot.slane %v2162_v14, %v6384_v1 }
 0x3ea   :  { %v2325_v3 = vadd.f32 %v4333_v23, %v2247_v47  ;;  %v1985_v27 = vpop.f32.mrb[3].mxu1  ;;  %v2263_v16 = vrot.slane %v2176_v8, %v6978_v28  ;;  %v2192_v36 = vcombine.high %v2176_v8, %v2176_v8  ;;  %v2195_v8 = vcombine.high %v6386_v30, %v6386_v30 }
 0x3eb   :  { %v2324_v49 = vadd.f32 %v2247_v47, %v1985_v27  ;;  %v2259_v26 = vrot.slane %v2193_v35, %v6978_v28  ;;  %v2267_v52 = vrot.slane %v2190_v17, %v6978_v28  ;;  %v2194_v9 = vcombine.high %v2190_v17, %v2190_v17 }
 0x3ec   :  { %v2364_v18 = vadd.f32 %v6395_v41, %v2325_v3  ;;  %v2271_v27 = vrot.slane %v2192_v36, %v6978_v28 }
 0x3ed   :  { %v2363_v44 = vadd.f32 %v6395_v41, %v2324_v49  ;;  %v4336_v61 = vpop.f32.mrb[4].mxu1 }
 0x3ee   :  { %v2327_v62 = vadd.f32 %v4336_v61, %v2251_v63  ;;  %v1995_v5 = vpop.f32.mrb[5].mxu1  ;;  %v2396_v45 = vmax.f32 %v2364_v18, 0.0 }
 0x3ef   :  { %v2395_v20 = vmax.f32 %v2363_v44, 0.0  ;;  %v2326_v21 = vadd.f32 %v2251_v63, %v1995_v5  ;;  %v2210_v44 = vcombine.high %v2202_v32, %v2202_v32  ;;  %v2218_v5 = vrot.slane %v2202_v32, %v6384_v1 }
 0x3f0   :  { %v2366_v34 = vadd.f32 %v6395_v41, %v2327_v62 }
 0x3f1   :  { %v2365_v59 = vadd.f32 %v6395_v41, %v2326_v21  ;;  %v4339_v57 = vpop.f32.mrb[6].mxu1  ;;  %4387 = vmatprep.mubr.msk.f32.mxu0 %vm1009_vm0, %v2395_v20  ;;  %v2275_v21 = vrot.slane %v2194_v9, %v6978_v28  ;;  %v2279_v14 = vrot.slane %v2218_v5, %v6978_v28 }
 0x3f2   :  { %v2329_v38 = vadd.f32 %v4339_v57, %v2255_v25  ;;  %v2005_v13 = vpop.f32.mrb[7].mxu1  ;;  %4388 = vmatmul.mubr.msk.f32.vlgmr.msra.gmra.mrb[32].mxu0 %vm1009_vm0, %v2396_v45  ;;  %v2398_v56 = vmax.f32 %v2366_v34, 0.0 }
 0x3f3   :  { %v2397_v58 = vmax.f32 %v2365_v59, 0.0  ;;  %v2328_v51 = vadd.f32 %v2255_v25, %v2005_v13 }
 0x3f4   :  { %v2368_v40 = vadd.f32 %v6395_v41, %v2329_v38 }
 0x3f5   :  { %v2367_v6 = vadd.f32 %v6395_v41, %v2328_v51  ;;  %v4342_v12 = vpop.f32.mrb[8].mxu1  ;;  %4390 = vmatprep.mubr.msk.f32.mxu0 %vm1009_vm0, %v2397_v58  ;;  %v2232_v58 = vrot.slane %v2210_v44, %v6384_v1 }
 0x3f6   :  { %v2331_v48 = vadd.f32 %v4342_v12, %v2259_v26  ;;  %v2015_v55 = vpop.f32.mrb[9].mxu1  ;;  %4391 = vmatmul.mubr.msk.f32.gmra.mrb[34].mxu0 %vm1009_vm0, %v2398_v56  ;;  %v2400_v19 = vmax.f32 %v2368_v40, 0.0 }
 0x3f7   :  { %v2399_v11 = vmax.f32 %v2367_v6, 0.0  ;;  %v2330_v43 = vadd.f32 %v2259_v26, %v2015_v55 }
 0x3f8   :  { %v2370_v24 = vadd.f32 %v6395_v41, %v2331_v48 }
 0x3f9   :  { %v2369_v22 = vadd.f32 %v6395_v41, %v2330_v43  ;;  %v4345_v15 = vpop.f32.mrb[10].mxu1  ;;  %4393 = vmatprep.mubr.msk.f32.mxu0 %vm1009_vm0, %v2399_v11  ;;  %v2283_v11 = vrot.slane %v2232_v58, %v6978_v28  ;;  %v2240_v43 = vcombine.high %v2218_v5, %v2218_v5 }
 0x3fa   :  { %v2333_v50 = vadd.f32 %v4345_v15, %v2263_v16  ;;  %v2025_v2 = vpop.f32.mrb[11].mxu1  ;;  %4394 = vmatmul.mubr.msk.f32.gmra.mrb[36].mxu0 %vm1009_vm0, %v2400_v19  ;;  %v2402_v42 = vmax.f32 %v2370_v24, 0.0 }
 0x3fb   :  { %v2401_v4 = vmax.f32 %v2369_v22, 0.0  ;;  %v2332_v53 = vadd.f32 %v2263_v16, %v2025_v2  ;;  %v2209_v22 = vrot.slane %v2195_v8, %v6384_v1 }
 0x3fc   :  { %v2372_v29 = vadd.f32 %v6395_v41, %v2333_v50 }
 0x3fd   :  { %v2371_v31 = vadd.f32 %v6395_v41, %v2332_v53  ;;  %v4348_v39 = vpop.f32.mrb[12].mxu1  ;;  %4396 = vmatprep.mubr.msk.f32.mxu0 %vm1009_vm0, %v2401_v4  ;;  %v2287_v4 = vrot.slane %v2240_v43, %v6978_v28  ;;  %v2242_v53 = vcombine.high %v2232_v58, %v2232_v58 }
 0x3fe   :  { %v2335_v54 = vadd.f32 %v4348_v39, %v2267_v52  ;;  %v2035_v60 = vpop.f32.mrb[13].mxu1  ;;  %4397 = vmatmul.mubr.msk.f32.gmra.mrb[38].mxu0 %vm1009_vm0, %v2402_v42  ;;  %v2404_v23 = vmax.f32 %v2372_v29, 0.0 }
 0x3ff   :  { %v2403_v47 = vmax.f32 %v2371_v31, 0.0  ;;  %v2334_v46 = vadd.f32 %v2267_v52, %v2035_v60  ;;  %v2211_v31 = vcombine.high %v2209_v22, %v2209_v22 }
 0x400   :  { %v2374_v3 = vadd.f32 %v6395_v41, %v2335_v54 }
 0x401   :  { %v2373_v49 = vadd.f32 %v6395_v41, %v2334_v46  ;;  %v4351_v18 = vpop.f32.mrb[14].mxu1  ;;  %4399 = vmatprep.mubr.msk.f32.mxu0 %vm1009_vm0, %v2403_v47  ;;  %v2291_v47 = vrot.slane %v2242_v53, %v6978_v28  ;;  %v2225_v46 = vrot.slane %v2209_v22, %v6384_v1 }
 0x402   :  { %v2337_v63 = vadd.f32 %v4351_v18, %v2271_v27  ;;  %v2045_v33 = vpop.f32.mrb[15].mxu1  ;;  %4400 = vmatmul.mubr.msk.f32.gmra.mrb[40].mxu0 %vm1009_vm0, %v2404_v23  ;;  %v2406_v10 = vmax.f32 %v2374_v3, 0.0 }
 0x403   :  { %v2405_v61 = vmax.f32 %v2373_v49, 0.0  ;;  %v2336_v62 = vadd.f32 %v2271_v27, %v2045_v33  ;;  %v2295_v44 = vrot.slane %v2225_v46, %v6978_v28 }
 0x404   :  { %v2376_v20 = vadd.f32 %v6395_v41, %v2337_v63 }
 0x405   :  { %v2375_v45 = vadd.f32 %v6395_v41, %v2336_v62  ;;  %v4354_v34 = vpop.f32.mrb[16].mxu1  ;;  %4402 = vmatprep.mubr.msk.f32.mxu0 %vm1009_vm0, %v2405_v61  ;;  %v2239_v61 = vrot.slane %v2211_v31, %v6384_v1  ;;  %v3113_v31 = vld [vmem:[%s6789_s11 + $0x8] sm:$0xff] }
 0x406   :  { %v2339_v25 = vadd.f32 %v4354_v34, %v2275_v21  ;;  %v2055_v35 = vpop.f32.mrb[17].mxu1  ;;  %4403 = vmatmul.mubr.msk.f32.gmra.mrb[42].mxu0 %vm1009_vm0, %v2406_v10  ;;  %v2408_v38 = vmax.f32 %v2376_v20, 0.0 }
 0x407   :  { %v2407_v59 = vmax.f32 %v2375_v45, 0.0  ;;  %v2338_v57 = vadd.f32 %v2275_v21, %v2055_v35  ;;  %v2299_v35 = vrot.slane %v2239_v61, %v6978_v28  ;;  %v2243_v8 = vcombine.high %v2239_v61, %v2239_v61 }
 0x408   :  { %v2378_v13 = vadd.f32 %v6395_v41, %v2339_v25 }
 0x409   :  { %v2377_v51 = vadd.f32 %v6395_v41, %v2338_v57  ;;  %v4357_v56 = vpop.f32.mrb[18].mxu1  ;;  %4405 = vmatprep.mubr.msk.f32.mxu0 %vm1009_vm0, %v2407_v59  ;;  %v2241_v59 = vcombine.high %v2225_v46, %v2225_v46 }
 0x40a   :  { %v2341_v40 = vadd.f32 %v4357_v56, %v2279_v14  ;;  %v2065_v26 = vpop.f32.mrb[19].mxu1  ;;  %4406 = vmatmul.mubr.msk.f32.gmra.mrb[44].mxu0 %vm1009_vm0, %v2408_v38  ;;  %v2410_v48 = vmax.f32 %v2378_v13, 0.0 }
 0x40b   :  { %v2409_v6 = vmax.f32 %v2377_v51, 0.0  ;;  %v2340_v12 = vadd.f32 %v2279_v14, %v2065_v26  ;;  %v2303_v26 = vrot.slane %v2241_v59, %v6978_v28 }
 0x40c   :  { %v2380_v55 = vadd.f32 %v6395_v41, %v2341_v40 }
 0x40d   :  { %v2379_v19 = vadd.f32 %v6395_v41, %v2340_v12  ;;  %v4360_v24 = vpop.f32.mrb[20].mxu1  ;;  %4408 = vmatprep.mubr.msk.f32.mxu0 %vm1009_vm0, %v2409_v6 }
 0x40e   :  { %v2343_v16 = vadd.f32 %v4360_v24, %v2283_v11  ;;  %v2075_v17 = vpop.f32.mrb[21].mxu1  ;;  %4409 = vmatmul.mubr.msk.f32.gmra.mrb[46].mxu0 %vm1009_vm0, %v2410_v48  ;;  %v2412_v50 = vmax.f32 %v2380_v55, 0.0 }
 0x40f   :  { %v2411_v30 = vmax.f32 %v2379_v19, 0.0  ;;  %v2342_v15 = vadd.f32 %v2283_v11, %v2075_v17 }
 0x410   :  { %v2382_v2 = vadd.f32 %v6395_v41, %v2343_v16  ;;  %v2307_v16 = vrot.slane %v2243_v8, %v6978_v28 }
 0x411   :  { %v2381_v42 = vadd.f32 %v6395_v41, %v2342_v15  ;;  %v4363_v29 = vpop.f32.mrb[22].mxu1  ;;  %4411 = vmatprep.mubr.msk.f32.mxu0 %vm1009_vm0, %v2411_v30 }
 0x412   :  { %v2345_v52 = vadd.f32 %v4363_v29, %v2287_v4  ;;  %v2085_v36 = vpop.f32.mrb[23].mxu1  ;;  %4412 = vmatmul.mubr.msk.f32.gmra.mrb[48].mxu0 %vm1009_vm0, %v2412_v50  ;;  %v2414_v60 = vmax.f32 %v2382_v2, 0.0 }
 0x413   :  { %v2413_v39 = vmax.f32 %v2381_v42, 0.0  ;;  %v2344_v54 = vadd.f32 %v2287_v4, %v2085_v36  ;;  %v3112_v36 = vld [vmem:[%s6789_s11] sm:$0xff] }
 0x414   :  { %v2384_v32 = vadd.f32 %v6395_v41, %v2345_v52 }
 0x415   :  { %v2383_v23 = vadd.f32 %v6395_v41, %v2344_v54  ;;  %v4366_v3 = vpop.f32.mrb[24].mxu1  ;;  %4414 = vmatprep.mubr.msk.f32.mxu0 %vm1009_vm0, %v2413_v39  ;;  %v4544_v39 = vpack.c.bf16 %v3113_v31, %v3112_v36  ;;  %v3115_v54 = vld [vmem:[%s6789_s11 + $0x18] sm:$0xff] }
 0x416   :  { %v2347_v27 = vadd.f32 %v4366_v3, %v2291_v47  ;;  %v2095_v9 = vpop.f32.mrb[25].mxu1  ;;  %4415 = vmatmul.mubr.msk.f32.gmra.mrb[50].mxu0 %vm1009_vm0, %v2414_v60  ;;  %v2416_v63 = vmax.f32 %v2384_v32, 0.0  ;;  %v3234_v32 = vld [vmem:[%s6791_s13] sm:$0xff]  ;;  %v6984_v36 = vld [vmem:[#allocation19_spill] sm:$0xff] }
 0x417   :  { %v2415_v49 = vmax.f32 %v2383_v23, 0.0  ;;  %v2346_v18 = vadd.f32 %v2291_v47, %v2095_v9  ;;  %4545 = vmatprep.subr.bf16.mxu1 %v4544_v39  ;;  %v3235_v47 = vld [vmem:[%s6791_s13 + $0x8] sm:$0xff]  ;;  %v6512_v23 = vld [vmem:[%s6788_s10] ss:$0 sm:$0xff] }
 0x418   :  { %v2386_v33 = vadd.f32 %v6395_v41, %v2347_v27  ;;  %4547 = vmatpush3.bf16.msra.mxu1 %v4544_v39  ;;  %v6506_v46 = vpack.c.bf16 %v3235_v47, %v3234_v32 }
 0x419   :  { %v2385_v62 = vadd.f32 %v6395_v41, %v2346_v18  ;;  %v4369_v5 = vpop.f32.mrb[26].mxu1  ;;  %4417 = vmatprep.mubr.msk.f32.mxu0 %vm1009_vm0, %v2415_v49 }
 0x41a   :  { %v2349_v10 = vadd.f32 %v4369_v5, %v2295_v44  ;;  %v2105_v20 = vpop.f32.mrb[27].mxu1  ;;  %4418 = vmatmul.mubr.msk.f32.gmra.mrb[52].mxu0 %vm1009_vm0, %v2416_v63  ;;  %v2418_v34 = vmax.f32 %v2386_v33, 0.0 }
 0x41b   :  { %v2417_v21 = vmax.f32 %v2385_v62, 0.0  ;;  %v2348_v45 = vadd.f32 %v2295_v44, %v2105_v20 }
 0x41c   :  { %v2388_v25 = vadd.f32 %v6395_v41, %v2349_v10 }
 0x41d   :  { %v2387_v57 = vadd.f32 %v6395_v41, %v2348_v45  ;;  %v4372_v38 = vpop.f32.mrb[28].mxu1  ;;  %4420 = vmatprep.mubr.msk.f32.mxu0 %vm1009_vm0, %v2417_v21 }
 0x41e   :  { %v2351_v13 = vadd.f32 %v4372_v38, %v2299_v35  ;;  %v2115_v14 = vpop.f32.mrb[29].mxu1  ;;  %4421 = vmatmul.mubr.msk.f32.gmra.mrb[54].mxu0 %vm1009_vm0, %v2418_v34  ;;  %v2420_v56 = vmax.f32 %v2388_v25, 0.0  ;;  %v6980_v38 = vld [vmem:[#allocation13_spill] sm:$0xff] }
 0x41f   :  { %v2419_v58 = vmax.f32 %v2387_v57, 0.0  ;;  %v2350_v51 = vadd.f32 %v2299_v35, %v2115_v14 }
 0x420   :  { %v2390_v40 = vadd.f32 %v6395_v41, %v2351_v13 }
 0x421   :  { %v2389_v6 = vadd.f32 %v6395_v41, %v2350_v51  ;;  %v4375_v12 = vpop.f32.mrb[30].mxu1  ;;  %4423 = vmatprep.mubr.msk.f32.mxu0 %vm1009_vm0, %v2419_v58 }
 0x422   :  { %v2353_v48 = vadd.f32 %v4375_v12, %v2303_v26  ;;  %v2125_v55 = vpop.f32.mrb[31].mxu1  ;;  %4424 = vmatmul.mubr.msk.f32.gmra.mrb[56].mxu0 %vm1009_vm0, %v2420_v56  ;;  %v2422_v19 = vmax.f32 %v2390_v40, 0.0  ;;  %v6981_v12 = vld [vmem:[#allocation5_spill] sm:$0xff] }
 0x423   :  { %v2421_v11 = vmax.f32 %v2389_v6, 0.0  ;;  %v2352_v43 = vadd.f32 %v2303_v26, %v2125_v55 }
 0x424   :  { %v2392_v24 = vadd.f32 %v6395_v41, %v2353_v48 }
 0x425   :  { %v2391_v17 = vadd.f32 %v6395_v41, %v2352_v43  ;;  %v4378_v22 = vpop.f32.mrb[32].mxu1  ;;  %4426 = vmatprep.mubr.msk.f32.mxu0 %vm1009_vm0, %v2421_v11  ;;  %v6982_v11 = vld [vmem:[#allocation15_spill] sm:$0xff] }
 0x426   :  { %v2355_v30 = vadd.f32 %v4378_v22, %v2307_v16  ;;  %v2135_v15 = vpop.f32.mrb[33].mxu1  ;;  %4427 = vmatmul.mubr.msk.f32.gmra.mrb[58].mxu0 %vm1009_vm0, %v2422_v19  ;;  %v2424_v4 = vmax.f32 %v2392_v24, 0.0 }
 0x427   :  { %v2423_v50 = vmax.f32 %v2391_v17, 0.0  ;;  %v2354_v2 = vadd.f32 %v2307_v16, %v2135_v15 }
 0x428   :  { %v2394_v53 = vadd.f32 %v6395_v41, %v2355_v30 }
 0x429   :  { %v2393_v42 = vadd.f32 %v6395_v41, %v2354_v2  ;;  %4429 = vmatprep.mubr.msk.f32.mxu0 %vm1009_vm0, %v2423_v50  ;;  %v3114_v41 = vld [vmem:[%s6789_s11 + $0x10] sm:$0xff] }
 0x42a   :  { %4430 = vmatmul.mubr.msk.f32.gmra.mrb[60].mxu0 %vm1009_vm0, %v2424_v4  ;;  %v2426_v52 = vmax.f32 %v2394_v53, 0.0  ;;  %v4548_v60 = vpack.c.bf16 %v3115_v54, %v3114_v41 }
 0x42b   :  { %v2425_v29 = vmax.f32 %v2393_v42, 0.0  ;;  %v6983_v42 = vld [vmem:[#allocation12_spill] sm:$0xff] }
 0x42c   :  { %4549 = vmatprep.subr.bf16.mxu1 %v4548_v60 }
 0x42d   :  { %4432 = vmatprep.mubr.msk.f32.mxu0 %vm1009_vm0, %v2425_v29  ;;  %4551 = vmatpush3.bf16.msra.mxu1 %v4548_v60 }
 0x42e   :  { %4433 = vmatmul.mubr.msk.f32.gmra.mrb[62].mxu0 %vm1009_vm0, %v2426_v52  ;;  %4553 = vmatprep.subr.bf16.mxu1 %v6506_v46 }
 0x4c5   :  { %v4389_v3 = vpop.f32.mrb[32].mxu0 }
 0x4c6   :  { %v2606_v27 = vadd.f32 %v4389_v3, %v6512_v23  ;;  %v2600_v9 = vpop.f32.mrb[33].mxu0 }
 0x4c7   :  { %v2601_v49 = vadd.f32 %v6512_v23, %v2600_v9 }
 0x4c8   :  { %v2760_v18 = vmax.f32 %v2606_v27, 0.0 }
 0x4c9   :  { %v2759_v63 = vmax.f32 %v2601_v49, 0.0  ;;  %v4392_v33 = vpop.f32.mrb[34].mxu0 }
 0x4ca   :  { %v2792_v44 = vmul.f32 %v2760_v18, %v5985_v7  ;;  %v2616_v61 = vadd.f32 %v4392_v33, %v6512_v23  ;;  %v2610_v62 = vpop.f32.mrb[35].mxu0 }
 0x4cb   :  { %v2791_v5 = vmul.f32 %v2759_v63, %v5959_v37  ;;  %v2611_v10 = vadd.f32 %v6512_v23, %v2610_v62 }
 0x4cc   :  { %v2824_v20 = vsel %vm1009_vm0, %v2792_v44, -inf  ;;  %v2762_v21 = vmax.f32 %v2616_v61, 0.0  ;;  %v6985_v61 = vld [vmem:[#allocation16_spill] sm:$0xff] }
 0x4cd   :  { %v2823_v45 = vsel %vm1009_vm0, %v2791_v5, -inf  ;;  %v2761_v34 = vmax.f32 %v2611_v10, 0.0  ;;  %v4395_v25 = vpop.f32.mrb[36].mxu0  ;;  %v6986_v5 = vld [vmem:[#allocation25_spill] sm:$0xff] }
 0x4ce   :  { %v2825_v35 = vmax.f32 %v2823_v45, %v2824_v20  ;;  %v2794_v59 = vmul.f32 %v2762_v21, %v5963_v0  ;;  %v2626_v57 = vadd.f32 %v4395_v25, %v6512_v23  ;;  %v2620_v7 = vpop.f32.mrb[37].mxu0 }
 0x4cf   :  { %v2793_v13 = vmul.f32 %v2761_v34, %v6980_v38  ;;  %v2621_v14 = vadd.f32 %v6512_v23, %v2620_v7 }
 0x4d0   :  { %v2826_v37 = vrot.slane %v2825_v35, 4  ;;  %v2833_v58 = vsel %vm1009_vm0, %v2794_v59, -inf  ;;  %v2764_v51 = vmax.f32 %v2626_v57, 0.0 }
 0x4d1   :  { %v2832_v56 = vsel %vm1009_vm0, %v2793_v13, -inf  ;;  %v2763_v40 = vmax.f32 %v2621_v14, 0.0  ;;  %v4398_v26 = vpop.f32.mrb[38].mxu0 }
 0x4d2   :  { %v2827_v8 = vmax.f32 %v2825_v35, %v2826_v37  ;;  %v2834_v6 = vmax.f32 %v2832_v56, %v2833_v58  ;;  %v2796_v48 = vmul.f32 %v2764_v51, %v6981_v12  ;;  %v2636_v0 = vadd.f32 %v4398_v26, %v6512_v23  ;;  %v2630_v55 = vpop.f32.mrb[39].mxu0 }
 0x4d3   :  { %v2795_v43 = vmul.f32 %v2763_v40, %v6982_v11  ;;  %v2631_v19 = vadd.f32 %v6512_v23, %v2630_v55  ;;  %v6987_v40 = vld [vmem:[#allocation22_spill] sm:$0xff] }
 0x4d4   :  { %v2828_v24 = vrot.slane %v2827_v8, 2  ;;  %v2835_v16 = vrot.slane %v2834_v6, 4  ;;  %v2842_v17 = vsel %vm1009_vm0, %v2796_v48, -inf  ;;  %v2766_v22 = vmax.f32 %v2636_v0, 0.0 }
 0x4d5   :  { %v2841_v30 = vsel %vm1009_vm0, %v2795_v43, -inf  ;;  %v2765_v15 = vmax.f32 %v2631_v19, 0.0  ;;  %v4401_v50 = vpop.f32.mrb[40].mxu0 }
 0x4d6   :  { %v2829_v2 = vmax.f32 %v2827_v8, %v2828_v24  ;;  %v2836_v4 = vmax.f32 %v2834_v6, %v2835_v16  ;;  %v2843_v53 = vmax.f32 %v2841_v30, %v2842_v17  ;;  %v2798_v29 = vmul.f32 %v2766_v22, %v6983_v42  ;;  %v2640_v52 = vpop.f32.mrb[41].mxu0  ;;  %v6988_v8 = vld [vmem:[#allocation29_spill] sm:$0xff] }
 0x4d7   :  { %v2797_v31 = vmul.f32 %v2765_v15, %v6984_v36  ;;  %v2646_v39 = vadd.f32 %v4401_v50, %v6512_v23  ;;  %v2641_v41 = vadd.f32 %v6512_v23, %v2640_v52 }
 0x4d8   :  { %v2830_v54 = vrot.slane %v2829_v2, 1  ;;  %v2837_v60 = vrot.slane %v2836_v4, 2  ;;  %v2844_v32 = vrot.slane %v2843_v53, 4  ;;  %v2851_v47 = vsel %vm1009_vm0, %v2798_v29, -inf  ;;  %v6990_v29 = vld [vmem:[#allocation11_spill] sm:$0xff] }
 0x4d9   :  { %v2850_v3 = vsel %vm1009_vm0, %v2797_v31, -inf  ;;  %v2768_v27 = vmax.f32 %v2646_v39, 0.0  ;;  %v2767_v9 = vmax.f32 %v2641_v41, 0.0  ;;  %v4404_v49 = vpop.f32.mrb[42].mxu0 }
 0x4da   :  { %v2838_v18 = vmax.f32 %v2836_v4, %v2837_v60  ;;  %v2845_v63 = vmax.f32 %v2843_v53, %v2844_v32  ;;  %v2852_v33 = vmax.f32 %v2850_v3, %v2851_v47  ;;  %v2650_v44 = vpop.f32.mrb[43].mxu0  ;;  %v2656_v20 = vadd.f32 %v4404_v49, %v6512_v23  ;;  %v6989_v53 = vld [vmem:[#allocation31_spill] sm:$0xff] }
 0x4db   :  { %v2800_v62 = vmul.f32 %v2768_v27, %v6985_v61  ;;  %v2799_v10 = vmul.f32 %v2767_v9, %v6986_v5  ;;  %v2651_v21 = vadd.f32 %v6512_v23, %v2650_v44  ;;  %v2831_v45 = vmax.f32 %v2829_v2, %v2830_v54  ;;  %v6991_v61 = vld [vmem:[#allocation9_spill] sm:$0xff]  ;;  %v6992_v5 = vld [vmem:[#allocation28_spill] sm:$0xff] }
 0x4dc   :  { %v2839_v34 = vrot.slane %v2838_v18, 1  ;;  %v2846_v25 = vrot.slane %v2845_v63, 2  ;;  %v2853_v35 = vrot.slane %v2852_v33, 4  ;;  %v2770_v7 = vmax.f32 %v2656_v20, 0.0 }
 0x4dd   :  { %v2860_v59 = vsel %vm1009_vm0, %v2800_v62, -inf  ;;  %v2859_v57 = vsel %vm1009_vm0, %v2799_v10, -inf  ;;  %v2769_v38 = vmax.f32 %v2651_v21, 0.0  ;;  %v4407_v13 = vpop.f32.mrb[44].mxu0 }
 0x4de   :  { %v2840_v14 = vmax.f32 %v2838_v18, %v2839_v34  ;;  %v2847_v37 = vmax.f32 %v2845_v63, %v2846_v25  ;;  %v2854_v58 = vmax.f32 %v2852_v33, %v2853_v35  ;;  %v2861_v51 = vmax.f32 %v2859_v57, %v2860_v59  ;;  %v2660_v56 = vpop.f32.mrb[45].mxu0 }
 0x4df   :  { %v2802_v26 = vmul.f32 %v2770_v7, %v6987_v40  ;;  %v2801_v6 = vmul.f32 %v2769_v38, %v6988_v8  ;;  %v2666_v12 = vadd.f32 %v4407_v13, %v6512_v23  ;;  %v2661_v48 = vadd.f32 %v6512_v23, %v2660_v56  ;;  %v6993_v40 = vld [vmem:[#allocation7_spill] sm:$0xff]  ;;  %v6994_v8 = vld [vmem:[#allocation10_spill] sm:$0xff] }
 0x4e0   :  { %v3139_v0 = vsel %vm1719_vm4, %v2840_v14, %v2831_v45  ;;  %v2848_v55 = vrot.slane %v2847_v37, 1  ;;  %v2855_v11 = vrot.slane %v2854_v58, 2  ;;  %v2862_v43 = vrot.slane %v2861_v51, 4 }
 0x4e1   :  { %v2869_v19 = vsel %vm1009_vm0, %v2802_v26, -inf  ;;  %v2868_v24 = vsel %vm1009_vm0, %v2801_v6, -inf  ;;  %v2772_v16 = vmax.f32 %v2666_v12, 0.0  ;;  %v2771_v17 = vmax.f32 %v2661_v48, 0.0  ;;  %v4410_v22 = vpop.f32.mrb[46].mxu0 }
 0x4e2   :  { %v2849_v30 = vmax.f32 %v2847_v37, %v2848_v55  ;;  %v2856_v15 = vmax.f32 %v2854_v58, %v2855_v11  ;;  %v2863_v50 = vmax.f32 %v2861_v51, %v2862_v43  ;;  %v2870_v2 = vmax.f32 %v2868_v24, %v2869_v19  ;;  %v2670_v4 = vpop.f32.mrb[47].mxu0 }
 0x4e3   :  { %v2804_v42 = vmul.f32 %v2772_v16, %v6989_v53  ;;  %v2803_v52 = vmul.f32 %v2771_v17, %v6990_v29  ;;  %v2676_v36 = vadd.f32 %v4410_v22, %v6512_v23  ;;  %v2671_v31 = vadd.f32 %v6512_v23, %v2670_v4  ;;  %v6995_v53 = vld [vmem:[#allocation14_spill] sm:$0xff] }
 0x4e4   :  { %v2857_v39 = vrot.slane %v2856_v15, 1  ;;  %v2864_v41 = vrot.slane %v2863_v50, 2  ;;  %v2871_v54 = vrot.slane %v2870_v2, 4  ;;  %v3140_v60 = vsel %vm1721_vm5, %v2849_v30, %v3139_v0  ;;  %v6996_v29 = vld [vmem:[#allocation18_spill] sm:$0xff] }
 0x4e5   :  { %v2878_v32 = vsel %vm1009_vm0, %v2804_v42, -inf  ;;  %v2877_v47 = vsel %vm1009_vm0, %v2803_v52, -inf  ;;  %v2774_v3 = vmax.f32 %v2676_v36, 0.0  ;;  %v2773_v27 = vmax.f32 %v2671_v31, 0.0  ;;  %v4413_v9 = vpop.f32.mrb[48].mxu0 }
 0x4e6   :  { %v2858_v49 = vmax.f32 %v2856_v15, %v2857_v39  ;;  %v2865_v18 = vmax.f32 %v2863_v50, %v2864_v41  ;;  %v2872_v63 = vmax.f32 %v2870_v2, %v2871_v54  ;;  %v2879_v33 = vmax.f32 %v2877_v47, %v2878_v32  ;;  %v2680_v44 = vpop.f32.mrb[49].mxu0 }
 0x4e7   :  { %v2806_v62 = vmul.f32 %v2774_v3, %v6991_v61  ;;  %v2805_v10 = vmul.f32 %v2773_v27, %v6992_v5  ;;  %v2686_v20 = vadd.f32 %v4413_v9, %v6512_v23  ;;  %v2681_v21 = vadd.f32 %v6512_v23, %v2680_v44  ;;  %v6997_v61 = vld [vmem:[#allocation17_spill] sm:$0xff]  ;;  %v6998_v5 = vld [vmem:[#allocation20_spill] sm:$0xff] }
 0x4e8   :  { %v2866_v45 = vrot.slane %v2865_v18, 1  ;;  %v2873_v34 = vrot.slane %v2872_v63, 2  ;;  %v2880_v25 = vrot.slane %v2879_v33, 4  ;;  %v3141_v35 = vsel %vm1723_vm6, %v2858_v49, %v3140_v60 }
 0x4e9   :  { %v2887_v59 = vsel %vm1009_vm0, %v2806_v62, -inf  ;;  %v2886_v57 = vsel %vm1009_vm0, %v2805_v10, -inf  ;;  %v2776_v7 = vmax.f32 %v2686_v20, 0.0  ;;  %v2775_v38 = vmax.f32 %v2681_v21, 0.0  ;;  %v4416_v13 = vpop.f32.mrb[50].mxu0 }
 0x4ea   :  { %v2867_v14 = vmax.f32 %v2865_v18, %v2866_v45  ;;  %v2874_v37 = vmax.f32 %v2872_v63, %v2873_v34  ;;  %v2881_v58 = vmax.f32 %v2879_v33, %v2880_v25  ;;  %v2888_v51 = vmax.f32 %v2886_v57, %v2887_v59  ;;  %v2690_v56 = vpop.f32.mrb[51].mxu0 }
 0x4eb   :  { %v2808_v26 = vmul.f32 %v2776_v7, %v6993_v40  ;;  %v2807_v6 = vmul.f32 %v2775_v38, %v6994_v8  ;;  %v2696_v12 = vadd.f32 %v4416_v13, %v6512_v23  ;;  %v2691_v48 = vadd.f32 %v6512_v23, %v2690_v56 }
 0x4ec   :  { %v2875_v0 = vrot.slane %v2874_v37, 1  ;;  %v2882_v55 = vrot.slane %v2881_v58, 2  ;;  %v2889_v11 = vrot.slane %v2888_v51, 4  ;;  %v3142_v43 = vsel %vm1725_vm7, %v2867_v14, %v3141_v35 }
 0x4ed   :  { %v2896_v19 = vsel %vm1009_vm0, %v2808_v26, -inf  ;;  %v2895_v24 = vsel %vm1009_vm0, %v2807_v6, -inf  ;;  %v2778_v16 = vmax.f32 %v2696_v12, 0.0  ;;  %v2777_v17 = vmax.f32 %v2691_v48, 0.0  ;;  %v4419_v22 = vpop.f32.mrb[52].mxu0  ;;  %v7000_v26 = vld [vmem:[#allocation27_spill] sm:$0xff] }
 0x4ee   :  { %v2876_v30 = vmax.f32 %v2874_v37, %v2875_v0  ;;  %v2883_v15 = vmax.f32 %v2881_v58, %v2882_v55  ;;  %v2890_v50 = vmax.f32 %v2888_v51, %v2889_v11  ;;  %v2897_v2 = vmax.f32 %v2895_v24, %v2896_v19  ;;  %v2700_v4 = vpop.f32.mrb[53].mxu0  ;;  %v6999_v51 = vld [vmem:[#allocation21_spill] sm:$0xff] }
 0x4ef   :  { %v2810_v42 = vmul.f32 %v2778_v16, %v6995_v53  ;;  %v2809_v52 = vmul.f32 %v2777_v17, %v6996_v29  ;;  %v2706_v36 = vadd.f32 %v4419_v22, %v6512_v23  ;;  %v2701_v31 = vadd.f32 %v6512_v23, %v2700_v4  ;;  %v7001_v4 = vld [vmem:[#allocation23_spill] sm:$0xff] }
 0x4f0   :  { %v2884_v39 = vrot.slane %v2883_v15, 1  ;;  %v2891_v41 = vrot.slane %v2890_v50, 2  ;;  %v2898_v54 = vrot.slane %v2897_v2, 4  ;;  %v3143_v60 = vsel %vm1727_vm8, %v2876_v30, %v3142_v43 }
 0x4f1   :  { %v2905_v32 = vsel %vm1009_vm0, %v2810_v42, -inf  ;;  %v2904_v47 = vsel %vm1009_vm0, %v2809_v52, -inf  ;;  %v2780_v3 = vmax.f32 %v2706_v36, 0.0  ;;  %v2779_v27 = vmax.f32 %v2701_v31, 0.0  ;;  %v4422_v9 = vpop.f32.mrb[54].mxu0  ;;  %v7002_v42 = vld [vmem:[#allocation26_spill] sm:$0xff] }
 0x4f2   :  { %v2899_v49 = vmax.f32 %v2897_v2, %v2898_v54  ;;  %v2906_v18 = vmax.f32 %v2904_v47, %v2905_v32  ;;  %v2716_v63 = vadd.f32 %v4422_v9, %v6512_v23  ;;  %v2710_v33 = vpop.f32.mrb[55].mxu0  ;;  %v2885_v44 = vmax.f32 %v2883_v15, %v2884_v39 }
 0x4f3   :  { %v2812_v62 = vmul.f32 %v2780_v3, %v6997_v61  ;;  %v2811_v10 = vmul.f32 %v2779_v27, %v6998_v5  ;;  %v2711_v20 = vadd.f32 %v6512_v23, %v2710_v33  ;;  %v2892_v21 = vmax.f32 %v2890_v50, %v2891_v41 }
 0x4f4   :  { %v2900_v45 = vrot.slane %v2899_v49, 2  ;;  %v2907_v34 = vrot.slane %v2906_v18, 4  ;;  %v2782_v25 = vmax.f32 %v2716_v63, 0.0  ;;  %v3144_v35 = vsel %vm1729_vm9, %v2885_v44, %v3143_v60  ;;  %v7003_v44 = vld [vmem:[#allocation24_spill] sm:$0xff] }
 0x4f5   :  { %v2914_v59 = vsel %vm1009_vm0, %v2812_v62, -inf  ;;  %v2913_v57 = vsel %vm1009_vm0, %v2811_v10, -inf  ;;  %v2781_v7 = vmax.f32 %v2711_v20, 0.0  ;;  %v4425_v38 = vpop.f32.mrb[56].mxu0  ;;  %v2893_v13 = vrot.slane %v2892_v21, 1  ;;  %v7004_v62 = vld [vmem:[#allocation30_spill] sm:$0xff] }
 0x4f6   :  { %v2901_v14 = vmax.f32 %v2899_v49, %v2900_v45  ;;  %v2908_v37 = vmax.f32 %v2906_v18, %v2907_v34  ;;  %v2915_v58 = vmax.f32 %v2913_v57, %v2914_v59  ;;  %v2814_v56 = vmul.f32 %v2782_v25, %v6999_v51  ;;  %v2720_v40 = vpop.f32.mrb[57].mxu0 }
 0x4f7   :  { %v2813_v8 = vmul.f32 %v2781_v7, %v7000_v26  ;;  %v2726_v6 = vadd.f32 %v4425_v38, %v6512_v23  ;;  %v2721_v12 = vadd.f32 %v6512_v23, %v2720_v40  ;;  %v2894_v48 = vmax.f32 %v2892_v21, %v2893_v13  ;;  %v7006_v26 = vld [vmem:[#allocation33_spill] sm:$0xff] }
 0x4f8   :  { %v2902_v0 = vrot.slane %v2901_v14, 1  ;;  %v2909_v55 = vrot.slane %v2908_v37, 2  ;;  %v2916_v11 = vrot.slane %v2915_v58, 4  ;;  %v2923_v43 = vsel %vm1009_vm0, %v2814_v56, -inf  ;;  %v7005_v56 = vld [vmem:[#allocation32_spill] sm:$0xff] }
 0x4f9   :  { %v2922_v19 = vsel %vm1009_vm0, %v2813_v8, -inf  ;;  %v2784_v24 = vmax.f32 %v2726_v6, 0.0  ;;  %v2783_v16 = vmax.f32 %v2721_v12, 0.0  ;;  %v4428_v17 = vpop.f32.mrb[58].mxu0  ;;  %v3145_v22 = vsel %vm1731_vm10, %v2894_v48, %v3144_v35 }
 0x4fa   :  { %v2910_v30 = vmax.f32 %v2908_v37, %v2909_v55  ;;  %v2917_v15 = vmax.f32 %v2915_v58, %v2916_v11  ;;  %v2924_v50 = vmax.f32 %v2922_v19, %v2923_v43  ;;  %4443 = vmatprep.mubr.msk.f32.mxu1 %vm1009_vm0, %v3145_v22  ;;  %v2730_v2 = vpop.f32.mrb[59].mxu0  ;;  %v2736_v52 = vadd.f32 %v4428_v17, %v6512_v23 }
 0x4fb   :  { %v2816_v53 = vmul.f32 %v2784_v24, %v7001_v4  ;;  %v2815_v29 = vmul.f32 %v2783_v16, %v7002_v42  ;;  %v2731_v36 = vadd.f32 %v6512_v23, %v2730_v2  ;;  %v2903_v31 = vmax.f32 %v2901_v14, %v2902_v0  ;;  %v7008_v4 = vld [vmem:[#allocation35_spill] sm:$0xff] }
 0x4fc   :  { %v2911_v39 = vrot.slane %v2910_v30, 1  ;;  %v2918_v41 = vrot.slane %v2917_v15, 2  ;;  %v2925_v54 = vrot.slane %v2924_v50, 4  ;;  %v2786_v47 = vmax.f32 %v2736_v52, 0.0 }
 0x4fd   :  { %v2932_v60 = vsel %vm1009_vm0, %v2816_v53, -inf  ;;  %v2931_v32 = vsel %vm1009_vm0, %v2815_v29, -inf  ;;  %v2785_v3 = vmax.f32 %v2731_v36, 0.0  ;;  %v4431_v27 = vpop.f32.mrb[60].mxu0 }
 0x4fe   :  { %v2912_v9 = vmax.f32 %v2910_v30, %v2911_v39  ;;  %v2919_v49 = vmax.f32 %v2917_v15, %v2918_v41  ;;  %v2926_v18 = vmax.f32 %v2924_v50, %v2925_v54  ;;  %v2933_v63 = vmax.f32 %v2931_v32, %v2932_v60  ;;  %v2740_v33 = vpop.f32.mrb[61].mxu0  ;;  %v7007_v50 = vld [vmem:[#allocation34_spill] sm:$0xff] }
 0x4ff   :  { %v2818_v61 = vmul.f32 %v2786_v47, %v7003_v44  ;;  %v2817_v5 = vmul.f32 %v2785_v3, %v7004_v62  ;;  %v2746_v10 = vadd.f32 %v4431_v27, %v6512_v23  ;;  %v2741_v20 = vadd.f32 %v6512_v23, %v2740_v33 }
 0x500   :  { %v3146_v21 = vsel %vm1719_vm4, %v2912_v9, %v2903_v31  ;;  %v2920_v45 = vrot.slane %v2919_v49, 1  ;;  %v2927_v34 = vrot.slane %v2926_v18, 2  ;;  %v2934_v25 = vrot.slane %v2933_v63, 4 }
 0x501   :  { %v2941_v35 = vsel %vm1009_vm0, %v2818_v61, -inf  ;;  %v2940_v59 = vsel %vm1009_vm0, %v2817_v5, -inf  ;;  %v2788_v57 = vmax.f32 %v2746_v10, 0.0  ;;  %v2787_v7 = vmax.f32 %v2741_v20, 0.0  ;;  %v4434_v38 = vpop.f32.mrb[62].mxu0 }
 0x502   :  { %v2921_v13 = vmax.f32 %v2919_v49, %v2920_v45  ;;  %v2928_v14 = vmax.f32 %v2926_v18, %v2927_v34  ;;  %v2935_v37 = vmax.f32 %v2933_v63, %v2934_v25  ;;  %v2942_v58 = vmax.f32 %v2940_v59, %v2941_v35  ;;  %v2750_v51 = vpop.f32.mrb[63].mxu0  ;;  %v3236_v45 = vld [vmem:[%s6791_s13 + $0x10] sm:$0xff]  ;;  %v3237_v34 = vld [vmem:[%s6791_s13 + $0x18] sm:$0xff]  ;;  %v4086_v35 = vld [vmem:[%s6790_s12] ss:$0 sm:$0xff] }
 0x503   :  { %v2820_v40 = vmul.f32 %v2788_v57, %v7005_v56  ;;  %v2819_v8 = vmul.f32 %v2787_v7, %v7006_v26  ;;  %v2756_v6 = vadd.f32 %v4434_v38, %v6512_v23  ;;  %v2751_v12 = vadd.f32 %v6512_v23, %v2750_v51  ;;  %v3426_v56 = vld [vmem:[%s6794_s16 + $0x10] sm:$0xff]  ;;  %v3503_v26 = vld [vmem:[%s6793_s15] sm:$0xff] }
 0x504   :  { %v3147_v48 = vsel %vm1721_vm5, %v2921_v13, %v3146_v21  ;;  %v2929_v0 = vrot.slane %v2928_v14, 1  ;;  %v2936_v55 = vrot.slane %v2935_v37, 2  ;;  %v2943_v11 = vrot.slane %v2942_v58, 4 }
 0x505   :  { %v2950_v43 = vsel %vm1009_vm0, %v2820_v40, -inf  ;;  %v2949_v19 = vsel %vm1009_vm0, %v2819_v8, -inf  ;;  %v2790_v24 = vmax.f32 %v2756_v6, 0.0  ;;  %v2789_v16 = vmax.f32 %v2751_v12, 0.0  ;;  %v3427_v40 = vld [vmem:[%s6794_s16 + $0x18] sm:$0xff]  ;;  %v3504_v12 = vld [vmem:[%s6793_s15 + $0x8] sm:$0xff] }
 0x506   :  { %v2930_v17 = vmax.f32 %v2928_v14, %v2929_v0  ;;  %v2937_v22 = vmax.f32 %v2935_v37, %v2936_v55  ;;  %v2944_v30 = vmax.f32 %v2942_v58, %v2943_v11  ;;  %v2951_v15 = vmax.f32 %v2949_v19, %v2950_v43  ;;  %v3424_v14 = vld [vmem:[%s6794_s16] sm:$0xff]  ;;  %v3425_v37 = vld [vmem:[%s6794_s16 + $0x8] sm:$0xff]  ;;  %v3335_v0 = vpop.permute.xlu0 %3334  ;;  %v3331_v55 = vpop.permute.xlu1 %3330 }
 0x507   :  { %v2822_v2 = vmul.f32 %v2790_v24, %v7007_v50  ;;  %v2821_v53 = vmul.f32 %v2789_v16, %v7008_v4  ;;  %v4556_v25 = vpack.c.bf16 %v3237_v34, %v3236_v45  ;;  %v4561_v58 = vpack.c.bf16 %v3425_v37, %v3424_v14  ;;  %v3505_v14 = vld [vmem:[%s6793_s15 + $0x10] sm:$0xff]  ;;  %v3506_v37 = vld [vmem:[%s6793_s15 + $0x18] sm:$0xff] }
 0x508   :  { %v3148_v23 = vsel %vm1723_vm6, %v2930_v17, %v3147_v48  ;;  %v2938_v42 = vrot.slane %v2937_v22, 1  ;;  %v2945_v29 = vrot.slane %v2944_v30, 2  ;;  %v2952_v52 = vrot.slane %v2951_v15, 4 }
 0x509   :  { %v2959_v36 = vsel %vm1009_vm0, %v2822_v2, -inf  ;;  %v2958_v31 = vsel %vm1009_vm0, %v2821_v53, -inf  ;;  %v4718_v51 = vmov 0.0|0.0   ;;  %v4564_v8 = vpack.c.bf16 %v3427_v40, %v3426_v56 }
 0x50a   :  { %v2939_v39 = vmax.f32 %v2937_v22, %v2938_v42  ;;  %v2946_v41 = vmax.f32 %v2944_v30, %v2945_v29  ;;  %v2953_v54 = vmax.f32 %v2951_v15, %v2952_v52  ;;  %v2960_v60 = vmax.f32 %v2958_v31, %v2959_v36  ;;  %v3367_v11 = vpop.permute.xlu0 %3366  ;;  %v3363_v43 = vpop.permute.xlu1 %3362 }
 0x50b   :  { %v4720_v6 = vmov 0.0   ;;  %v4566_v48 = vpack.c.bf16 %v3504_v12, %v3503_v26  ;;  %v3399_v30 = vsel %vm1719_vm4, %v3367_v11, %v3363_v43  ;;  %v3392_v50 = vsel %vm1719_vm4, %v3335_v0, %v3331_v55  ;;  %v3635_v12 = vld [vmem:[%s6796_s18 + $0x8] sm:$0xff]  ;;  %v3637_v55 = vld [vmem:[%s6796_s18 + $0x18] sm:$0xff] }
 0x50c   :  { %v2947_v32 = vrot.slane %v2946_v41, 1  ;;  %v2954_v47 = vrot.slane %v2953_v54, 2  ;;  %v2961_v3 = vrot.slane %v2960_v60, 4  ;;  %v3149_v27 = vsel %vm1725_vm7, %v2939_v39, %v3148_v23 }
 0x50d   :  { %v4570_v40 = vpack.c.bf16 %v3506_v37, %v3505_v14  ;;  %v3865_v14 = vld [vmem:[%s6800_s22 + $0x10] sm:$0xff]  ;;  %v3866_v37 = vld [vmem:[%s6800_s22 + $0x18] sm:$0xff] }
 0x50e   :  { %v2948_v9 = vmax.f32 %v2946_v41, %v2947_v32  ;;  %v2955_v49 = vmax.f32 %v2953_v54, %v2954_v47  ;;  %v2962_v18 = vmax.f32 %v2960_v60, %v2961_v3  ;;  %v3371_v19 = vpop.permute.xlu0 %3370  ;;  %v3339_v24 = vpop.permute.xlu1 %3338  ;;  %v4089_v54 = vld [vmem:[%s6792_s14] ss:$0 sm:$0xff] }
 0x50f   :  { %v3400_v2 = vsel %vm1721_vm5, %v3371_v19, %v3399_v30  ;;  %v3393_v4 = vsel %vm1721_vm5, %v3339_v24, %v3392_v50  ;;  %v4095_v50 = vld [vmem:[%s6795_s17] ss:$0 sm:$0xff] }
 0x510   :  { %v2956_v63 = vrot.slane %v2955_v49, 1  ;;  %v2963_v33 = vrot.slane %v2962_v18, 2  ;;  %v3150_v44 = vsel %vm1727_vm8, %v2948_v9, %v3149_v27 }
 0x512   :  { %v2957_v61 = vmax.f32 %v2955_v49, %v2956_v63  ;;  %v2964_v62 = vmax.f32 %v2962_v18, %v2963_v33  ;;  %v3375_v16 = vpop.permute.xlu0 %3374  ;;  %v3343_v17 = vpop.permute.xlu1 %3342 }
 0x513   :  { %v3401_v23 = vsel %vm1723_vm6, %v3375_v16, %v3400_v2  ;;  %v3394_v29 = vsel %vm1723_vm6, %v3343_v17, %v3393_v4 }
 0x514   :  { %v2965_v5 = vrot.slane %v2964_v62, 1  ;;  %v3151_v10 = vsel %vm1729_vm9, %v2957_v61, %v3150_v44 }
 0x516   :  { %v2966_v20 = vmax.f32 %v2964_v62, %v2965_v5  ;;  %v3379_v22 = vpop.permute.xlu0 %3378  ;;  %v3347_v15 = vpop.permute.xlu1 %3346 }
 0x517   :  { %v3402_v52 = vsel %vm1725_vm7, %v3379_v22, %v3401_v23  ;;  %v3395_v36 = vsel %vm1725_vm7, %v3347_v15, %v3394_v29 }
 0x518   :  { %v3152_v21 = vsel %vm1731_vm10, %v2966_v20, %v3151_v10 }
 0x519   :  { %4444 = vmatmul.mubr.msk.f32.vlgmr.msra.gmra.mrb[34].mxu1 %vm1009_vm0, %v3152_v21 }
 0x51a   :  { %4555 = vmatpush3.bf16.msra.mxu1 %v6506_v46  ;;  %v3383_v53 = vpop.permute.xlu0 %3382  ;;  %v3351_v42 = vpop.permute.xlu1 %3350 }
 0x51b   :  { %4557 = vmatprep.subr.bf16.mxu1 %v4556_v25  ;;  %v3403_v39 = vsel %vm1727_vm8, %v3383_v53, %v3402_v52  ;;  %v3396_v60 = vsel %vm1727_vm8, %v3351_v42, %v3395_v36 }
 0x51e   :  { %4559 = vmatpush3.bf16.msra.mxu1 %v4556_v25  ;;  %v3387_v31 = vpop.permute.xlu0 %3386  ;;  %v3355_v41 = vpop.permute.xlu1 %3354 }
 0x51f   :  { %4560 = vmatprep.subr.bf16.mxu1 %v4718_v51  ;;  %v3404_v47 = vsel %vm1729_vm9, %v3387_v31, %v3403_v39  ;;  %v3397_v9 = vsel %vm1729_vm9, %v3355_v41, %v3396_v60  ;;  %v3778_v39 = vld [vmem:[%s6798_s20 + $0x10] sm:$0xff]  ;;  %v3779_v41 = vld [vmem:[%s6798_s20 + $0x18] sm:$0xff]  ;;  %v4096_v60 = vld [vmem:[%s6797_s19] ss:$0 sm:$0xff] }
 0x522   :  { %v3391_v18 = vpop.permute.xlu0 %3390  ;;  %v3359_v33 = vpop.permute.xlu1 %3358 }
 0x523   :  { %v6676_v44 = vsel %vm1731_vm10, %v3391_v18, %v3404_v47  ;;  %v6679_v62 = vsel %vm1731_vm10, %v3359_v33, %v3397_v9 }
 0x5ec   :  { %v4445_v59 = vpop.f32.mrb[34].mxu1 }
 0x5ed   :  { %v3229_v57 = vadd.f32 %v4445_v59, %v4086_v35  ;;  %v3223_v7 = vpop.f32.mrb[35].mxu1 }
 0x5ee   :  { %v3224_v38 = vadd.f32 %v4086_v35, %v3223_v7 }
 0x5ef   :  { %v3233_v13 = vmax.f32 %v3229_v57, 0.0 }
 0x5f0   :  { %v3232_v46 = vmax.f32 %v3224_v38, 0.0 }
 0x5f2   :  { %4454 = vmatprep.mubr.msk.f32.mxu1 %vm1009_vm0, %v3232_v46 }
 0x5f3   :  { %4455 = vmatmul.mubr.msk.f32.vlgmr.msra.gmra.mrb[36].mxu1 %vm1009_vm0, %v3233_v13 }
 0x5f4   :  { %4562 = vmatpush3.bf16.msra.mxu1 %v4561_v58  ;;  %4465 = vmatprep.mubr.msk.f32.mxu1 %vm4719_vm11, %v4720_v6 }
 0x5f5   :  { %4563 = vmatprep.subr.bf16.mxu1 %v4718_v51 }
 0x5f8   :  { %4565 = vmatpush3.bf16.msra.mxu1 %v4564_v8  ;;  %v3634_v8 = vld [vmem:[%s6796_s18] sm:$0xff] }
 0x5f9   :  { %4567 = vmatprep.subr.bf16.mxu1 %v4566_v48  ;;  %v4574_v0 = vpack.c.bf16 %v3635_v12, %v3634_v8 }
 0x6c6   :  { %v4456_v32 = vpop.f32.mrb[36].mxu1 }
 0x6c7   :  { %v3323_v3 = vadd.f32 %v4456_v32, %v4089_v54  ;;  %v3317_v27 = vpop.f32.mrb[37].mxu1 }
 0x6c8   :  { %v3318_v49 = vadd.f32 %v4089_v54, %v3317_v27  ;;  %v4586_v54 = vpack.c.bf16 %v3779_v41, %v3778_v39 }
 0x6c9   :  { %v3327_v63 = vmax.f32 %v3323_v3, 0.0 }
 0x6ca   :  { %v3326_v61 = vmax.f32 %v3318_v49, 0.0 }
 0x6cb   :  { %v3409_v5 = vmul.f32 %v6676_v44, %v3327_v63 }
 0x6cc   :  { %v3408_v10 = vmul.f32 %v6679_v62, %v3326_v61 }
 0x6cd   :  { %v3417_v20 = vsel %vm1009_vm0, %v3409_v5, -inf }
 0x6ce   :  { %v3418_v21 = vrot.slane %v3417_v20, 4  ;;  %v3410_v45 = vsel %vm1009_vm0, %v3408_v10, -inf }
 0x6cf   :  { %v3411_v34 = vrot.slane %v3410_v45, 4 }
 0x6d0   :  { %v3419_v25 = vmax.f32 %v3417_v20, %v3418_v21 }
 0x6d1   :  { %v3412_v35 = vmax.f32 %v3410_v45, %v3411_v34 }
 0x6d2   :  { %v3420_v59 = vrot.slane %v3419_v25, 2 }
 0x6d3   :  { %v3413_v57 = vrot.slane %v3412_v35, 2 }
 0x6d4   :  { %v3421_v7 = vmax.f32 %v3419_v25, %v3420_v59 }
 0x6d5   :  { %v3414_v38 = vmax.f32 %v3412_v35, %v3413_v57  ;;  %v3863_v57 = vld [vmem:[%s6800_s22] sm:$0xff] }
 0x6d6   :  { %v3422_v46 = vrot.slane %v3421_v7, 1 }
 0x6d7   :  { %v3415_v13 = vrot.slane %v3414_v38, 1 }
 0x6d8   :  { %v3423_v58 = vmax.f32 %v3421_v7, %v3422_v46 }
 0x6d9   :  { %v3416_v56 = vmax.f32 %v3414_v38, %v3415_v13 }
 0x6db   :  { %v3430_v26 = vsel %vm1719_vm4, %v3423_v58, %v3416_v56  ;;  %v4592_v58 = vpack.c.bf16 %v3866_v37, %v3865_v14  ;;  %v4099_v56 = vld [vmem:[%s6799_s21] ss:$0 sm:$0xff] }
 0x6dc   :  { %4466 = vmatmul.mubr.msk.f32.vlgmr.msra.gmra.mrb[38].mxu1 %vm1009_vm0, %v3430_v26 }
 0x6dd   :  { %4569 = vmatpush3.bf16.msra.mxu1 %v4566_v48  ;;  %4476 = vmatprep.mubr.msk.f32.mxu1 %vm1009_vm0, %v3408_v10  ;;  %v3636_v48 = vld [vmem:[%s6796_s18 + $0x10] sm:$0xff] }
 0x6de   :  { %4571 = vmatprep.subr.bf16.mxu1 %v4570_v40  ;;  %v4578_v11 = vpack.c.bf16 %v3637_v55, %v3636_v48 }
 0x6e1   :  { %4573 = vmatpush3.bf16.msra.mxu1 %v4570_v40 }
 0x6e2   :  { %4575 = vmatprep.subr.bf16.mxu1 %v4574_v0 }
 0x6e4   :  { %4477 = vmatmul.mubr.msk.f32.vlgmr.msra.gmra.mrb[40].mxu1 %vm1009_vm0, %v3409_v5 }
 0x6e5   :  { %4577 = vmatpush3.bf16.msra.mxu1 %v4574_v0  ;;  %v3954_v0 = vpop.permute.xlu1 %3953 }
 0x6e6   :  { %4579 = vmatprep.subr.bf16.mxu1 %v4578_v11  ;;  %vm3956_vm12 = vcmp.eq.s32.totalorder %v3954_v0, 1 }
 0x6e9   :  { %4581 = vmatpush3.bf16.msra.mxu1 %v4578_v11  ;;  %v3951_v11 = vpop.permute.xlu0 %3950 }
 0x6ea   :  { %4582 = vmatprep.subr.bf16.mxu1 %v4718_v51  ;;  %vm3955_vm13 = vcmp.eq.s32.totalorder %v3951_v11, 1 }
 0x7af   :  { %v3499_v43 = vpop.f32.mrb[38].mxu1 }
 0x7b0   :  { %v3595_v19 = vrot.slane %v3499_v43, %v6384_v1  ;;  %v4467_v24 = vpop.f32.mrb[39].mxu1 }
 0x7b2   :  { %v3596_v16 = vcombine.high %v3595_v19, %v3595_v19  ;;  %v3603_v17 = vrot.slane %v3595_v19, %v6384_v1 }
 0x7b4   :  { %v3610_v22 = vrot.slane %v3596_v16, %v6384_v1  ;;  %v3614_v2 = vrot.slane %v3603_v17, %v6978_v28  ;;  %v3776_v1 = vld [vmem:[%s6798_s20] sm:$0xff] }
 0x7b6   :  { %v3618_v30 = vrot.slane %v3610_v22, %v6978_v28  ;;  %v3777_v28 = vld [vmem:[%s6798_s20 + $0x8] sm:$0xff] }
 0x7b7   :  { %v4478_v15 = vpop.f32.mrb[40].mxu1  ;;  %v4583_v31 = vpack.c.bf16 %v3777_v28, %v3776_v1 }
 0x7b8   :  { %v3622_v4 = vadd.f32 %v4478_v15, %v3618_v30  ;;  %v3579_v53 = vpop.f32.mrb[41].mxu1 }
 0x7b9   :  { %v3621_v23 = vadd.f32 %v3614_v2, %v3579_v53 }
 0x7ba   :  { %v3631_v42 = vadd.f32 %v4095_v50, %v3622_v4 }
 0x7bb   :  { %v3630_v29 = vadd.f32 %v4095_v50, %v3621_v23 }
 0x7bc   :  { %v3633_v52 = vmax.f32 %v3631_v42, 0.0 }
 0x7bd   :  { %v3632_v36 = vmax.f32 %v3630_v29, 0.0 }
 0x7bf   :  { %4487 = vmatprep.mubr.msk.f32.mxu1 %vm1009_vm0, %v3632_v36 }
 0x7c0   :  { %4488 = vmatmul.mubr.msk.f32.vlgmr.msra.gmra.mrb[42].mxu1 %vm1009_vm0, %v3633_v52 }
 0x7c1   :  { %4498 = vmatprep.mubr.msk.f32.mxu1 %vm4719_vm11, %v4720_v6  ;;  %4584 = vmatpush3.bf16.msra.mxu1 %v4583_v31 }
 0x7c2   :  { %4585 = vmatprep.subr.bf16.mxu1 %v4718_v51 }
 0x7c5   :  { %4587 = vmatpush3.bf16.msra.mxu1 %v4586_v54 }
 0x7c6   :  { %4588 = vmatprep.subr.bf16.mxu1 %v4718_v51 }
 0x893   :  { %v4489_v32 = vpop.f32.mrb[42].mxu1 }
 0x894   :  { %v3723_v47 = vadd.f32 %v4489_v32, %v4096_v60  ;;  %v3717_v3 = vpop.f32.mrb[43].mxu1 }
 0x895   :  { %v3718_v27 = vadd.f32 %v4096_v60, %v3717_v3 }
 0x896   :  { %v3727_v9 = vmax.f32 %v3723_v47, 0.0 }
 0x897   :  { %v3726_v49 = vmax.f32 %v3718_v27, 0.0 }
 0x898   :  { %v3729_v18 = vmul.f32 %v3727_v9, %v6676_v44  ;;  %v3864_v44 = vld [vmem:[%s6800_s22 + $0x8] sm:$0xff]  ;;  %s4721_s22 = smov [#allocation2]  }
 0x899   :  { %v3728_v63 = vmul.f32 %v3726_v49, %v6679_v62  ;;  %v4589_v46 = vpack.c.bf16 %v3864_v44, %v3863_v57  ;;  %s3976_s27 = sshll.u32 %s4721_s22, 4  ;;  %s3977_s27 = int_to_ptr.vmem [resolvable:$true] %s3976_s27 }
 0x89a   :  { %v3737_v33 = vsel %vm1009_vm0, %v3729_v18, -inf  ;;  %s4689_s21 = scalar_lea.vmem %s3977_s27, 32  ;;  %p4694_p1 = scmp.lt.s32.totalorder %s3977_s27, %s3977_s27 }
 0x89b   :  { %v3738_v61 = vrot.slane %v3737_v33, 4  ;;  %v3730_v5 = vsel %vm1009_vm0, %v3728_v63, -inf  ;;  %p4690_p0 = scmp.ne.s32.totalorder %s3977_s27, %s4689_s21  ;;  %p4695_p2 = scmp.lt.s32.totalorder %s4689_s21, %s4689_s21 }
 0x89c   :  { %v3731_v10 = vrot.slane %v3730_v5, 4 }
 0x89d   :  { %v3739_v20 = vmax.f32 %v3737_v33, %v3738_v61  ;;  %p4696_p3 = por %p4695_p2, %p4694_p1 }
 0x89e   :  { %v3732_v21 = vmax.f32 %v3730_v5, %v3731_v10 }
 0x89f   :  { %v3740_v45 = vrot.slane %v3739_v20, 2  ;;  %p4697_p4 = pnand %p4696_p3, %p4690_p0 }
 0x8a0   :  { %v3733_v34 = vrot.slane %v3732_v21, 2 }
 0x8a1   :  { %v3741_v25 = vmax.f32 %v3739_v20, %v3740_v45 }
 0x8a2   :  { %v3734_v35 = vmax.f32 %v3732_v21, %v3733_v34 }
 0x8a3   :  { %v3742_v59 = vrot.slane %v3741_v25, 1 }
 0x8a4   :  { %v3735_v62 = vrot.slane %v3734_v35, 1 }
 0x8a5   :  { %v3743_v7 = vmax.f32 %v3741_v25, %v3742_v59 }
 0x8a6   :  { %v3736_v38 = vmax.f32 %v3734_v35, %v3735_v62 }
 0x8a8   :  { %v3789_v13 = vsel %vm1719_vm4, %v3743_v7, %v3736_v38 }
 0x8a9   :  { %4499 = vmatmul.mubr.msk.f32.vlgmr.msra.gmra.mrb[44].mxu1 %vm1009_vm0, %v3789_v13 }
 0x8aa   :  { %4590 = vmatpush3.bf16.msra.mxu1 %v4589_v46  ;;  %4509 = vmatprep.mubr.msk.f32.mxu1 %vm4719_vm11, %v4720_v6 }
 0x8ab   :  { %4591 = vmatprep.subr.bf16.mxu1 %v4718_v51  ;;  %v4101_v51 = vld [vmem:[%s6801_s23] ss:$0 sm:$0xff] }
 0x8ae   :  { %4593 = vmatpush3.bf16.msra.mxu1 %v4592_v58 }
 0x97c   :  { %v3858_v40 = vpop.f32.mrb[44].mxu1 }
 0x97d   :  { %v3859_v26 = vadd.f32 %v4099_v56, %v3858_v40  ;;  %v4500_v8 = vpop.f32.mrb[45].mxu1 }
 0x97f   :  { %v3862_v6 = vmax.f32 %v3859_v26, 0.0 }
 0x981   :  { %4510 = vmatmul.mubr.msk.f32.vlgmr.msra.gmra.mrb[46].mxu1 %vm1009_vm0, %v3862_v6 }
 0xa54   :  { %v3943_v12 = vpop.f32.mrb[46].mxu1 }
 0xa55   :  { %v3944_v48 = vadd.f32 %v4101_v51, %v3943_v12  ;;  %v4511_v55 = vpop.f32.mrb[47].mxu1 }
 0xa57   :  { %v3958_v43 = vrot.slane %v3944_v48, 1  ;;  %v3961_v16 = vsel %vm3955_vm13, %v3944_v48, 0.0 }
 0xa59   :  { %v3962_v19 = vsel %vm3956_vm12, %v3958_v43, 0.0 }
 0xa5a   :  { %v3965_v24 = vrot.slane %v3962_v19, 7 }
 0xa5c   :  { %v3966_v17 = vsel %vm1719_vm4, %v3965_v24, %v3961_v16 }
 0xa5d   :  { %3969 = vst.msk [vmem:[#allocation2] sm:$0x3] %vm3968_vm14, %v3966_v17 }
 0xa5e   :  { %4700 = shalt.err (!%p4697_p4)
}
 0xa5f   :  { %s4701_s13 = scalar_lea.hbm %s6802_s24, 32 }
 0xa60   :  { %p4702_p5 = scmp.ne.s32.totalorder %s6802_s24, %s4701_s13  ;;  %p4705_p6 = scmp.lt.u32.totalorder %s4701_s13, %s6802_s24 }
 0xa62   :  { %p4707_p7 = pnand %p4705_p6, %p4702_p5 }
 0xa64   :  { %4710 = shalt.err (!%p4707_p7)
}
 0xa65   :  { %3979 = dma.vmem_to_hbm [thread:$0]  %s3977_s27, 32, %s6802_s24, [#allocation3]  }
 0xa66   :  { %4711 = dma.done.wait [#allocation3], 32  }
 0xa67   :  { %4712 = vsyncadd [#allocation3], 4294967264 }
 0xa68   :  { %3983 = vsyncpa [#allocation3], 1 }

</bundles_post_ra>
